<compile_context>
chip_gen: v7x
topology: tpu7x:2x2x1
jax: 0.10.0
libtpu: 0.0.40
codegen_flags: <defaults>
</compile_context>

<pallas_src>
import functools

import numpy as np
import jax
import jax.numpy as jnp
from jax import lax
from jax.experimental import pallas as pl
from jax.experimental.pallas import tpu as pltpu

_MIB = 1024 * 1024


# ---------------------------------------------------------------------------
# helpers
# ---------------------------------------------------------------------------
def _pick_tile(dim, max_tile, align):
    """Largest tile <= max_tile that is a multiple of `align` and divides `dim`.
    Falls back to the full dimension (block == full array dim is always legal).
    TODO(synk): for huge prime-ish dims this fallback can exceed the v7x VMEM
    budget; pad such dims upstream instead."""
    if dim <= max_tile:
        return dim
    t = (max_tile // align) * align
    while t >= align:
        if dim % t == 0:
            return t
        t -= align
    return dim


def _vmem_limit(nbytes):
    """Explicit scoped-VMEM budget: double-buffer headroom, capped below the
    v7x 64 MiB physical VMEM (safe on v5e/v6e which have 128 MiB)."""
    return int(max(32 * _MIB, min(2 * nbytes + 4 * _MIB, 56 * _MIB)))


# ---------------------------------------------------------------------------
# Tiled linear:  y = act(x @ w_t + b)   (bf16 matmul, f32 accumulation)
# ---------------------------------------------------------------------------
def _linear_kernel(x_ref, w_ref, b_ref, o_ref, acc_ref, *, relu):
    k = pl.program_id(2)

    @pl.when(k == 0)
    def _():
        acc_ref[...] = jnp.zeros_like(acc_ref)

    # cast to bf16 inside the kernel (no wrapper-side dtype pass over HBM)
    acc_ref[...] += jnp.dot(x_ref[...].astype(jnp.bfloat16), w_ref[...],
                            preferred_element_type=jnp.float32)

    @pl.when(k == pl.num_programs(2) - 1)
    def _():
        out = acc_ref[...] + b_ref[...]
        if relu:
            out = jnp.maximum(out, 0.0)
        o_ref[...] = out.astype(o_ref.dtype)


def pallas_linear(x, w_t, b, *, out_dtype=jnp.bfloat16, relu=False,
                  tm_max=512, tn_max=512, tk_max=512):
    """x: (M, K) any float dtype, w_t: (K, N) bf16, b: (N,) f32."""
    M, K = x.shape
    K2, N = w_t.shape
    assert K == K2
    tm = _pick_tile(M, tm_max, 8)
    tn = _pick_tile(N, tn_max, 128)
    tk = _pick_tile(K, tk_max, 128)
    grid = (M // tm, N // tn, K // tk)

    x_b = jnp.dtype(x.dtype).itemsize
    o_b = jnp.dtype(out_dtype).itemsize
    need = 2 * (tm * tk * x_b + tk * tn * 2 + tn * 4 + tm * tn * o_b) + tm * tn * 4

    return pl.pallas_call(
        functools.partial(_linear_kernel, relu=relu),
        out_shape=jax.ShapeDtypeStruct((M, N), out_dtype),
        grid=grid,
        in_specs=[
            pl.BlockSpec((tm, tk), lambda i, j, k: (i, k)),
            pl.BlockSpec((tk, tn), lambda i, j, k: (k, j)),
            pl.BlockSpec((1, tn), lambda i, j, k: (0, j)),
        ],
        out_specs=pl.BlockSpec((tm, tn), lambda i, j, k: (i, j)),
        scratch_shapes=[pltpu.VMEM((tm, tn), jnp.float32)],
        compiler_params=pltpu.CompilerParams(
            dimension_semantics=("parallel", "parallel", "arbitrary"),
            vmem_limit_bytes=_vmem_limit(need),
        ),
    )(x, w_t, b.reshape(1, N).astype(jnp.float32))


# ---------------------------------------------------------------------------
# Fused linear + residual add + LayerNorm + mask_pad multiply
#   y = LayerNorm(residual + x @ w_t + b) * pad       (LN over the full N)
# ---------------------------------------------------------------------------
def _linear_addln_kernel(x_ref, w_ref, b_ref, res_ref, g_ref, beta_ref, pad_ref,
                         o_ref, acc_ref, *, eps):
    k = pl.program_id(1)

    @pl.when(k == 0)
    def _():
        acc_ref[...] = jnp.zeros_like(acc_ref)

    acc_ref[...] += jnp.dot(x_ref[...].astype(jnp.bfloat16), w_ref[...],
                            preferred_element_type=jnp.float32)

    @pl.when(k == pl.num_programs(1) - 1)
    def _():
        s = acc_ref[...] + b_ref[...] + res_ref[...].astype(jnp.float32)
        mu = jnp.mean(s, axis=-1, keepdims=True)
        d = s - mu
        var = jnp.mean(d * d, axis=-1, keepdims=True)
        inv = lax.rsqrt(var + eps)
        out = ((d * inv) * g_ref[...] + beta_ref[...]) * pad_ref[...].astype(jnp.float32)
        o_ref[...] = out.astype(o_ref.dtype)


def pallas_linear_add_layernorm(x, w_t, b, residual, gamma, beta, pad, *,
                                out_dtype=jnp.bfloat16, eps=1e-5,
                                tm_max=512, tk_max=512):
    M, K = x.shape
    K2, N = w_t.shape
    assert K == K2 and residual.shape == (M, N)
    tm = _pick_tile(M, tm_max, 8)
    tk = _pick_tile(K, tk_max, 128)
    grid = (M // tm, K // tk)

    x_b = jnp.dtype(x.dtype).itemsize
    r_b = jnp.dtype(residual.dtype).itemsize
    o_b = jnp.dtype(out_dtype).itemsize
    need = (2 * (tm * tk * x_b + tk * N * 2 + tm * N * (r_b + o_b) + 3 * N * 4 + tm * 4)
            + tm * N * 4)

    return pl.pallas_call(
        functools.partial(_linear_addln_kernel, eps=eps),
        out_shape=jax.ShapeDtypeStruct((M, N), out_dtype),
        grid=grid,
        in_specs=[
            pl.BlockSpec((tm, tk), lambda i, k: (i, k)),
            pl.BlockSpec((tk, N), lambda i, k: (k, 0)),
            pl.BlockSpec((1, N), lambda i, k: (0, 0)),
            pl.BlockSpec((tm, N), lambda i, k: (i, 0)),
            pl.BlockSpec((1, N), lambda i, k: (0, 0)),
            pl.BlockSpec((1, N), lambda i, k: (0, 0)),
            pl.BlockSpec((tm, 1), lambda i, k: (i, 0)),
        ],
        out_specs=pl.BlockSpec((tm, N), lambda i, k: (i, 0)),
        scratch_shapes=[pltpu.VMEM((tm, N), jnp.float32)],
        compiler_params=pltpu.CompilerParams(
            dimension_semantics=("parallel", "arbitrary"),
            vmem_limit_bytes=_vmem_limit(need),
        ),
    )(x, w_t, b.reshape(1, N).astype(jnp.float32), residual,
      gamma.reshape(1, N).astype(jnp.float32),
      beta.reshape(1, N).astype(jnp.float32), pad)


# ---------------------------------------------------------------------------
# Attention kernels (one batch per grid step; key bias passed as (1, nk) row)
# ---------------------------------------------------------------------------
def _self_attn_kernel(qkv_ref, bias_ref, o_ref, acc_ref, *, n_heads, d_k, d_model):
    # qkv_ref: (1, nq, 3*d_model) bf16 (fused q|k|v; q already scaled by 1/sqrt(d_k))
    # bias_ref: (1, 1, nk) f32 additive key-padding bias (0 / -1e9)
    bias = bias_ref[0]                                         # (1, nk)
    for h in range(n_heads):                                   # small static unroll
        lo = h * d_k
        qh = qkv_ref[0, :, lo:lo + d_k]                        # (nq, d_k)
        kh = qkv_ref[0, :, d_model + lo:d_model + lo + d_k]    # (nk, d_k)
        vh = qkv_ref[0, :, 2 * d_model + lo:2 * d_model + lo + d_k]
        # contract on last axes of both operands -> no explicit K transpose (XLU)
        s = lax.dot_general(qh, kh, (((1,), (1,)), ((), ())),
                            preferred_element_type=jnp.float32) + bias
        m = jnp.max(s, axis=-1, keepdims=True)
        p = jnp.exp(s - m)
        denom = jnp.sum(p, axis=-1, keepdims=True)             # >= 1 with -1e9 bias
        o = jnp.dot(p.astype(jnp.bfloat16), vh, preferred_element_type=jnp.float32)
        acc_ref[:, lo:lo + d_k] = o * pl.reciprocal(denom, approx=True)
    # single lane-dense store of all heads
    o_ref[0] = acc_ref[...].astype(o_ref.dtype)


def _cross_attn_kernel(*refs, n_heads, d_k, d_model, has_mem):
    if has_mem:
        q_ref, kv_ref, mk_ref, mv_ref, bias_ref, o_ref, acc_ref = refs
    else:
        q_ref, kv_ref, bias_ref, o_ref, acc_ref = refs
    bias = bias_ref[0]                                          # (1, nk)
    for h in range(n_heads):
        lo = h * d_k
        qh = q_ref[0, :, lo:lo + d_k]                           # (nq, d_k), pre-scaled
        kh = kv_ref[0, :, lo:lo + d_k]                          # (nk, d_k)
        vh = kv_ref[0, :, d_model + lo:d_model + lo + d_k]      # (nk, d_k)
        s = lax.dot_general(qh, kh, (((1,), (1,)), ((), ())),
                            preferred_element_type=jnp.float32) + bias
        if has_mem:
            mkh = mk_ref[:, lo:lo + d_k]                        # (n_mem, d_k)
            mvh = mv_ref[:, lo:lo + d_k]
            sm = lax.dot_general(qh, mkh, (((1,), (1,)), ((), ())),
                                 preferred_element_type=jnp.float32)  # unmasked
            m = jnp.maximum(jnp.max(s, axis=-1, keepdims=True),
                            jnp.max(sm, axis=-1, keepdims=True))
            p = jnp.exp(s - m)
            pm = jnp.exp(sm - m)
            denom = (jnp.sum(p, axis=-1, keepdims=True)
                     + jnp.sum(pm, axis=-1, keepdims=True))
            o = (jnp.dot(p.astype(jnp.bfloat16), vh, preferred_element_type=jnp.float32)
                 + jnp.dot(pm.astype(jnp.bfloat16), mvh,
                           preferred_element_type=jnp.float32))
        else:
            m = jnp.max(s, axis=-1, keepdims=True)
            p = jnp.exp(s - m)
            denom = jnp.sum(p, axis=-1, keepdims=True)
            o = jnp.dot(p.astype(jnp.bfloat16), vh, preferred_element_type=jnp.float32)
        acc_ref[:, lo:lo + d_k] = o * pl.reciprocal(denom, approx=True)
    o_ref[0] = acc_ref[...].astype(o_ref.dtype)


def pallas_self_attention(qkv, key_bias, *, n_heads):
    b_s, nq, d3 = qkv.shape
    d_model = d3 // 3
    d_k = d_model // n_heads
    nk = key_bias.shape[-1]
    need = 2 * (nq * d3 * 2 + nk * 4 + nq * d_model * 2) + nq * d_model * 4
    return pl.pallas_call(
        functools.partial(_self_attn_kernel, n_heads=n_heads, d_k=d_k,
                          d_model=d_model),
        out_shape=jax.ShapeDtypeStruct((b_s, nq, d_model), jnp.bfloat16),
        grid=(b_s,),                                           # bt=1: b_s parallel steps
        in_specs=[
            pl.BlockSpec((1, nq, d3), lambda b: (b, 0, 0)),
            pl.BlockSpec((1, 1, nk), lambda b: (b, 0, 0)),
        ],
        out_specs=pl.BlockSpec((1, nq, d_model), lambda b: (b, 0, 0)),
        scratch_shapes=[pltpu.VMEM((nq, d_model), jnp.float32)],
        compiler_params=pltpu.CompilerParams(
            dimension_semantics=("parallel",),
            vmem_limit_bytes=_vmem_limit(need),
        ),
    )(qkv, key_bias)


def pallas_cross_attention(qp, kv, key_bias, mem_k, mem_v, *, n_heads):
    b_s, nq, d_model = qp.shape
    nk = kv.shape[1]
    d_k = d_model // n_heads
    has_mem = mem_k is not None

    in_specs = [
        pl.BlockSpec((1, nq, d_model), lambda b: (b, 0, 0)),
        pl.BlockSpec((1, nk, 2 * d_model), lambda b: (b, 0, 0)),
    ]
    args = [qp, kv]
    if has_mem:
        n_mem = mem_k.shape[0]
        in_specs += [
            pl.BlockSpec((n_mem, d_model), lambda b: (0, 0)),
            pl.BlockSpec((n_mem, d_model), lambda b: (0, 0)),
        ]
        args += [mem_k, mem_v]
    in_specs.append(pl.BlockSpec((1, 1, nk), lambda b: (b, 0, 0)))
    args.append(key_bias)

    need = (2 * (nq * d_model * 2 + nk * 2 * d_model * 2 + nk * 4 + nq * d_model * 2)
            + nq * d_model * 4)
    return pl.pallas_call(
        functools.partial(_cross_attn_kernel, n_heads=n_heads, d_k=d_k,
                          d_model=d_model, has_mem=has_mem),
        out_shape=jax.ShapeDtypeStruct((b_s, nq, d_model), jnp.bfloat16),
        grid=(b_s,),
        in_specs=in_specs,
        out_specs=pl.BlockSpec((1, nq, d_model), lambda b: (b, 0, 0)),
        scratch_shapes=[pltpu.VMEM((nq, d_model), jnp.float32)],
        compiler_params=pltpu.CompilerParams(
            dimension_semantics=("parallel",),
            vmem_limit_bytes=_vmem_limit(need),
        ),
    )(*args)


# ---------------------------------------------------------------------------
# Parameter init (kernel-ready layout: transposed bf16 weights, f32 biases,
# 1/sqrt(d_k) folded into the q projection, stacked QKV / KV weights,
# memory slots pre-scaled so the kernel sees plain dot products)
# ---------------------------------------------------------------------------
def _xavier(key, out_f, in_f):
    limit = float(np.sqrt(6.0 / (in_f + out_f)))
    return jax.random.uniform(key, (out_f, in_f), jnp.float32, -limit, limit)


def init_attention_block_params(key, d_model, n_heads, n_memories, fuse_qkv):
    d_k = d_model // n_heads
    scale = 1.0 / float(np.sqrt(d_k))
    ks = jax.random.split(key, 6)
    # nn.Linear layout (out, in); fold the 1/sqrt(d_k) score scale into W_q (+ b_q).
    # NOTE: when loading pretrained weights, b_q must also be scaled by 1/sqrt(d_k).
    wq = _xavier(ks[0], d_model, d_model) * scale
    wk = _xavier(ks[1], d_model, d_model)
    wv = _xavier(ks[2], d_model, d_model)
    wo = _xavier(ks[3], d_model, d_model)
    bq = jnp.zeros((d_model,), jnp.float32) * scale
    bk = jnp.zeros((d_model,), jnp.float32)
    bv = jnp.zeros((d_model,), jnp.float32)
    bo = jnp.zeros((d_model,), jnp.float32)

    p = {
        "wo_t": wo.T.astype(jnp.bfloat16),
        "bo": bo,
        "ln_g": jnp.ones((d_model,), jnp.float32),
        "ln_b": jnp.zeros((d_model,), jnp.float32),
    }
    if fuse_qkv:
        p["wqkv_t"] = jnp.concatenate([wq.T, wk.T, wv.T], axis=1).astype(jnp.bfloat16)
        p["bqkv"] = jnp.concatenate([bq, bk, bv])
    else:
        p["wq_t"] = wq.T.astype(jnp.bfloat16)
        p["bq"] = bq
        p["wkv_t"] = jnp.concatenate([wk.T, wv.T], axis=1).astype(jnp.bfloat16)
        p["bkv"] = jnp.concatenate([bk, bv])
    if n_memories > 0:
        m_k = 0.01 * jax.random.normal(ks[4], (n_memories, d_model), jnp.float32)
        m_v = 0.01 * jax.random.normal(ks[5], (n_memories, d_model), jnp.float32)
        # reference: (q_proj . (m_k*sqrt(d_k))) / sqrt(d_k)  ==  q_scaled . (m_k*sqrt(d_k))
        p["m_k"] = (m_k * np.sqrt(d_k)).astype(jnp.bfloat16)
        p["m_v"] = (m_v * np.sqrt(n_memories)).astype(jnp.bfloat16)
    return p


def init_ffn_params(key, d_model, d_ff):
    k1, k2 = jax.random.split(key)
    w1 = _xavier(k1, d_ff, d_model)
    w2 = _xavier(k2, d_model, d_ff)
    return {
        "w1_t": w1.T.astype(jnp.bfloat16),
        "b1": jnp.zeros((d_ff,), jnp.float32),
        "w2_t": w2.T.astype(jnp.bfloat16),
        "b2": jnp.zeros((d_model,), jnp.float32),
        "ln_g": jnp.ones((d_model,), jnp.float32),
        "ln_b": jnp.zeros((d_model,), jnp.float32),
    }


def init_sequential_attention_layer_params(key, d_model, n_heads, d_ff, n_memories):
    k1, k2, k3, k4 = jax.random.split(key, 4)
    return {
        # GeneratorLayer builds self_att with n_memories=0 (see reference __init__).
        "self_att": init_attention_block_params(k1, d_model, n_heads, 0, fuse_qkv=True),
        "vis_att1": init_attention_block_params(k2, d_model, n_heads, n_memories, fuse_qkv=False),
        "vis_att2": init_attention_block_params(k3, d_model, n_heads, n_memories, fuse_qkv=False),
        "pwff": init_ffn_params(k4, d_model, d_ff),
    }


# ---------------------------------------------------------------------------
# Forward pass
# ---------------------------------------------------------------------------
def _mask_to_key_bias(mask, b_s, nk):
    """PyTorch semantics: True => masked (score -> -inf).  Returns a (b_s, 1, nk)
    additive f32 key-padding bias (nq-redundant dense bias is never materialized)."""
    if mask is None:
        return jnp.zeros((b_s, 1, nk), jnp.float32)
    m = jnp.asarray(mask).astype(bool).reshape(b_s, -1, nk)[:, :1, :]
    return jnp.where(m, jnp.float32(-1e9), jnp.float32(0.0))


def mha_forward(p, queries, keys, values, attn_mask, mask_pad, *, n_heads,
                out_dtype=jnp.bfloat16):
    """MultiHeadAttention: LayerNorm(queries + Attention(q,k,v)) * mask_pad."""
    b_s, nq, d_model = queries.shape
    nk = keys.shape[1]
    Mq = b_s * nq
    qf = queries.reshape(Mq, d_model)
    key_bias = _mask_to_key_bias(attn_mask, b_s, nk)

    if "wqkv_t" in p:
        # self-attention: q, k, v share the same input -> one fused QKV projection
        assert queries is keys and keys is values
        qkv = pallas_linear(qf, p["wqkv_t"], p["bqkv"])
        att = pallas_self_attention(qkv.reshape(b_s, nq, 3 * d_model), key_bias,
                                    n_heads=n_heads)
    else:
        # cross-attention: k and v share the same input -> fused KV projection
        assert keys is values
        kf = keys.reshape(b_s * nk, d_model)
        qp = pallas_linear(qf, p["wq_t"], p["bq"])
        kv = pallas_linear(kf, p["wkv_t"], p["bkv"])
        att = pallas_cross_attention(qp.reshape(b_s, nq, d_model),
                                     kv.reshape(b_s, nk, 2 * d_model),
                                     key_bias, p.get("m_k"), p.get("m_v"),
                                     n_heads=n_heads)

    # fc_o + residual + LayerNorm + mask_pad fused in one kernel epilogue
    out = pallas_linear_add_layernorm(att.reshape(Mq, d_model), p["wo_t"], p["bo"],
                                      qf, p["ln_g"], p["ln_b"],
                                      mask_pad.reshape(Mq, 1), out_dtype=out_dtype)
    return out.reshape(b_s, nq, d_model)


def ffn_forward(p, x, mask_pad, *, out_dtype=jnp.float32):
    b_s, nq, d_model = x.shape
    M = b_s * nq
    xf = x.reshape(M, d_model)
    h = pallas_linear(xf, p["w1_t"], p["b1"], relu=True)
    out = pallas_linear_add_layernorm(h, p["w2_t"], p["b2"], xf,
                                      p["ln_g"], p["ln_b"], mask_pad.reshape(M, 1),
                                      out_dtype=out_dtype)
    return out.reshape(b_s, nq, d_model)


def sequential_attention_forward(params, x, y1, y2, mask_pad, mask_x, mask_y1, mask_y2,
                                 *, n_heads):
    out = mha_forward(params["self_att"], x, x, x, mask_x, mask_pad, n_heads=n_heads)
    out = mha_forward(params["vis_att1"], out, y1, y1, mask_y1, mask_pad, n_heads=n_heads)
    out = mha_forward(params["vis_att2"], out, y2, y2, mask_y2, mask_pad, n_heads=n_heads)
    ff = ffn_forward(params["pwff"], out, mask_pad, out_dtype=jnp.float32)
    return ff


# ---------------------------------------------------------------------------
# Demo
# ---------------------------------------------------------------------------
if __name__ == "__main__":
    d_model, n_heads, d_ff, n_memories = 32, 4, 64, 4
    batch, seq_x, seq_y = 2, 8, 8

    root = jax.random.PRNGKey(0)
    pk, xk, y1k, y2k = jax.random.split(root, 4)
    params = init_sequential_attention_layer_params(pk, d_model, n_heads, d_ff, n_memories)

    x = jax.random.normal(xk, (batch, seq_x, d_model), jnp.float32)
    y1 = jax.random.normal(y1k, (batch, seq_y, d_model), jnp.float32)
    y2 = jax.random.normal(y2k, (batch, seq_y, d_model), jnp.float32)

    # padding masks (True = masked); mask_pad is the multiplicative float mask
    lengths_x = jnp.array([seq_x, seq_x - 2])
    valid_x = jnp.arange(seq_x)[None, :] < lengths_x[:, None]         # (b, seq_x)
    mask_pad = valid_x[:, :, None].astype(jnp.float32)                # (b, seq_x, 1)
    mask_x = (~valid_x)[:, None, None, :]                             # (b, 1, 1, seq_x)

    lengths_y = jnp.array([seq_y, seq_y - 3])
    valid_y = jnp.arange(seq_y)[None, :] < lengths_y[:, None]
    mask_y1 = (~valid_y)[:, None, None, :]
    mask_y2 = (~valid_y)[:, None, None, :]

    fwd = jax.jit(functools.partial(sequential_attention_forward, n_heads=n_heads))
    out = fwd(params, x, y1, y2, mask_pad, mask_x, mask_y1, mask_y2)
    out = jax.block_until_ready(out)

    assert out.shape == (batch, seq_x, d_model)
    assert bool(jnp.all(jnp.isfinite(out)))
    print("KERNEL_OK")
</pallas_src>

<mosaic_0001>
module attributes {stable_mosaic.version = 11 : i64} {
  func.func @_linear_kernel(%arg0: i32, %arg1: i32, %arg2: i32, %arg3: memref<16x32xf32, #tpu.memory_space<vmem>>, %arg4: memref<32x96xbf16, #tpu.memory_space<vmem>>, %arg5: memref<1x96xf32, #tpu.memory_space<vmem>>, %arg6: memref<16x96xbf16, #tpu.memory_space<vmem>>, %arg7: memref<16x96xf32, #tpu.memory_space<vmem>>) attributes {dimension_semantics = [#tpu.dimension_semantics<parallel>, #tpu.dimension_semantics<parallel>, #tpu.dimension_semantics<arbitrary>], iteration_bounds = array<i64: 1, 1, 1>, scalar_prefetch = 0 : i64, scratch_operands = 1 : i64, tpu.core_type = #tpu.core_type<tc>, window_params = [{transform_indices = @transform_0, window_bounds = array<i64: 16, 32>}, {transform_indices = @transform_1, window_bounds = array<i64: 32, 96>}, {transform_indices = @transform_2, window_bounds = array<i64: 1, 96>}, {transform_indices = @transform_3, window_bounds = array<i64: 16, 96>}]} {
    %c0_i32 = arith.constant 0 : i32
    %0 = arith.cmpi eq, %arg2, %c0_i32 : i32
    %1 = arith.extui %0 : i1 to i32
    %c0_i32_0 = arith.constant 0 : i32
    %2 = arith.cmpi ne, %1, %c0_i32_0 : i32
    scf.if %2 {
      %cst_10 = arith.constant 0.000000e+00 : f32
      %13 = vector.broadcast %cst_10 : f32 to vector<16x96xf32>
      %c0_11 = arith.constant 0 : index
      %c0_12 = arith.constant 0 : index
      %14 = vector.load %arg7[%c0_11, %c0_12] : memref<16x96xf32, #tpu.memory_space<vmem>>, vector<16x96xf32>
      tpu.vector_store %arg7[%c0_11, %c0_12], %13 {strides = array<i32>} : memref<16x96xf32, #tpu.memory_space<vmem>>, vector<16x96xf32>,
    } else {
    }
    %c0 = arith.constant 0 : index
    %c0_1 = arith.constant 0 : index
    %3 = vector.load %arg7[%c0, %c0_1] : memref<16x96xf32, #tpu.memory_space<vmem>>, vector<16x96xf32>
    %c0_2 = arith.constant 0 : index
    %c0_3 = arith.constant 0 : index
    %4 = vector.load %arg3[%c0_2, %c0_3] : memref<16x32xf32, #tpu.memory_space<vmem>>, vector<16x32xf32>
    %5 = arith.truncf %4 : vector<16x32xf32> to vector<16x32xbf16>
    %c0_4 = arith.constant 0 : index
    %c0_5 = arith.constant 0 : index
    %6 = vector.load %arg4[%c0_4, %c0_5] : memref<32x96xbf16, #tpu.memory_space<vmem>>, vector<32x96xbf16>
    %cst = arith.constant dense<0.000000e+00> : vector<16x96xf32>
    %7 = tpu.matmul %5, %6, %cst {dimension_numbers = #tpu.dot_dimension_numbers<[1], [0], [0], [1], [0, 0, 1, 1], [], []>} : vector<16x32xbf16>, vector<32x96xbf16>, vector<16x96xf32> -> vector<16x96xf32>
    %8 = arith.addf %3, %7 : vector<16x96xf32>
    %c0_6 = arith.constant 0 : index
    %c0_7 = arith.constant 0 : index
    %9 = vector.load %arg7[%c0_6, %c0_7] : memref<16x96xf32, #tpu.memory_space<vmem>>, vector<16x96xf32>
    tpu.vector_store %arg7[%c0_6, %c0_7], %8 {strides = array<i32>} : memref<16x96xf32, #tpu.memory_space<vmem>>, vector<16x96xf32>,
    %c0_i32_8 = arith.constant 0 : i32
    %10 = arith.cmpi eq, %arg2, %c0_i32_8 : i32
    %11 = arith.extui %10 : i1 to i32
    %c0_i32_9 = arith.constant 0 : i32
    %12 = arith.cmpi ne, %11, %c0_i32_9 : i32
    scf.if %12 {
      %c0_10 = arith.constant 0 : index
      %c0_11 = arith.constant 0 : index
      %13 = vector.load %arg7[%c0_10, %c0_11] : memref<16x96xf32, #tpu.memory_space<vmem>>, vector<16x96xf32>
      %c0_12 = arith.constant 0 : index
      %c0_13 = arith.constant 0 : index
      %14 = vector.load %arg5[%c0_12, %c0_13] : memref<1x96xf32, #tpu.memory_space<vmem>>, vector<1x96xf32>
      %15 = vector.broadcast %14 : vector<1x96xf32> to vector<16x96xf32>
      %16 = arith.addf %13, %15 : vector<16x96xf32>
      %17 = arith.truncf %16 : vector<16x96xf32> to vector<16x96xbf16>
      %c0_14 = arith.constant 0 : index
      %c0_15 = arith.constant 0 : index
      %18 = vector.load %arg6[%c0_14, %c0_15] : memref<16x96xbf16, #tpu.memory_space<vmem>>, vector<16x96xbf16>
      tpu.vector_store %arg6[%c0_14, %c0_15], %17 {strides = array<i32>} : memref<16x96xbf16, #tpu.memory_space<vmem>>, vector<16x96xbf16>,
    } else {
    }
    return
  }
  func.func @transform_0(%arg0: i32, %arg1: i32, %arg2: i32) -> (i32, i32) {
    %c0_i32 = arith.constant 0 : i32
    return %arg0, %arg2 : i32, i32
  }
  func.func @transform_1(%arg0: i32, %arg1: i32, %arg2: i32) -> (i32, i32) {
    %c0_i32 = arith.constant 0 : i32
    return %arg2, %arg1 : i32, i32
  }
  func.func @transform_2(%arg0: i32, %arg1: i32, %arg2: i32) -> (i32, i32) {
    %c0_i32 = arith.constant 0 : i32
    %c0_i32_0 = arith.constant 0 : i32
    return %c0_i32, %arg1 : i32, i32
  }
  func.func @transform_3(%arg0: i32, %arg1: i32, %arg2: i32) -> (i32, i32) {
    %c0_i32 = arith.constant 0 : i32
    return %arg0, %arg1 : i32, i32
  }
}

module attributes {stable_mosaic.version = 11 : i64} {
  func.func @_self_attn_kernel(%arg0: i32, %arg1: memref<1x8x96xbf16, #tpu.memory_space<vmem>>, %arg2: memref<1x1x8xf32, #tpu.memory_space<vmem>>, %arg3: memref<1x8x32xbf16, #tpu.memory_space<vmem>>, %arg4: memref<8x32xf32, #tpu.memory_space<vmem>>) attributes {dimension_semantics = [#tpu.dimension_semantics<parallel>], iteration_bounds = array<i64: 2>, scalar_prefetch = 0 : i64, scratch_operands = 1 : i64, tpu.core_type = #tpu.core_type<tc>, window_params = [{transform_indices = @transform_0, window_bounds = array<i64: 1, 8, 96>}, {transform_indices = @transform_1, window_bounds = array<i64: 1, 1, 8>}, {transform_indices = @transform_2, window_bounds = array<i64: 1, 8, 32>}]} {
    %c0 = arith.constant 0 : index
    %c0_0 = arith.constant 0 : index
    %c0_1 = arith.constant 0 : index
    %0 = vector.load %arg2[%c0, %c0_0, %c0_1] : memref<1x1x8xf32, #tpu.memory_space<vmem>>, vector<1x1x8xf32>
    %1 = vector.shape_cast %0 : vector<1x1x8xf32> to vector<1x8xf32>
    %c0_2 = arith.constant 0 : index
    %c0_3 = arith.constant 0 : index
    %c0_4 = arith.constant 0 : index
    %2 = vector.load %arg1[%c0_2, %c0_3, %c0_4] : memref<1x8x96xbf16, #tpu.memory_space<vmem>>, vector<1x8x8xbf16>
    %3 = vector.shape_cast %2 : vector<1x8x8xbf16> to vector<8x8xbf16>
    %c0_5 = arith.constant 0 : index
    %c0_6 = arith.constant 0 : index
    %c32 = arith.constant 32 : index
    %4 = vector.load %arg1[%c0_5, %c0_6, %c32] : memref<1x8x96xbf16, #tpu.memory_space<vmem>>, vector<1x8x8xbf16>
    %5 = vector.shape_cast %4 : vector<1x8x8xbf16> to vector<8x8xbf16>
    %c0_7 = arith.constant 0 : index
    %c0_8 = arith.constant 0 : index
    %c64 = arith.constant 64 : index
    %6 = vector.load %arg1[%c0_7, %c0_8, %c64] : memref<1x8x96xbf16, #tpu.memory_space<vmem>>, vector<1x8x8xbf16>
    %7 = vector.shape_cast %6 : vector<1x8x8xbf16> to vector<8x8xbf16>
    %cst = arith.constant dense<0.000000e+00> : vector<8x8xf32>
    %8 = tpu.matmul %3, %5, %cst {dimension_numbers = #tpu.dot_dimension_numbers<[1], [1], [0], [0], [0, 0, 1, 0], [], []>} : vector<8x8xbf16>, vector<8x8xbf16>, vector<8x8xf32> -> vector<8x8xf32>
    %9 = vector.broadcast %1 : vector<1x8xf32> to vector<8x8xf32>
    %10 = arith.addf %8, %9 : vector<8x8xf32>
    %cst_9 = arith.constant dense<0xFF800000> : vector<8xf32>
    %11 = vector.multi_reduction <maximumf>, %10, %cst_9 [1] : vector<8x8xf32> to vector<8xf32>
    %12 = vector.shape_cast %11 : vector<8xf32> to vector<8x1xf32>
    %13 = vector.broadcast %12 : vector<8x1xf32> to vector<8x8xf32>
    %14 = arith.subf %10, %13 : vector<8x8xf32>
    %15 = math.exp %14 : vector<8x8xf32>
    %cst_10 = arith.constant dense<0.000000e+00> : vector<8xf32>
    %16 = vector.multi_reduction <add>, %15, %cst_10 [1] : vector<8x8xf32> to vector<8xf32>
    %17 = vector.shape_cast %16 : vector<8xf32> to vector<8x1xf32>
    %18 = arith.truncf %15 : vector<8x8xf32> to vector<8x8xbf16>
    %cst_11 = arith.constant dense<0.000000e+00> : vector<8x8xf32>
    %19 = tpu.matmul %18, %7, %cst_11 {dimension_numbers = #tpu.dot_dimension_numbers<[1], [0], [0], [1], [0, 0, 1, 1], [], []>} : vector<8x8xbf16>, vector<8x8xbf16>, vector<8x8xf32> -> vector<8x8xf32>
    %20 = tpu.reciprocal %17 {approx = true} : vector<8x1xf32> -> vector<8x1xf32>
    %21 = vector.broadcast %20 : vector<8x1xf32> to vector<8x8xf32>
    %22 = arith.mulf %19, %21 : vector<8x8xf32>
    %c0_12 = arith.constant 0 : index
    %c0_13 = arith.constant 0 : index
    %23 = vector.load %arg4[%c0_12, %c0_13] : memref<8x32xf32, #tpu.memory_space<vmem>>, vector<8x8xf32>
    tpu.vector_store %arg4[%c0_12, %c0_13], %22 {strides = array<i32>} : memref<8x32xf32, #tpu.memory_space<vmem>>, vector<8x8xf32>,
    %c0_14 = arith.constant 0 : index
    %c0_15 = arith.constant 0 : index
    %c8 = arith.constant 8 : index
    %24 = vector.load %arg1[%c0_14, %c0_15, %c8] : memref<1x8x96xbf16, #tpu.memory_space<vmem>>, vector<1x8x8xbf16>
    %25 = vector.shape_cast %24 : vector<1x8x8xbf16> to vector<8x8xbf16>
    %c0_16 = arith.constant 0 : index
    %c0_17 = arith.constant 0 : index
    %c40 = arith.constant 40 : index
    %26 = vector.load %arg1[%c0_16, %c0_17, %c40] : memref<1x8x96xbf16, #tpu.memory_space<vmem>>, vector<1x8x8xbf16>
    %27 = vector.shape_cast %26 : vector<1x8x8xbf16> to vector<8x8xbf16>
    %c0_18 = arith.constant 0 : index
    %c0_19 = arith.constant 0 : index
    %c72 = arith.constant 72 : index
    %28 = vector.load %arg1[%c0_18, %c0_19, %c72] : memref<1x8x96xbf16, #tpu.memory_space<vmem>>, vector<1x8x8xbf16>
    %29 = vector.shape_cast %28 : vector<1x8x8xbf16> to vector<8x8xbf16>
    %cst_20 = arith.constant dense<0.000000e+00> : vector<8x8xf32>
    %30 = tpu.matmul %25, %27, %cst_20 {dimension_numbers = #tpu.dot_dimension_numbers<[1], [1], [0], [0], [0, 0, 1, 0], [], []>} : vector<8x8xbf16>, vector<8x8xbf16>, vector<8x8xf32> -> vector<8x8xf32>
    %31 = vector.broadcast %1 : vector<1x8xf32> to vector<8x8xf32>
    %32 = arith.addf %30, %31 : vector<8x8xf32>
    %cst_21 = arith.constant dense<0xFF800000> : vector<8xf32>
    %33 = vector.multi_reduction <maximumf>, %32, %cst_21 [1] : vector<8x8xf32> to vector<8xf32>
    %34 = vector.shape_cast %33 : vector<8xf32> to vector<8x1xf32>
    %35 = vector.broadcast %34 : vector<8x1xf32> to vector<8x8xf32>
    %36 = arith.subf %32, %35 : vector<8x8xf32>
    %37 = math.exp %36 : vector<8x8xf32>
    %cst_22 = arith.constant dense<0.000000e+00> : vector<8xf32>
    %38 = vector.multi_reduction <add>, %37, %cst_22 [1] : vector<8x8xf32> to vector<8xf32>
    %39 = vector.shape_cast %38 : vector<8xf32> to vector<8x1xf32>
    %40 = arith.truncf %37 : vector<8x8xf32> to vector<8x8xbf16>
    %cst_23 = arith.constant dense<0.000000e+00> : vector<8x8xf32>
    %41 = tpu.matmul %40, %29, %cst_23 {dimension_numbers = #tpu.dot_dimension_numbers<[1], [0], [0], [1], [0, 0, 1, 1], [], []>} : vector<8x8xbf16>, vector<8x8xbf16>, vector<8x8xf32> -> vector<8x8xf32>
    %42 = tpu.reciprocal %39 {approx = true} : vector<8x1xf32> -> vector<8x1xf32>
    %43 = vector.broadcast %42 : vector<8x1xf32> to vector<8x8xf32>
    %44 = arith.mulf %41, %43 : vector<8x8xf32>
    %c0_24 = arith.constant 0 : index
    %c8_25 = arith.constant 8 : index
    %45 = vector.load %arg4[%c0_24, %c8_25] : memref<8x32xf32, #tpu.memory_space<vmem>>, vector<8x8xf32>
    tpu.vector_store %arg4[%c0_24, %c8_25], %44 {strides = array<i32>} : memref<8x32xf32, #tpu.memory_space<vmem>>, vector<8x8xf32>,
    %c0_26 = arith.constant 0 : index
    %c0_27 = arith.constant 0 : index
    %c16 = arith.constant 16 : index
    %46 = vector.load %arg1[%c0_26, %c0_27, %c16] : memref<1x8x96xbf16, #tpu.memory_space<vmem>>, vector<1x8x8xbf16>
    %47 = vector.shape_cast %46 : vector<1x8x8xbf16> to vector<8x8xbf16>
    %c0_28 = arith.constant 0 : index
    %c0_29 = arith.constant 0 : index
    %c48 = arith.constant 48 : index
    %48 = vector.load %arg1[%c0_28, %c0_29, %c48] : memref<1x8x96xbf16, #tpu.memory_space<vmem>>, vector<1x8x8xbf16>
    %49 = vector.shape_cast %48 : vector<1x8x8xbf16> to vector<8x8xbf16>
    %c0_30 = arith.constant 0 : index
    %c0_31 = arith.constant 0 : index
    %c80 = arith.constant 80 : index
    %50 = vector.load %arg1[%c0_30, %c0_31, %c80] : memref<1x8x96xbf16, #tpu.memory_space<vmem>>, vector<1x8x8xbf16>
    %51 = vector.shape_cast %50 : vector<1x8x8xbf16> to vector<8x8xbf16>
    %cst_32 = arith.constant dense<0.000000e+00> : vector<8x8xf32>
    %52 = tpu.matmul %47, %49, %cst_32 {dimension_numbers = #tpu.dot_dimension_numbers<[1], [1], [0], [0], [0, 0, 1, 0], [], []>} : vector<8x8xbf16>, vector<8x8xbf16>, vector<8x8xf32> -> vector<8x8xf32>
    %53 = vector.broadcast %1 : vector<1x8xf32> to vector<8x8xf32>
    %54 = arith.addf %52, %53 : vector<8x8xf32>
    %cst_33 = arith.constant dense<0xFF800000> : vector<8xf32>
    %55 = vector.multi_reduction <maximumf>, %54, %cst_33 [1] : vector<8x8xf32> to vector<8xf32>
    %56 = vector.shape_cast %55 : vector<8xf32> to vector<8x1xf32>
    %57 = vector.broadcast %56 : vector<8x1xf32> to vector<8x8xf32>
    %58 = arith.subf %54, %57 : vector<8x8xf32>
    %59 = math.exp %58 : vector<8x8xf32>
    %cst_34 = arith.constant dense<0.000000e+00> : vector<8xf32>
    %60 = vector.multi_reduction <add>, %59, %cst_34 [1] : vector<8x8xf32> to vector<8xf32>
    %61 = vector.shape_cast %60 : vector<8xf32> to vector<8x1xf32>
    %62 = arith.truncf %59 : vector<8x8xf32> to vector<8x8xbf16>
    %cst_35 = arith.constant dense<0.000000e+00> : vector<8x8xf32>
    %63 = tpu.matmul %62, %51, %cst_35 {dimension_numbers = #tpu.dot_dimension_numbers<[1], [0], [0], [1], [0, 0, 1, 1], [], []>} : vector<8x8xbf16>, vector<8x8xbf16>, vector<8x8xf32> -> vector<8x8xf32>
    %64 = tpu.reciprocal %61 {approx = true} : vector<8x1xf32> -> vector<8x1xf32>
    %65 = vector.broadcast %64 : vector<8x1xf32> to vector<8x8xf32>
    %66 = arith.mulf %63, %65 : vector<8x8xf32>
    %c0_36 = arith.constant 0 : index
    %c16_37 = arith.constant 16 : index
    %67 = vector.load %arg4[%c0_36, %c16_37] : memref<8x32xf32, #tpu.memory_space<vmem>>, vector<8x8xf32>
    tpu.vector_store %arg4[%c0_36, %c16_37], %66 {strides = array<i32>} : memref<8x32xf32, #tpu.memory_space<vmem>>, vector<8x8xf32>,
    %c0_38 = arith.constant 0 : index
    %c0_39 = arith.constant 0 : index
    %c24 = arith.constant 24 : index
    %68 = vector.load %arg1[%c0_38, %c0_39, %c24] : memref<1x8x96xbf16, #tpu.memory_space<vmem>>, vector<1x8x8xbf16>
    %69 = vector.shape_cast %68 : vector<1x8x8xbf16> to vector<8x8xbf16>
    %c0_40 = arith.constant 0 : index
    %c0_41 = arith.constant 0 : index
    %c56 = arith.constant 56 : index
    %70 = vector.load %arg1[%c0_40, %c0_41, %c56] : memref<1x8x96xbf16, #tpu.memory_space<vmem>>, vector<1x8x8xbf16>
    %71 = vector.shape_cast %70 : vector<1x8x8xbf16> to vector<8x8xbf16>
    %c0_42 = arith.constant 0 : index
    %c0_43 = arith.constant 0 : index
    %c88 = arith.constant 88 : index
    %72 = vector.load %arg1[%c0_42, %c0_43, %c88] : memref<1x8x96xbf16, #tpu.memory_space<vmem>>, vector<1x8x8xbf16>
    %73 = vector.shape_cast %72 : vector<1x8x8xbf16> to vector<8x8xbf16>
    %cst_44 = arith.constant dense<0.000000e+00> : vector<8x8xf32>
    %74 = tpu.matmul %69, %71, %cst_44 {dimension_numbers = #tpu.dot_dimension_numbers<[1], [1], [0], [0], [0, 0, 1, 0], [], []>} : vector<8x8xbf16>, vector<8x8xbf16>, vector<8x8xf32> -> vector<8x8xf32>
    %75 = vector.broadcast %1 : vector<1x8xf32> to vector<8x8xf32>
    %76 = arith.addf %74, %75 : vector<8x8xf32>
    %cst_45 = arith.constant dense<0xFF800000> : vector<8xf32>
    %77 = vector.multi_reduction <maximumf>, %76, %cst_45 [1] : vector<8x8xf32> to vector<8xf32>
    %78 = vector.shape_cast %77 : vector<8xf32> to vector<8x1xf32>
    %79 = vector.broadcast %78 : vector<8x1xf32> to vector<8x8xf32>
    %80 = arith.subf %76, %79 : vector<8x8xf32>
    %81 = math.exp %80 : vector<8x8xf32>
    %cst_46 = arith.constant dense<0.000000e+00> : vector<8xf32>
    %82 = vector.multi_reduction <add>, %81, %cst_46 [1] : vector<8x8xf32> to vector<8xf32>
    %83 = vector.shape_cast %82 : vector<8xf32> to vector<8x1xf32>
    %84 = arith.truncf %81 : vector<8x8xf32> to vector<8x8xbf16>
    %cst_47 = arith.constant dense<0.000000e+00> : vector<8x8xf32>
    %85 = tpu.matmul %84, %73, %cst_47 {dimension_numbers = #tpu.dot_dimension_numbers<[1], [0], [0], [1], [0, 0, 1, 1], [], []>} : vector<8x8xbf16>, vector<8x8xbf16>, vector<8x8xf32> -> vector<8x8xf32>
    %86 = tpu.reciprocal %83 {approx = true} : vector<8x1xf32> -> vector<8x1xf32>
    %87 = vector.broadcast %86 : vector<8x1xf32> to vector<8x8xf32>
    %88 = arith.mulf %85, %87 : vector<8x8xf32>
    %c0_48 = arith.constant 0 : index
    %c24_49 = arith.constant 24 : index
    %89 = vector.load %arg4[%c0_48, %c24_49] : memref<8x32xf32, #tpu.memory_space<vmem>>, vector<8x8xf32>
    tpu.vector_store %arg4[%c0_48, %c24_49], %88 {strides = array<i32>} : memref<8x32xf32, #tpu.memory_space<vmem>>, vector<8x8xf32>,
    %c0_50 = arith.constant 0 : index
    %c0_51 = arith.constant 0 : index
    %90 = vector.load %arg4[%c0_50, %c0_51] : memref<8x32xf32, #tpu.memory_space<vmem>>, vector<8x32xf32>
    %91 = arith.truncf %90 : vector<8x32xf32> to vector<8x32xbf16>
    %c0_52 = arith.constant 0 : index
    %c0_53 = arith.constant 0 : index
    %c0_54 = arith.constant 0 : index
    %92 = vector.load %arg3[%c0_52, %c0_53, %c0_54] : memref<1x8x32xbf16, #tpu.memory_space<vmem>>, vector<1x8x32xbf16>
    %93 = vector.shape_cast %92 : vector<1x8x32xbf16> to vector<8x32xbf16>
    %94 = vector.shape_cast %91 : vector<8x32xbf16> to vector<1x8x32xbf16>
    tpu.vector_store %arg3[%c0_52, %c0_53, %c0_54], %94 {strides = array<i32>} : memref<1x8x32xbf16, #tpu.memory_space<vmem>>, vector<1x8x32xbf16>,
    return
  }
  func.func @transform_0(%arg0: i32) -> (i32, i32, i32) {
    %c0_i32 = arith.constant 0 : i32
    %c0_i32_0 = arith.constant 0 : i32
    %c0_i32_1 = arith.constant 0 : i32
    return %arg0, %c0_i32, %c0_i32_0 : i32, i32, i32
  }
  func.func @transform_1(%arg0: i32) -> (i32, i32, i32) {
    %c0_i32 = arith.constant 0 : i32
    %c0_i32_0 = arith.constant 0 : i32
    %c0_i32_1 = arith.constant 0 : i32
    return %arg0, %c0_i32, %c0_i32_0 : i32, i32, i32
  }
  func.func @transform_2(%arg0: i32) -> (i32, i32, i32) {
    %c0_i32 = arith.constant 0 : i32
    %c0_i32_0 = arith.constant 0 : i32
    %c0_i32_1 = arith.constant 0 : i32
    return %arg0, %c0_i32, %c0_i32_0 : i32, i32, i32
  }
}

module attributes {stable_mosaic.version = 11 : i64} {
  func.func @_linear_kernel(%arg0: i32, %arg1: i32, %arg2: i32, %arg3: memref<16x32xf32, #tpu.memory_space<vmem>>, %arg4: memref<32x64xbf16, #tpu.memory_space<vmem>>, %arg5: memref<1x64xf32, #tpu.memory_space<vmem>>, %arg6: memref<16x64xbf16, #tpu.memory_space<vmem>>, %arg7: memref<16x64xf32, #tpu.memory_space<vmem>>) attributes {dimension_semantics = [#tpu.dimension_semantics<parallel>, #tpu.dimension_semantics<parallel>, #tpu.dimension_semantics<arbitrary>], iteration_bounds = array<i64: 1, 1, 1>, scalar_prefetch = 0 : i64, scratch_operands = 1 : i64, tpu.core_type = #tpu.core_type<tc>, window_params = [{transform_indices = @transform_0, window_bounds = array<i64: 16, 32>}, {transform_indices = @transform_1, window_bounds = array<i64: 32, 64>}, {transform_indices = @transform_2, window_bounds = array<i64: 1, 64>}, {transform_indices = @transform_3, window_bounds = array<i64: 16, 64>}]} {
    %c0_i32 = arith.constant 0 : i32
    %0 = arith.cmpi eq, %arg2, %c0_i32 : i32
    %1 = arith.extui %0 : i1 to i32
    %c0_i32_0 = arith.constant 0 : i32
    %2 = arith.cmpi ne, %1, %c0_i32_0 : i32
    scf.if %2 {
      %cst_10 = arith.constant 0.000000e+00 : f32
      %13 = vector.broadcast %cst_10 : f32 to vector<16x64xf32>
      %c0_11 = arith.constant 0 : index
      %c0_12 = arith.constant 0 : index
      %14 = vector.load %arg7[%c0_11, %c0_12] : memref<16x64xf32, #tpu.memory_space<vmem>>, vector<16x64xf32>
      tpu.vector_store %arg7[%c0_11, %c0_12], %13 {strides = array<i32>} : memref<16x64xf32, #tpu.memory_space<vmem>>, vector<16x64xf32>,
    } else {
    }
    %c0 = arith.constant 0 : index
    %c0_1 = arith.constant 0 : index
    %3 = vector.load %arg7[%c0, %c0_1] : memref<16x64xf32, #tpu.memory_space<vmem>>, vector<16x64xf32>
    %c0_2 = arith.constant 0 : index
    %c0_3 = arith.constant 0 : index
    %4 = vector.load %arg3[%c0_2, %c0_3] : memref<16x32xf32, #tpu.memory_space<vmem>>, vector<16x32xf32>
    %5 = arith.truncf %4 : vector<16x32xf32> to vector<16x32xbf16>
    %c0_4 = arith.constant 0 : index
    %c0_5 = arith.constant 0 : index
    %6 = vector.load %arg4[%c0_4, %c0_5] : memref<32x64xbf16, #tpu.memory_space<vmem>>, vector<32x64xbf16>
    %cst = arith.constant dense<0.000000e+00> : vector<16x64xf32>
    %7 = tpu.matmul %5, %6, %cst {dimension_numbers = #tpu.dot_dimension_numbers<[1], [0], [0], [1], [0, 0, 1, 1], [], []>} : vector<16x32xbf16>, vector<32x64xbf16>, vector<16x64xf32> -> vector<16x64xf32>
    %8 = arith.addf %3, %7 : vector<16x64xf32>
    %c0_6 = arith.constant 0 : index
    %c0_7 = arith.constant 0 : index
    %9 = vector.load %arg7[%c0_6, %c0_7] : memref<16x64xf32, #tpu.memory_space<vmem>>, vector<16x64xf32>
    tpu.vector_store %arg7[%c0_6, %c0_7], %8 {strides = array<i32>} : memref<16x64xf32, #tpu.memory_space<vmem>>, vector<16x64xf32>,
    %c0_i32_8 = arith.constant 0 : i32
    %10 = arith.cmpi eq, %arg2, %c0_i32_8 : i32
    %11 = arith.extui %10 : i1 to i32
    %c0_i32_9 = arith.constant 0 : i32
    %12 = arith.cmpi ne, %11, %c0_i32_9 : i32
    scf.if %12 {
      %c0_10 = arith.constant 0 : index
      %c0_11 = arith.constant 0 : index
      %13 = vector.load %arg7[%c0_10, %c0_11] : memref<16x64xf32, #tpu.memory_space<vmem>>, vector<16x64xf32>
      %c0_12 = arith.constant 0 : index
      %c0_13 = arith.constant 0 : index
      %14 = vector.load %arg5[%c0_12, %c0_13] : memref<1x64xf32, #tpu.memory_space<vmem>>, vector<1x64xf32>
      %15 = vector.broadcast %14 : vector<1x64xf32> to vector<16x64xf32>
      %16 = arith.addf %13, %15 : vector<16x64xf32>
      %17 = arith.truncf %16 : vector<16x64xf32> to vector<16x64xbf16>
      %c0_14 = arith.constant 0 : index
      %c0_15 = arith.constant 0 : index
      %18 = vector.load %arg6[%c0_14, %c0_15] : memref<16x64xbf16, #tpu.memory_space<vmem>>, vector<16x64xbf16>
      tpu.vector_store %arg6[%c0_14, %c0_15], %17 {strides = array<i32>} : memref<16x64xbf16, #tpu.memory_space<vmem>>, vector<16x64xbf16>,
    } else {
    }
    return
  }
  func.func @transform_0(%arg0: i32, %arg1: i32, %arg2: i32) -> (i32, i32) {
    %c0_i32 = arith.constant 0 : i32
    return %arg0, %arg2 : i32, i32
  }
  func.func @transform_1(%arg0: i32, %arg1: i32, %arg2: i32) -> (i32, i32) {
    %c0_i32 = arith.constant 0 : i32
    return %arg2, %arg1 : i32, i32
  }
  func.func @transform_2(%arg0: i32, %arg1: i32, %arg2: i32) -> (i32, i32) {
    %c0_i32 = arith.constant 0 : i32
    %c0_i32_0 = arith.constant 0 : i32
    return %c0_i32, %arg1 : i32, i32
  }
  func.func @transform_3(%arg0: i32, %arg1: i32, %arg2: i32) -> (i32, i32) {
    %c0_i32 = arith.constant 0 : i32
    return %arg0, %arg1 : i32, i32
  }
}

module attributes {stable_mosaic.version = 11 : i64} {
  func.func @_linear_addln_kernel(%arg0: i32, %arg1: i32, %arg2: memref<16x32xbf16, #tpu.memory_space<vmem>>, %arg3: memref<32x32xbf16, #tpu.memory_space<vmem>>, %arg4: memref<1x32xf32, #tpu.memory_space<vmem>>, %arg5: memref<16x32xf32, #tpu.memory_space<vmem>>, %arg6: memref<1x32xf32, #tpu.memory_space<vmem>>, %arg7: memref<1x32xf32, #tpu.memory_space<vmem>>, %arg8: memref<16x1xf32, #tpu.memory_space<vmem>>, %arg9: memref<16x32xbf16, #tpu.memory_space<vmem>>, %arg10: memref<16x32xf32, #tpu.memory_space<vmem>>) attributes {dimension_semantics = [#tpu.dimension_semantics<parallel>, #tpu.dimension_semantics<arbitrary>], iteration_bounds = array<i64: 1, 1>, scalar_prefetch = 0 : i64, scratch_operands = 1 : i64, tpu.core_type = #tpu.core_type<tc>, window_params = [{transform_indices = @transform_0, window_bounds = array<i64: 16, 32>}, {transform_indices = @transform_1, window_bounds = array<i64: 32, 32>}, {pipeline_mode = #tpu.pipeline_mode<synchronous>, transform_indices = @transform_2, window_bounds = array<i64: 1, 32>}, {transform_indices = @transform_3, window_bounds = array<i64: 16, 32>}, {pipeline_mode = #tpu.pipeline_mode<synchronous>, transform_indices = @transform_4, window_bounds = array<i64: 1, 32>}, {pipeline_mode = #tpu.pipeline_mode<synchronous>, transform_indices = @transform_5, window_bounds = array<i64: 1, 32>}, {transform_indices = @transform_6, window_bounds = array<i64: 16, 1>}, {transform_indices = @transform_7, window_bounds = array<i64: 16, 32>}]} {
    %c0_i32 = arith.constant 0 : i32
    %0 = arith.cmpi eq, %arg1, %c0_i32 : i32
    %1 = arith.extui %0 : i1 to i32
    %c0_i32_0 = arith.constant 0 : i32
    %2 = arith.cmpi ne, %1, %c0_i32_0 : i32
    scf.if %2 {
      %cst_10 = arith.constant 0.000000e+00 : f32
      %12 = vector.broadcast %cst_10 : f32 to vector<16x32xf32>
      %c0_11 = arith.constant 0 : index
      %c0_12 = arith.constant 0 : index
      %13 = vector.load %arg10[%c0_11, %c0_12] : memref<16x32xf32, #tpu.memory_space<vmem>>, vector<16x32xf32>
      tpu.vector_store %arg10[%c0_11, %c0_12], %12 {strides = array<i32>} : memref<16x32xf32, #tpu.memory_space<vmem>>, vector<16x32xf32>,
    } else {
    }
    %c0 = arith.constant 0 : index
    %c0_1 = arith.constant 0 : index
    %3 = vector.load %arg10[%c0, %c0_1] : memref<16x32xf32, #tpu.memory_space<vmem>>, vector<16x32xf32>
    %c0_2 = arith.constant 0 : index
    %c0_3 = arith.constant 0 : index
    %4 = vector.load %arg2[%c0_2, %c0_3] : memref<16x32xbf16, #tpu.memory_space<vmem>>, vector<16x32xbf16>
    %c0_4 = arith.constant 0 : index
    %c0_5 = arith.constant 0 : index
    %5 = vector.load %arg3[%c0_4, %c0_5] : memref<32x32xbf16, #tpu.memory_space<vmem>>, vector<32x32xbf16>
    %cst = arith.constant dense<0.000000e+00> : vector<16x32xf32>
    %6 = tpu.matmul %4, %5, %cst {dimension_numbers = #tpu.dot_dimension_numbers<[1], [0], [0], [1], [0, 0, 1, 1], [], []>} : vector<16x32xbf16>, vector<32x32xbf16>, vector<16x32xf32> -> vector<16x32xf32>
    %7 = arith.addf %3, %6 : vector<16x32xf32>
    %c0_6 = arith.constant 0 : index
    %c0_7 = arith.constant 0 : index
    %8 = vector.load %arg10[%c0_6, %c0_7] : memref<16x32xf32, #tpu.memory_space<vmem>>, vector<16x32xf32>
    tpu.vector_store %arg10[%c0_6, %c0_7], %7 {strides = array<i32>} : memref<16x32xf32, #tpu.memory_space<vmem>>, vector<16x32xf32>,
    %c0_i32_8 = arith.constant 0 : i32
    %9 = arith.cmpi eq, %arg1, %c0_i32_8 : i32
    %10 = arith.extui %9 : i1 to i32
    %c0_i32_9 = arith.constant 0 : i32
    %11 = arith.cmpi ne, %10, %c0_i32_9 : i32
    scf.if %11 {
      %c0_10 = arith.constant 0 : index
      %c0_11 = arith.constant 0 : index
      %12 = vector.load %arg10[%c0_10, %c0_11] : memref<16x32xf32, #tpu.memory_space<vmem>>, vector<16x32xf32>
      %c0_12 = arith.constant 0 : index
      %c0_13 = arith.constant 0 : index
      %13 = vector.load %arg4[%c0_12, %c0_13] : memref<1x32xf32, #tpu.memory_space<vmem>>, vector<1x32xf32>
      %14 = vector.broadcast %13 : vector<1x32xf32> to vector<16x32xf32>
      %15 = arith.addf %12, %14 : vector<16x32xf32>
      %c0_14 = arith.constant 0 : index
      %c0_15 = arith.constant 0 : index
      %16 = vector.load %arg5[%c0_14, %c0_15] : memref<16x32xf32, #tpu.memory_space<vmem>>, vector<16x32xf32>
      %17 = arith.addf %15, %16 : vector<16x32xf32>
      %cst_16 = arith.constant dense<0.000000e+00> : vector<16xf32>
      %18 = vector.multi_reduction <add>, %17, %cst_16 [1] : vector<16x32xf32> to vector<16xf32>
      %19 = vector.shape_cast %18 : vector<16xf32> to vector<16x1xf32>
      %cst_17 = arith.constant 3.200000e+01 : f32
      %20 = vector.broadcast %cst_17 : f32 to vector<16x1xf32>
      %21 = arith.divf %19, %20 : vector<16x1xf32>
      %22 = vector.broadcast %21 : vector<16x1xf32> to vector<16x32xf32>
      %23 = arith.subf %17, %22 : vector<16x32xf32>
      %24 = arith.mulf %23, %23 : vector<16x32xf32>
      %cst_18 = arith.constant dense<0.000000e+00> : vector<16xf32>
      %25 = vector.multi_reduction <add>, %24, %cst_18 [1] : vector<16x32xf32> to vector<16xf32>
      %26 = vector.shape_cast %25 : vector<16xf32> to vector<16x1xf32>
      %cst_19 = arith.constant 3.200000e+01 : f32
      %27 = vector.broadcast %cst_19 : f32 to vector<16x1xf32>
      %28 = arith.divf %26, %27 : vector<16x1xf32>
      %cst_20 = arith.constant 9.99999974E-6 : f32
      %29 = vector.broadcast %cst_20 : f32 to vector<16x1xf32>
      %30 = arith.addf %28, %29 : vector<16x1xf32>
      %31 = math.rsqrt %30 : vector<16x1xf32>
      %32 = vector.broadcast %31 : vector<16x1xf32> to vector<16x32xf32>
      %33 = arith.mulf %23, %32 : vector<16x32xf32>
      %c0_21 = arith.constant 0 : index
      %c0_22 = arith.constant 0 : index
      %34 = vector.load %arg6[%c0_21, %c0_22] : memref<1x32xf32, #tpu.memory_space<vmem>>, vector<1x32xf32>
      %35 = vector.broadcast %34 : vector<1x32xf32> to vector<16x32xf32>
      %36 = arith.mulf %33, %35 : vector<16x32xf32>
      %c0_23 = arith.constant 0 : index
      %c0_24 = arith.constant 0 : index
      %37 = vector.load %arg7[%c0_23, %c0_24] : memref<1x32xf32, #tpu.memory_space<vmem>>, vector<1x32xf32>
      %38 = vector.broadcast %37 : vector<1x32xf32> to vector<16x32xf32>
      %39 = arith.addf %36, %38 : vector<16x32xf32>
      %c0_25 = arith.constant 0 : index
      %c0_26 = arith.constant 0 : index
      %40 = vector.load %arg8[%c0_25, %c0_26] : memref<16x1xf32, #tpu.memory_space<vmem>>, vector<16x1xf32>
      %41 = vector.broadcast %40 : vector<16x1xf32> to vector<16x32xf32>
      %42 = arith.mulf %39, %41 : vector<16x32xf32>
      %43 = arith.truncf %42 : vector<16x32xf32> to vector<16x32xbf16>
      %c0_27 = arith.constant 0 : index
      %c0_28 = arith.constant 0 : index
      %44 = vector.load %arg9[%c0_27, %c0_28] : memref<16x32xbf16, #tpu.memory_space<vmem>>, vector<16x32xbf16>
      tpu.vector_store %arg9[%c0_27, %c0_28], %43 {strides = array<i32>} : memref<16x32xbf16, #tpu.memory_space<vmem>>, vector<16x32xbf16>,
    } else {
    }
    return
  }
  func.func @transform_0(%arg0: i32, %arg1: i32) -> (i32, i32) {
    %c0_i32 = arith.constant 0 : i32
    return %arg0, %arg1 : i32, i32
  }
  func.func @transform_1(%arg0: i32, %arg1: i32) -> (i32, i32) {
    %c0_i32 = arith.constant 0 : i32
    %c0_i32_0 = arith.constant 0 : i32
    return %arg1, %c0_i32 : i32, i32
  }
  func.func @transform_2(%arg0: i32, %arg1: i32) -> (i32, i32) {
    %c0_i32 = arith.constant 0 : i32
    %c0_i32_0 = arith.constant 0 : i32
    %c0_i32_1 = arith.constant 0 : i32
    return %c0_i32, %c0_i32_0 : i32, i32
  }
  func.func @transform_3(%arg0: i32, %arg1: i32) -> (i32, i32) {
    %c0_i32 = arith.constant 0 : i32
    %c0_i32_0 = arith.constant 0 : i32
    return %arg0, %c0_i32 : i32, i32
  }
  func.func @transform_4(%arg0: i32, %arg1: i32) -> (i32, i32) {
    %c0_i32 = arith.constant 0 : i32
    %c0_i32_0 = arith.constant 0 : i32
    %c0_i32_1 = arith.constant 0 : i32
    return %c0_i32, %c0_i32_0 : i32, i32
  }
  func.func @transform_5(%arg0: i32, %arg1: i32) -> (i32, i32) {
    %c0_i32 = arith.constant 0 : i32
    %c0_i32_0 = arith.constant 0 : i32
    %c0_i32_1 = arith.constant 0 : i32
    return %c0_i32, %c0_i32_0 : i32, i32
  }
  func.func @transform_6(%arg0: i32, %arg1: i32) -> (i32, i32) {
    %c0_i32 = arith.constant 0 : i32
    %c0_i32_0 = arith.constant 0 : i32
    return %arg0, %c0_i32 : i32, i32
  }
  func.func @transform_7(%arg0: i32, %arg1: i32) -> (i32, i32) {
    %c0_i32 = arith.constant 0 : i32
    %c0_i32_0 = arith.constant 0 : i32
    return %arg0, %c0_i32 : i32, i32
  }
}

module attributes {stable_mosaic.version = 11 : i64} {
  func.func @_linear_kernel(%arg0: i32, %arg1: i32, %arg2: i32, %arg3: memref<16x32xbf16, #tpu.memory_space<vmem>>, %arg4: memref<32x32xbf16, #tpu.memory_space<vmem>>, %arg5: memref<1x32xf32, #tpu.memory_space<vmem>>, %arg6: memref<16x32xbf16, #tpu.memory_space<vmem>>, %arg7: memref<16x32xf32, #tpu.memory_space<vmem>>) attributes {dimension_semantics = [#tpu.dimension_semantics<parallel>, #tpu.dimension_semantics<parallel>, #tpu.dimension_semantics<arbitrary>], iteration_bounds = array<i64: 1, 1, 1>, scalar_prefetch = 0 : i64, scratch_operands = 1 : i64, tpu.core_type = #tpu.core_type<tc>, window_params = [{transform_indices = @transform_0, window_bounds = array<i64: 16, 32>}, {transform_indices = @transform_1, window_bounds = array<i64: 32, 32>}, {transform_indices = @transform_2, window_bounds = array<i64: 1, 32>}, {transform_indices = @transform_3, window_bounds = array<i64: 16, 32>}]} {
    %c0_i32 = arith.constant 0 : i32
    %0 = arith.cmpi eq, %arg2, %c0_i32 : i32
    %1 = arith.extui %0 : i1 to i32
    %c0_i32_0 = arith.constant 0 : i32
    %2 = arith.cmpi ne, %1, %c0_i32_0 : i32
    scf.if %2 {
      %cst_10 = arith.constant 0.000000e+00 : f32
      %12 = vector.broadcast %cst_10 : f32 to vector<16x32xf32>
      %c0_11 = arith.constant 0 : index
      %c0_12 = arith.constant 0 : index
      %13 = vector.load %arg7[%c0_11, %c0_12] : memref<16x32xf32, #tpu.memory_space<vmem>>, vector<16x32xf32>
      tpu.vector_store %arg7[%c0_11, %c0_12], %12 {strides = array<i32>} : memref<16x32xf32, #tpu.memory_space<vmem>>, vector<16x32xf32>,
    } else {
    }
    %c0 = arith.constant 0 : index
    %c0_1 = arith.constant 0 : index
    %3 = vector.load %arg7[%c0, %c0_1] : memref<16x32xf32, #tpu.memory_space<vmem>>, vector<16x32xf32>
    %c0_2 = arith.constant 0 : index
    %c0_3 = arith.constant 0 : index
    %4 = vector.load %arg3[%c0_2, %c0_3] : memref<16x32xbf16, #tpu.memory_space<vmem>>, vector<16x32xbf16>
    %c0_4 = arith.constant 0 : index
    %c0_5 = arith.constant 0 : index
    %5 = vector.load %arg4[%c0_4, %c0_5] : memref<32x32xbf16, #tpu.memory_space<vmem>>, vector<32x32xbf16>
    %cst = arith.constant dense<0.000000e+00> : vector<16x32xf32>
    %6 = tpu.matmul %4, %5, %cst {dimension_numbers = #tpu.dot_dimension_numbers<[1], [0], [0], [1], [0, 0, 1, 1], [], []>} : vector<16x32xbf16>, vector<32x32xbf16>, vector<16x32xf32> -> vector<16x32xf32>
    %7 = arith.addf %3, %6 : vector<16x32xf32>
    %c0_6 = arith.constant 0 : index
    %c0_7 = arith.constant 0 : index
    %8 = vector.load %arg7[%c0_6, %c0_7] : memref<16x32xf32, #tpu.memory_space<vmem>>, vector<16x32xf32>
    tpu.vector_store %arg7[%c0_6, %c0_7], %7 {strides = array<i32>} : memref<16x32xf32, #tpu.memory_space<vmem>>, vector<16x32xf32>,
    %c0_i32_8 = arith.constant 0 : i32
    %9 = arith.cmpi eq, %arg2, %c0_i32_8 : i32
    %10 = arith.extui %9 : i1 to i32
    %c0_i32_9 = arith.constant 0 : i32
    %11 = arith.cmpi ne, %10, %c0_i32_9 : i32
    scf.if %11 {
      %c0_10 = arith.constant 0 : index
      %c0_11 = arith.constant 0 : index
      %12 = vector.load %arg7[%c0_10, %c0_11] : memref<16x32xf32, #tpu.memory_space<vmem>>, vector<16x32xf32>
      %c0_12 = arith.constant 0 : index
      %c0_13 = arith.constant 0 : index
      %13 = vector.load %arg5[%c0_12, %c0_13] : memref<1x32xf32, #tpu.memory_space<vmem>>, vector<1x32xf32>
      %14 = vector.broadcast %13 : vector<1x32xf32> to vector<16x32xf32>
      %15 = arith.addf %12, %14 : vector<16x32xf32>
      %16 = arith.truncf %15 : vector<16x32xf32> to vector<16x32xbf16>
      %c0_14 = arith.constant 0 : index
      %c0_15 = arith.constant 0 : index
      %17 = vector.load %arg6[%c0_14, %c0_15] : memref<16x32xbf16, #tpu.memory_space<vmem>>, vector<16x32xbf16>
      tpu.vector_store %arg6[%c0_14, %c0_15], %16 {strides = array<i32>} : memref<16x32xbf16, #tpu.memory_space<vmem>>, vector<16x32xbf16>,
    } else {
    }
    return
  }
  func.func @transform_0(%arg0: i32, %arg1: i32, %arg2: i32) -> (i32, i32) {
    %c0_i32 = arith.constant 0 : i32
    return %arg0, %arg2 : i32, i32
  }
  func.func @transform_1(%arg0: i32, %arg1: i32, %arg2: i32) -> (i32, i32) {
    %c0_i32 = arith.constant 0 : i32
    return %arg2, %arg1 : i32, i32
  }
  func.func @transform_2(%arg0: i32, %arg1: i32, %arg2: i32) -> (i32, i32) {
    %c0_i32 = arith.constant 0 : i32
    %c0_i32_0 = arith.constant 0 : i32
    return %c0_i32, %arg1 : i32, i32
  }
  func.func @transform_3(%arg0: i32, %arg1: i32, %arg2: i32) -> (i32, i32) {
    %c0_i32 = arith.constant 0 : i32
    return %arg0, %arg1 : i32, i32
  }
}

module attributes {stable_mosaic.version = 11 : i64} {
  func.func @_linear_addln_kernel(%arg0: i32, %arg1: i32, %arg2: memref<16x32xbf16, #tpu.memory_space<vmem>>, %arg3: memref<32x32xbf16, #tpu.memory_space<vmem>>, %arg4: memref<1x32xf32, #tpu.memory_space<vmem>>, %arg5: memref<16x32xbf16, #tpu.memory_space<vmem>>, %arg6: memref<1x32xf32, #tpu.memory_space<vmem>>, %arg7: memref<1x32xf32, #tpu.memory_space<vmem>>, %arg8: memref<16x1xf32, #tpu.memory_space<vmem>>, %arg9: memref<16x32xbf16, #tpu.memory_space<vmem>>, %arg10: memref<16x32xf32, #tpu.memory_space<vmem>>) attributes {dimension_semantics = [#tpu.dimension_semantics<parallel>, #tpu.dimension_semantics<arbitrary>], iteration_bounds = array<i64: 1, 1>, scalar_prefetch = 0 : i64, scratch_operands = 1 : i64, tpu.core_type = #tpu.core_type<tc>, window_params = [{transform_indices = @transform_0, window_bounds = array<i64: 16, 32>}, {transform_indices = @transform_1, window_bounds = array<i64: 32, 32>}, {pipeline_mode = #tpu.pipeline_mode<synchronous>, transform_indices = @transform_2, window_bounds = array<i64: 1, 32>}, {transform_indices = @transform_3, window_bounds = array<i64: 16, 32>}, {pipeline_mode = #tpu.pipeline_mode<synchronous>, transform_indices = @transform_4, window_bounds = array<i64: 1, 32>}, {pipeline_mode = #tpu.pipeline_mode<synchronous>, transform_indices = @transform_5, window_bounds = array<i64: 1, 32>}, {transform_indices = @transform_6, window_bounds = array<i64: 16, 1>}, {transform_indices = @transform_7, window_bounds = array<i64: 16, 32>}]} {
    %c0_i32 = arith.constant 0 : i32
    %0 = arith.cmpi eq, %arg1, %c0_i32 : i32
    %1 = arith.extui %0 : i1 to i32
    %c0_i32_0 = arith.constant 0 : i32
    %2 = arith.cmpi ne, %1, %c0_i32_0 : i32
    scf.if %2 {
      %cst_10 = arith.constant 0.000000e+00 : f32
      %12 = vector.broadcast %cst_10 : f32 to vector<16x32xf32>
      %c0_11 = arith.constant 0 : index
      %c0_12 = arith.constant 0 : index
      %13 = vector.load %arg10[%c0_11, %c0_12] : memref<16x32xf32, #tpu.memory_space<vmem>>, vector<16x32xf32>
      tpu.vector_store %arg10[%c0_11, %c0_12], %12 {strides = array<i32>} : memref<16x32xf32, #tpu.memory_space<vmem>>, vector<16x32xf32>,
    } else {
    }
    %c0 = arith.constant 0 : index
    %c0_1 = arith.constant 0 : index
    %3 = vector.load %arg10[%c0, %c0_1] : memref<16x32xf32, #tpu.memory_space<vmem>>, vector<16x32xf32>
    %c0_2 = arith.constant 0 : index
    %c0_3 = arith.constant 0 : index
    %4 = vector.load %arg2[%c0_2, %c0_3] : memref<16x32xbf16, #tpu.memory_space<vmem>>, vector<16x32xbf16>
    %c0_4 = arith.constant 0 : index
    %c0_5 = arith.constant 0 : index
    %5 = vector.load %arg3[%c0_4, %c0_5] : memref<32x32xbf16, #tpu.memory_space<vmem>>, vector<32x32xbf16>
    %cst = arith.constant dense<0.000000e+00> : vector<16x32xf32>
    %6 = tpu.matmul %4, %5, %cst {dimension_numbers = #tpu.dot_dimension_numbers<[1], [0], [0], [1], [0, 0, 1, 1], [], []>} : vector<16x32xbf16>, vector<32x32xbf16>, vector<16x32xf32> -> vector<16x32xf32>
    %7 = arith.addf %3, %6 : vector<16x32xf32>
    %c0_6 = arith.constant 0 : index
    %c0_7 = arith.constant 0 : index
    %8 = vector.load %arg10[%c0_6, %c0_7] : memref<16x32xf32, #tpu.memory_space<vmem>>, vector<16x32xf32>
    tpu.vector_store %arg10[%c0_6, %c0_7], %7 {strides = array<i32>} : memref<16x32xf32, #tpu.memory_space<vmem>>, vector<16x32xf32>,
    %c0_i32_8 = arith.constant 0 : i32
    %9 = arith.cmpi eq, %arg1, %c0_i32_8 : i32
    %10 = arith.extui %9 : i1 to i32
    %c0_i32_9 = arith.constant 0 : i32
    %11 = arith.cmpi ne, %10, %c0_i32_9 : i32
    scf.if %11 {
      %c0_10 = arith.constant 0 : index
      %c0_11 = arith.constant 0 : index
      %12 = vector.load %arg10[%c0_10, %c0_11] : memref<16x32xf32, #tpu.memory_space<vmem>>, vector<16x32xf32>
      %c0_12 = arith.constant 0 : index
      %c0_13 = arith.constant 0 : index
      %13 = vector.load %arg4[%c0_12, %c0_13] : memref<1x32xf32, #tpu.memory_space<vmem>>, vector<1x32xf32>
      %14 = vector.broadcast %13 : vector<1x32xf32> to vector<16x32xf32>
      %15 = arith.addf %12, %14 : vector<16x32xf32>
      %c0_14 = arith.constant 0 : index
      %c0_15 = arith.constant 0 : index
      %16 = vector.load %arg5[%c0_14, %c0_15] : memref<16x32xbf16, #tpu.memory_space<vmem>>, vector<16x32xbf16>
      %17 = arith.extf %16 : vector<16x32xbf16> to vector<16x32xf32>
      %18 = arith.addf %15, %17 : vector<16x32xf32>
      %cst_16 = arith.constant dense<0.000000e+00> : vector<16xf32>
      %19 = vector.multi_reduction <add>, %18, %cst_16 [1] : vector<16x32xf32> to vector<16xf32>
      %20 = vector.shape_cast %19 : vector<16xf32> to vector<16x1xf32>
      %cst_17 = arith.constant 3.200000e+01 : f32
      %21 = vector.broadcast %cst_17 : f32 to vector<16x1xf32>
      %22 = arith.divf %20, %21 : vector<16x1xf32>
      %23 = vector.broadcast %22 : vector<16x1xf32> to vector<16x32xf32>
      %24 = arith.subf %18, %23 : vector<16x32xf32>
      %25 = arith.mulf %24, %24 : vector<16x32xf32>
      %cst_18 = arith.constant dense<0.000000e+00> : vector<16xf32>
      %26 = vector.multi_reduction <add>, %25, %cst_18 [1] : vector<16x32xf32> to vector<16xf32>
      %27 = vector.shape_cast %26 : vector<16xf32> to vector<16x1xf32>
      %cst_19 = arith.constant 3.200000e+01 : f32
      %28 = vector.broadcast %cst_19 : f32 to vector<16x1xf32>
      %29 = arith.divf %27, %28 : vector<16x1xf32>
      %cst_20 = arith.constant 9.99999974E-6 : f32
      %30 = vector.broadcast %cst_20 : f32 to vector<16x1xf32>
      %31 = arith.addf %29, %30 : vector<16x1xf32>
      %32 = math.rsqrt %31 : vector<16x1xf32>
      %33 = vector.broadcast %32 : vector<16x1xf32> to vector<16x32xf32>
      %34 = arith.mulf %24, %33 : vector<16x32xf32>
      %c0_21 = arith.constant 0 : index
      %c0_22 = arith.constant 0 : index
      %35 = vector.load %arg6[%c0_21, %c0_22] : memref<1x32xf32, #tpu.memory_space<vmem>>, vector<1x32xf32>
      %36 = vector.broadcast %35 : vector<1x32xf32> to vector<16x32xf32>
      %37 = arith.mulf %34, %36 : vector<16x32xf32>
      %c0_23 = arith.constant 0 : index
      %c0_24 = arith.constant 0 : index
      %38 = vector.load %arg7[%c0_23, %c0_24] : memref<1x32xf32, #tpu.memory_space<vmem>>, vector<1x32xf32>
      %39 = vector.broadcast %38 : vector<1x32xf32> to vector<16x32xf32>
      %40 = arith.addf %37, %39 : vector<16x32xf32>
      %c0_25 = arith.constant 0 : index
      %c0_26 = arith.constant 0 : index
      %41 = vector.load %arg8[%c0_25, %c0_26] : memref<16x1xf32, #tpu.memory_space<vmem>>, vector<16x1xf32>
      %42 = vector.broadcast %41 : vector<16x1xf32> to vector<16x32xf32>
      %43 = arith.mulf %40, %42 : vector<16x32xf32>
      %44 = arith.truncf %43 : vector<16x32xf32> to vector<16x32xbf16>
      %c0_27 = arith.constant 0 : index
      %c0_28 = arith.constant 0 : index
      %45 = vector.load %arg9[%c0_27, %c0_28] : memref<16x32xbf16, #tpu.memory_space<vmem>>, vector<16x32xbf16>
      tpu.vector_store %arg9[%c0_27, %c0_28], %44 {strides = array<i32>} : memref<16x32xbf16, #tpu.memory_space<vmem>>, vector<16x32xbf16>,
    } else {
    }
    return
  }
  func.func @transform_0(%arg0: i32, %arg1: i32) -> (i32, i32) {
    %c0_i32 = arith.constant 0 : i32
    return %arg0, %arg1 : i32, i32
  }
  func.func @transform_1(%arg0: i32, %arg1: i32) -> (i32, i32) {
    %c0_i32 = arith.constant 0 : i32
    %c0_i32_0 = arith.constant 0 : i32
    return %arg1, %c0_i32 : i32, i32
  }
  func.func @transform_2(%arg0: i32, %arg1: i32) -> (i32, i32) {
    %c0_i32 = arith.constant 0 : i32
    %c0_i32_0 = arith.constant 0 : i32
    %c0_i32_1 = arith.constant 0 : i32
    return %c0_i32, %c0_i32_0 : i32, i32
  }
  func.func @transform_3(%arg0: i32, %arg1: i32) -> (i32, i32) {
    %c0_i32 = arith.constant 0 : i32
    %c0_i32_0 = arith.constant 0 : i32
    return %arg0, %c0_i32 : i32, i32
  }
  func.func @transform_4(%arg0: i32, %arg1: i32) -> (i32, i32) {
    %c0_i32 = arith.constant 0 : i32
    %c0_i32_0 = arith.constant 0 : i32
    %c0_i32_1 = arith.constant 0 : i32
    return %c0_i32, %c0_i32_0 : i32, i32
  }
  func.func @transform_5(%arg0: i32, %arg1: i32) -> (i32, i32) {
    %c0_i32 = arith.constant 0 : i32
    %c0_i32_0 = arith.constant 0 : i32
    %c0_i32_1 = arith.constant 0 : i32
    return %c0_i32, %c0_i32_0 : i32, i32
  }
  func.func @transform_6(%arg0: i32, %arg1: i32) -> (i32, i32) {
    %c0_i32 = arith.constant 0 : i32
    %c0_i32_0 = arith.constant 0 : i32
    return %arg0, %c0_i32 : i32, i32
  }
  func.func @transform_7(%arg0: i32, %arg1: i32) -> (i32, i32) {
    %c0_i32 = arith.constant 0 : i32
    %c0_i32_0 = arith.constant 0 : i32
    return %arg0, %c0_i32 : i32, i32
  }
}

module attributes {stable_mosaic.version = 11 : i64} {
  func.func @_cross_attn_kernel(%arg0: i32, %arg1: memref<1x8x32xbf16, #tpu.memory_space<vmem>>, %arg2: memref<1x8x64xbf16, #tpu.memory_space<vmem>>, %arg3: memref<4x32xbf16, #tpu.memory_space<vmem>>, %arg4: memref<4x32xbf16, #tpu.memory_space<vmem>>, %arg5: memref<1x1x8xf32, #tpu.memory_space<vmem>>, %arg6: memref<1x8x32xbf16, #tpu.memory_space<vmem>>, %arg7: memref<8x32xf32, #tpu.memory_space<vmem>>) attributes {dimension_semantics = [#tpu.dimension_semantics<parallel>], iteration_bounds = array<i64: 2>, scalar_prefetch = 0 : i64, scratch_operands = 1 : i64, tpu.core_type = #tpu.core_type<tc>, window_params = [{transform_indices = @transform_0, window_bounds = array<i64: 1, 8, 32>}, {transform_indices = @transform_1, window_bounds = array<i64: 1, 8, 64>}, {pipeline_mode = #tpu.pipeline_mode<synchronous>, transform_indices = @transform_2, window_bounds = array<i64: 4, 32>}, {pipeline_mode = #tpu.pipeline_mode<synchronous>, transform_indices = @transform_3, window_bounds = array<i64: 4, 32>}, {transform_indices = @transform_4, window_bounds = array<i64: 1, 1, 8>}, {transform_indices = @transform_5, window_bounds = array<i64: 1, 8, 32>}]} {
    %c0 = arith.constant 0 : index
    %c0_0 = arith.constant 0 : index
    %c0_1 = arith.constant 0 : index
    %0 = vector.load %arg5[%c0, %c0_0, %c0_1] : memref<1x1x8xf32, #tpu.memory_space<vmem>>, vector<1x1x8xf32>
    %1 = vector.shape_cast %0 : vector<1x1x8xf32> to vector<1x8xf32>
    %c0_2 = arith.constant 0 : index
    %c0_3 = arith.constant 0 : index
    %c0_4 = arith.constant 0 : index
    %2 = vector.load %arg1[%c0_2, %c0_3, %c0_4] : memref<1x8x32xbf16, #tpu.memory_space<vmem>>, vector<1x8x8xbf16>
    %3 = vector.shape_cast %2 : vector<1x8x8xbf16> to vector<8x8xbf16>
    %c0_5 = arith.constant 0 : index
    %c0_6 = arith.constant 0 : index
    %c0_7 = arith.constant 0 : index
    %4 = vector.load %arg2[%c0_5, %c0_6, %c0_7] : memref<1x8x64xbf16, #tpu.memory_space<vmem>>, vector<1x8x8xbf16>
    %5 = vector.shape_cast %4 : vector<1x8x8xbf16> to vector<8x8xbf16>
    %c0_8 = arith.constant 0 : index
    %c0_9 = arith.constant 0 : index
    %c32 = arith.constant 32 : index
    %6 = vector.load %arg2[%c0_8, %c0_9, %c32] : memref<1x8x64xbf16, #tpu.memory_space<vmem>>, vector<1x8x8xbf16>
    %7 = vector.shape_cast %6 : vector<1x8x8xbf16> to vector<8x8xbf16>
    %cst = arith.constant dense<0.000000e+00> : vector<8x8xf32>
    %8 = tpu.matmul %3, %5, %cst {dimension_numbers = #tpu.dot_dimension_numbers<[1], [1], [0], [0], [0, 0, 1, 0], [], []>} : vector<8x8xbf16>, vector<8x8xbf16>, vector<8x8xf32> -> vector<8x8xf32>
    %9 = vector.broadcast %1 : vector<1x8xf32> to vector<8x8xf32>
    %10 = arith.addf %8, %9 : vector<8x8xf32>
    %c0_10 = arith.constant 0 : index
    %c0_11 = arith.constant 0 : index
    %11 = vector.load %arg3[%c0_10, %c0_11] : memref<4x32xbf16, #tpu.memory_space<vmem>>, vector<4x8xbf16>
    %c0_12 = arith.constant 0 : index
    %c0_13 = arith.constant 0 : index
    %12 = vector.load %arg4[%c0_12, %c0_13] : memref<4x32xbf16, #tpu.memory_space<vmem>>, vector<4x8xbf16>
    %cst_14 = arith.constant dense<0.000000e+00> : vector<8x4xf32>
    %13 = tpu.matmul %3, %11, %cst_14 {dimension_numbers = #tpu.dot_dimension_numbers<[1], [1], [0], [0], [0, 0, 1, 0], [], []>} : vector<8x8xbf16>, vector<4x8xbf16>, vector<8x4xf32> -> vector<8x4xf32>
    %cst_15 = arith.constant dense<0xFF800000> : vector<8xf32>
    %14 = vector.multi_reduction <maximumf>, %10, %cst_15 [1] : vector<8x8xf32> to vector<8xf32>
    %15 = vector.shape_cast %14 : vector<8xf32> to vector<8x1xf32>
    %cst_16 = arith.constant dense<0xFF800000> : vector<8xf32>
    %16 = vector.multi_reduction <maximumf>, %13, %cst_16 [1] : vector<8x4xf32> to vector<8xf32>
    %17 = vector.shape_cast %16 : vector<8xf32> to vector<8x1xf32>
    %18 = arith.maximumf %15, %17 : vector<8x1xf32>
    %19 = vector.broadcast %18 : vector<8x1xf32> to vector<8x8xf32>
    %20 = arith.subf %10, %19 : vector<8x8xf32>
    %21 = math.exp %20 : vector<8x8xf32>
    %22 = vector.broadcast %18 : vector<8x1xf32> to vector<8x4xf32>
    %23 = arith.subf %13, %22 : vector<8x4xf32>
    %24 = math.exp %23 : vector<8x4xf32>
    %cst_17 = arith.constant dense<0.000000e+00> : vector<8xf32>
    %25 = vector.multi_reduction <add>, %21, %cst_17 [1] : vector<8x8xf32> to vector<8xf32>
    %26 = vector.shape_cast %25 : vector<8xf32> to vector<8x1xf32>
    %cst_18 = arith.constant dense<0.000000e+00> : vector<8xf32>
    %27 = vector.multi_reduction <add>, %24, %cst_18 [1] : vector<8x4xf32> to vector<8xf32>
    %28 = vector.shape_cast %27 : vector<8xf32> to vector<8x1xf32>
    %29 = arith.addf %26, %28 : vector<8x1xf32>
    %30 = arith.truncf %21 : vector<8x8xf32> to vector<8x8xbf16>
    %cst_19 = arith.constant dense<0.000000e+00> : vector<8x8xf32>
    %31 = tpu.matmul %30, %7, %cst_19 {dimension_numbers = #tpu.dot_dimension_numbers<[1], [0], [0], [1], [0, 0, 1, 1], [], []>} : vector<8x8xbf16>, vector<8x8xbf16>, vector<8x8xf32> -> vector<8x8xf32>
    %32 = arith.truncf %24 : vector<8x4xf32> to vector<8x4xbf16>
    %cst_20 = arith.constant dense<0.000000e+00> : vector<8x8xf32>
    %33 = tpu.matmul %32, %12, %cst_20 {dimension_numbers = #tpu.dot_dimension_numbers<[1], [0], [0], [1], [0, 0, 1, 1], [], []>} : vector<8x4xbf16>, vector<4x8xbf16>, vector<8x8xf32> -> vector<8x8xf32>
    %34 = arith.addf %31, %33 : vector<8x8xf32>
    %35 = tpu.reciprocal %29 {approx = true} : vector<8x1xf32> -> vector<8x1xf32>
    %36 = vector.broadcast %35 : vector<8x1xf32> to vector<8x8xf32>
    %37 = arith.mulf %34, %36 : vector<8x8xf32>
    %c0_21 = arith.constant 0 : index
    %c0_22 = arith.constant 0 : index
    %38 = vector.load %arg7[%c0_21, %c0_22] : memref<8x32xf32, #tpu.memory_space<vmem>>, vector<8x8xf32>
    tpu.vector_store %arg7[%c0_21, %c0_22], %37 {strides = array<i32>} : memref<8x32xf32, #tpu.memory_space<vmem>>, vector<8x8xf32>,
    %c0_23 = arith.constant 0 : index
    %c0_24 = arith.constant 0 : index
    %c8 = arith.constant 8 : index
    %39 = vector.load %arg1[%c0_23, %c0_24, %c8] : memref<1x8x32xbf16, #tpu.memory_space<vmem>>, vector<1x8x8xbf16>
    %40 = vector.shape_cast %39 : vector<1x8x8xbf16> to vector<8x8xbf16>
    %c0_25 = arith.constant 0 : index
    %c0_26 = arith.constant 0 : index
    %c8_27 = arith.constant 8 : index
    %41 = vector.load %arg2[%c0_25, %c0_26, %c8_27] : memref<1x8x64xbf16, #tpu.memory_space<vmem>>, vector<1x8x8xbf16>
    %42 = vector.shape_cast %41 : vector<1x8x8xbf16> to vector<8x8xbf16>
    %c0_28 = arith.constant 0 : index
    %c0_29 = arith.constant 0 : index
    %c40 = arith.constant 40 : index
    %43 = vector.load %arg2[%c0_28, %c0_29, %c40] : memref<1x8x64xbf16, #tpu.memory_space<vmem>>, vector<1x8x8xbf16>
    %44 = vector.shape_cast %43 : vector<1x8x8xbf16> to vector<8x8xbf16>
    %cst_30 = arith.constant dense<0.000000e+00> : vector<8x8xf32>
    %45 = tpu.matmul %40, %42, %cst_30 {dimension_numbers = #tpu.dot_dimension_numbers<[1], [1], [0], [0], [0, 0, 1, 0], [], []>} : vector<8x8xbf16>, vector<8x8xbf16>, vector<8x8xf32> -> vector<8x8xf32>
    %46 = vector.broadcast %1 : vector<1x8xf32> to vector<8x8xf32>
    %47 = arith.addf %45, %46 : vector<8x8xf32>
    %c0_31 = arith.constant 0 : index
    %c8_32 = arith.constant 8 : index
    %48 = vector.load %arg3[%c0_31, %c8_32] : memref<4x32xbf16, #tpu.memory_space<vmem>>, vector<4x8xbf16>
    %c0_33 = arith.constant 0 : index
    %c8_34 = arith.constant 8 : index
    %49 = vector.load %arg4[%c0_33, %c8_34] : memref<4x32xbf16, #tpu.memory_space<vmem>>, vector<4x8xbf16>
    %cst_35 = arith.constant dense<0.000000e+00> : vector<8x4xf32>
    %50 = tpu.matmul %40, %48, %cst_35 {dimension_numbers = #tpu.dot_dimension_numbers<[1], [1], [0], [0], [0, 0, 1, 0], [], []>} : vector<8x8xbf16>, vector<4x8xbf16>, vector<8x4xf32> -> vector<8x4xf32>
    %cst_36 = arith.constant dense<0xFF800000> : vector<8xf32>
    %51 = vector.multi_reduction <maximumf>, %47, %cst_36 [1] : vector<8x8xf32> to vector<8xf32>
    %52 = vector.shape_cast %51 : vector<8xf32> to vector<8x1xf32>
    %cst_37 = arith.constant dense<0xFF800000> : vector<8xf32>
    %53 = vector.multi_reduction <maximumf>, %50, %cst_37 [1] : vector<8x4xf32> to vector<8xf32>
    %54 = vector.shape_cast %53 : vector<8xf32> to vector<8x1xf32>
    %55 = arith.maximumf %52, %54 : vector<8x1xf32>
    %56 = vector.broadcast %55 : vector<8x1xf32> to vector<8x8xf32>
    %57 = arith.subf %47, %56 : vector<8x8xf32>
    %58 = math.exp %57 : vector<8x8xf32>
    %59 = vector.broadcast %55 : vector<8x1xf32> to vector<8x4xf32>
    %60 = arith.subf %50, %59 : vector<8x4xf32>
    %61 = math.exp %60 : vector<8x4xf32>
    %cst_38 = arith.constant dense<0.000000e+00> : vector<8xf32>
    %62 = vector.multi_reduction <add>, %58, %cst_38 [1] : vector<8x8xf32> to vector<8xf32>
    %63 = vector.shape_cast %62 : vector<8xf32> to vector<8x1xf32>
    %cst_39 = arith.constant dense<0.000000e+00> : vector<8xf32>
    %64 = vector.multi_reduction <add>, %61, %cst_39 [1] : vector<8x4xf32> to vector<8xf32>
    %65 = vector.shape_cast %64 : vector<8xf32> to vector<8x1xf32>
    %66 = arith.addf %63, %65 : vector<8x1xf32>
    %67 = arith.truncf %58 : vector<8x8xf32> to vector<8x8xbf16>
    %cst_40 = arith.constant dense<0.000000e+00> : vector<8x8xf32>
    %68 = tpu.matmul %67, %44, %cst_40 {dimension_numbers = #tpu.dot_dimension_numbers<[1], [0], [0], [1], [0, 0, 1, 1], [], []>} : vector<8x8xbf16>, vector<8x8xbf16>, vector<8x8xf32> -> vector<8x8xf32>
    %69 = arith.truncf %61 : vector<8x4xf32> to vector<8x4xbf16>
    %cst_41 = arith.constant dense<0.000000e+00> : vector<8x8xf32>
    %70 = tpu.matmul %69, %49, %cst_41 {dimension_numbers = #tpu.dot_dimension_numbers<[1], [0], [0], [1], [0, 0, 1, 1], [], []>} : vector<8x4xbf16>, vector<4x8xbf16>, vector<8x8xf32> -> vector<8x8xf32>
    %71 = arith.addf %68, %70 : vector<8x8xf32>
    %72 = tpu.reciprocal %66 {approx = true} : vector<8x1xf32> -> vector<8x1xf32>
    %73 = vector.broadcast %72 : vector<8x1xf32> to vector<8x8xf32>
    %74 = arith.mulf %71, %73 : vector<8x8xf32>
    %c0_42 = arith.constant 0 : index
    %c8_43 = arith.constant 8 : index
    %75 = vector.load %arg7[%c0_42, %c8_43] : memref<8x32xf32, #tpu.memory_space<vmem>>, vector<8x8xf32>
    tpu.vector_store %arg7[%c0_42, %c8_43], %74 {strides = array<i32>} : memref<8x32xf32, #tpu.memory_space<vmem>>, vector<8x8xf32>,
    %c0_44 = arith.constant 0 : index
    %c0_45 = arith.constant 0 : index
    %c16 = arith.constant 16 : index
    %76 = vector.load %arg1[%c0_44, %c0_45, %c16] : memref<1x8x32xbf16, #tpu.memory_space<vmem>>, vector<1x8x8xbf16>
    %77 = vector.shape_cast %76 : vector<1x8x8xbf16> to vector<8x8xbf16>
    %c0_46 = arith.constant 0 : index
    %c0_47 = arith.constant 0 : index
    %c16_48 = arith.constant 16 : index
    %78 = vector.load %arg2[%c0_46, %c0_47, %c16_48] : memref<1x8x64xbf16, #tpu.memory_space<vmem>>, vector<1x8x8xbf16>
    %79 = vector.shape_cast %78 : vector<1x8x8xbf16> to vector<8x8xbf16>
    %c0_49 = arith.constant 0 : index
    %c0_50 = arith.constant 0 : index
    %c48 = arith.constant 48 : index
    %80 = vector.load %arg2[%c0_49, %c0_50, %c48] : memref<1x8x64xbf16, #tpu.memory_space<vmem>>, vector<1x8x8xbf16>
    %81 = vector.shape_cast %80 : vector<1x8x8xbf16> to vector<8x8xbf16>
    %cst_51 = arith.constant dense<0.000000e+00> : vector<8x8xf32>
    %82 = tpu.matmul %77, %79, %cst_51 {dimension_numbers = #tpu.dot_dimension_numbers<[1], [1], [0], [0], [0, 0, 1, 0], [], []>} : vector<8x8xbf16>, vector<8x8xbf16>, vector<8x8xf32> -> vector<8x8xf32>
    %83 = vector.broadcast %1 : vector<1x8xf32> to vector<8x8xf32>
    %84 = arith.addf %82, %83 : vector<8x8xf32>
    %c0_52 = arith.constant 0 : index
    %c16_53 = arith.constant 16 : index
    %85 = vector.load %arg3[%c0_52, %c16_53] : memref<4x32xbf16, #tpu.memory_space<vmem>>, vector<4x8xbf16>
    %c0_54 = arith.constant 0 : index
    %c16_55 = arith.constant 16 : index
    %86 = vector.load %arg4[%c0_54, %c16_55] : memref<4x32xbf16, #tpu.memory_space<vmem>>, vector<4x8xbf16>
    %cst_56 = arith.constant dense<0.000000e+00> : vector<8x4xf32>
    %87 = tpu.matmul %77, %85, %cst_56 {dimension_numbers = #tpu.dot_dimension_numbers<[1], [1], [0], [0], [0, 0, 1, 0], [], []>} : vector<8x8xbf16>, vector<4x8xbf16>, vector<8x4xf32> -> vector<8x4xf32>
    %cst_57 = arith.constant dense<0xFF800000> : vector<8xf32>
    %88 = vector.multi_reduction <maximumf>, %84, %cst_57 [1] : vector<8x8xf32> to vector<8xf32>
    %89 = vector.shape_cast %88 : vector<8xf32> to vector<8x1xf32>
    %cst_58 = arith.constant dense<0xFF800000> : vector<8xf32>
    %90 = vector.multi_reduction <maximumf>, %87, %cst_58 [1] : vector<8x4xf32> to vector<8xf32>
    %91 = vector.shape_cast %90 : vector<8xf32> to vector<8x1xf32>
    %92 = arith.maximumf %89, %91 : vector<8x1xf32>
    %93 = vector.broadcast %92 : vector<8x1xf32> to vector<8x8xf32>
    %94 = arith.subf %84, %93 : vector<8x8xf32>
    %95 = math.exp %94 : vector<8x8xf32>
    %96 = vector.broadcast %92 : vector<8x1xf32> to vector<8x4xf32>
    %97 = arith.subf %87, %96 : vector<8x4xf32>
    %98 = math.exp %97 : vector<8x4xf32>
    %cst_59 = arith.constant dense<0.000000e+00> : vector<8xf32>
    %99 = vector.multi_reduction <add>, %95, %cst_59 [1] : vector<8x8xf32> to vector<8xf32>
    %100 = vector.shape_cast %99 : vector<8xf32> to vector<8x1xf32>
    %cst_60 = arith.constant dense<0.000000e+00> : vector<8xf32>
    %101 = vector.multi_reduction <add>, %98, %cst_60 [1] : vector<8x4xf32> to vector<8xf32>
    %102 = vector.shape_cast %101 : vector<8xf32> to vector<8x1xf32>
    %103 = arith.addf %100, %102 : vector<8x1xf32>
    %104 = arith.truncf %95 : vector<8x8xf32> to vector<8x8xbf16>
    %cst_61 = arith.constant dense<0.000000e+00> : vector<8x8xf32>
    %105 = tpu.matmul %104, %81, %cst_61 {dimension_numbers = #tpu.dot_dimension_numbers<[1], [0], [0], [1], [0, 0, 1, 1], [], []>} : vector<8x8xbf16>, vector<8x8xbf16>, vector<8x8xf32> -> vector<8x8xf32>
    %106 = arith.truncf %98 : vector<8x4xf32> to vector<8x4xbf16>
    %cst_62 = arith.constant dense<0.000000e+00> : vector<8x8xf32>
    %107 = tpu.matmul %106, %86, %cst_62 {dimension_numbers = #tpu.dot_dimension_numbers<[1], [0], [0], [1], [0, 0, 1, 1], [], []>} : vector<8x4xbf16>, vector<4x8xbf16>, vector<8x8xf32> -> vector<8x8xf32>
    %108 = arith.addf %105, %107 : vector<8x8xf32>
    %109 = tpu.reciprocal %103 {approx = true} : vector<8x1xf32> -> vector<8x1xf32>
    %110 = vector.broadcast %109 : vector<8x1xf32> to vector<8x8xf32>
    %111 = arith.mulf %108, %110 : vector<8x8xf32>
    %c0_63 = arith.constant 0 : index
    %c16_64 = arith.constant 16 : index
    %112 = vector.load %arg7[%c0_63, %c16_64] : memref<8x32xf32, #tpu.memory_space<vmem>>, vector<8x8xf32>
    tpu.vector_store %arg7[%c0_63, %c16_64], %111 {strides = array<i32>} : memref<8x32xf32, #tpu.memory_space<vmem>>, vector<8x8xf32>,
    %c0_65 = arith.constant 0 : index
    %c0_66 = arith.constant 0 : index
    %c24 = arith.constant 24 : index
    %113 = vector.load %arg1[%c0_65, %c0_66, %c24] : memref<1x8x32xbf16, #tpu.memory_space<vmem>>, vector<1x8x8xbf16>
    %114 = vector.shape_cast %113 : vector<1x8x8xbf16> to vector<8x8xbf16>
    %c0_67 = arith.constant 0 : index
    %c0_68 = arith.constant 0 : index
    %c24_69 = arith.constant 24 : index
    %115 = vector.load %arg2[%c0_67, %c0_68, %c24_69] : memref<1x8x64xbf16, #tpu.memory_space<vmem>>, vector<1x8x8xbf16>
    %116 = vector.shape_cast %115 : vector<1x8x8xbf16> to vector<8x8xbf16>
    %c0_70 = arith.constant 0 : index
    %c0_71 = arith.constant 0 : index
    %c56 = arith.constant 56 : index
    %117 = vector.load %arg2[%c0_70, %c0_71, %c56] : memref<1x8x64xbf16, #tpu.memory_space<vmem>>, vector<1x8x8xbf16>
    %118 = vector.shape_cast %117 : vector<1x8x8xbf16> to vector<8x8xbf16>
    %cst_72 = arith.constant dense<0.000000e+00> : vector<8x8xf32>
    %119 = tpu.matmul %114, %116, %cst_72 {dimension_numbers = #tpu.dot_dimension_numbers<[1], [1], [0], [0], [0, 0, 1, 0], [], []>} : vector<8x8xbf16>, vector<8x8xbf16>, vector<8x8xf32> -> vector<8x8xf32>
    %120 = vector.broadcast %1 : vector<1x8xf32> to vector<8x8xf32>
    %121 = arith.addf %119, %120 : vector<8x8xf32>
    %c0_73 = arith.constant 0 : index
    %c24_74 = arith.constant 24 : index
    %122 = vector.load %arg3[%c0_73, %c24_74] : memref<4x32xbf16, #tpu.memory_space<vmem>>, vector<4x8xbf16>
    %c0_75 = arith.constant 0 : index
    %c24_76 = arith.constant 24 : index
    %123 = vector.load %arg4[%c0_75, %c24_76] : memref<4x32xbf16, #tpu.memory_space<vmem>>, vector<4x8xbf16>
    %cst_77 = arith.constant dense<0.000000e+00> : vector<8x4xf32>
    %124 = tpu.matmul %114, %122, %cst_77 {dimension_numbers = #tpu.dot_dimension_numbers<[1], [1], [0], [0], [0, 0, 1, 0], [], []>} : vector<8x8xbf16>, vector<4x8xbf16>, vector<8x4xf32> -> vector<8x4xf32>
    %cst_78 = arith.constant dense<0xFF800000> : vector<8xf32>
    %125 = vector.multi_reduction <maximumf>, %121, %cst_78 [1] : vector<8x8xf32> to vector<8xf32>
    %126 = vector.shape_cast %125 : vector<8xf32> to vector<8x1xf32>
    %cst_79 = arith.constant dense<0xFF800000> : vector<8xf32>
    %127 = vector.multi_reduction <maximumf>, %124, %cst_79 [1] : vector<8x4xf32> to vector<8xf32>
    %128 = vector.shape_cast %127 : vector<8xf32> to vector<8x1xf32>
    %129 = arith.maximumf %126, %128 : vector<8x1xf32>
    %130 = vector.broadcast %129 : vector<8x1xf32> to vector<8x8xf32>
    %131 = arith.subf %121, %130 : vector<8x8xf32>
    %132 = math.exp %131 : vector<8x8xf32>
    %133 = vector.broadcast %129 : vector<8x1xf32> to vector<8x4xf32>
    %134 = arith.subf %124, %133 : vector<8x4xf32>
    %135 = math.exp %134 : vector<8x4xf32>
    %cst_80 = arith.constant dense<0.000000e+00> : vector<8xf32>
    %136 = vector.multi_reduction <add>, %132, %cst_80 [1] : vector<8x8xf32> to vector<8xf32>
    %137 = vector.shape_cast %136 : vector<8xf32> to vector<8x1xf32>
    %cst_81 = arith.constant dense<0.000000e+00> : vector<8xf32>
    %138 = vector.multi_reduction <add>, %135, %cst_81 [1] : vector<8x4xf32> to vector<8xf32>
    %139 = vector.shape_cast %138 : vector<8xf32> to vector<8x1xf32>
    %140 = arith.addf %137, %139 : vector<8x1xf32>
    %141 = arith.truncf %132 : vector<8x8xf32> to vector<8x8xbf16>
    %cst_82 = arith.constant dense<0.000000e+00> : vector<8x8xf32>
    %142 = tpu.matmul %141, %118, %cst_82 {dimension_numbers = #tpu.dot_dimension_numbers<[1], [0], [0], [1], [0, 0, 1, 1], [], []>} : vector<8x8xbf16>, vector<8x8xbf16>, vector<8x8xf32> -> vector<8x8xf32>
    %143 = arith.truncf %135 : vector<8x4xf32> to vector<8x4xbf16>
    %cst_83 = arith.constant dense<0.000000e+00> : vector<8x8xf32>
    %144 = tpu.matmul %143, %123, %cst_83 {dimension_numbers = #tpu.dot_dimension_numbers<[1], [0], [0], [1], [0, 0, 1, 1], [], []>} : vector<8x4xbf16>, vector<4x8xbf16>, vector<8x8xf32> -> vector<8x8xf32>
    %145 = arith.addf %142, %144 : vector<8x8xf32>
    %146 = tpu.reciprocal %140 {approx = true} : vector<8x1xf32> -> vector<8x1xf32>
    %147 = vector.broadcast %146 : vector<8x1xf32> to vector<8x8xf32>
    %148 = arith.mulf %145, %147 : vector<8x8xf32>
    %c0_84 = arith.constant 0 : index
    %c24_85 = arith.constant 24 : index
    %149 = vector.load %arg7[%c0_84, %c24_85] : memref<8x32xf32, #tpu.memory_space<vmem>>, vector<8x8xf32>
    tpu.vector_store %arg7[%c0_84, %c24_85], %148 {strides = array<i32>} : memref<8x32xf32, #tpu.memory_space<vmem>>, vector<8x8xf32>,
    %c0_86 = arith.constant 0 : index
    %c0_87 = arith.constant 0 : index
    %150 = vector.load %arg7[%c0_86, %c0_87] : memref<8x32xf32, #tpu.memory_space<vmem>>, vector<8x32xf32>
    %151 = arith.truncf %150 : vector<8x32xf32> to vector<8x32xbf16>
    %c0_88 = arith.constant 0 : index
    %c0_89 = arith.constant 0 : index
    %c0_90 = arith.constant 0 : index
    %152 = vector.load %arg6[%c0_88, %c0_89, %c0_90] : memref<1x8x32xbf16, #tpu.memory_space<vmem>>, vector<1x8x32xbf16>
    %153 = vector.shape_cast %152 : vector<1x8x32xbf16> to vector<8x32xbf16>
    %154 = vector.shape_cast %151 : vector<8x32xbf16> to vector<1x8x32xbf16>
    tpu.vector_store %arg6[%c0_88, %c0_89, %c0_90], %154 {strides = array<i32>} : memref<1x8x32xbf16, #tpu.memory_space<vmem>>, vector<1x8x32xbf16>,
    return
  }
  func.func @transform_0(%arg0: i32) -> (i32, i32, i32) {
    %c0_i32 = arith.constant 0 : i32
    %c0_i32_0 = arith.constant 0 : i32
    %c0_i32_1 = arith.constant 0 : i32
    return %arg0, %c0_i32, %c0_i32_0 : i32, i32, i32
  }
  func.func @transform_1(%arg0: i32) -> (i32, i32, i32) {
    %c0_i32 = arith.constant 0 : i32
    %c0_i32_0 = arith.constant 0 : i32
    %c0_i32_1 = arith.constant 0 : i32
    return %arg0, %c0_i32, %c0_i32_0 : i32, i32, i32
  }
  func.func @transform_2(%arg0: i32) -> (i32, i32) {
    %c0_i32 = arith.constant 0 : i32
    %c0_i32_0 = arith.constant 0 : i32
    %c0_i32_1 = arith.constant 0 : i32
    return %c0_i32, %c0_i32_0 : i32, i32
  }
  func.func @transform_3(%arg0: i32) -> (i32, i32) {
    %c0_i32 = arith.constant 0 : i32
    %c0_i32_0 = arith.constant 0 : i32
    %c0_i32_1 = arith.constant 0 : i32
    return %c0_i32, %c0_i32_0 : i32, i32
  }
  func.func @transform_4(%arg0: i32) -> (i32, i32, i32) {
    %c0_i32 = arith.constant 0 : i32
    %c0_i32_0 = arith.constant 0 : i32
    %c0_i32_1 = arith.constant 0 : i32
    return %arg0, %c0_i32, %c0_i32_0 : i32, i32, i32
  }
  func.func @transform_5(%arg0: i32) -> (i32, i32, i32) {
    %c0_i32 = arith.constant 0 : i32
    %c0_i32_0 = arith.constant 0 : i32
    %c0_i32_1 = arith.constant 0 : i32
    return %arg0, %c0_i32, %c0_i32_0 : i32, i32, i32
  }
}

module attributes {stable_mosaic.version = 11 : i64} {
  func.func @_linear_kernel(%arg0: i32, %arg1: i32, %arg2: i32, %arg3: memref<16x32xbf16, #tpu.memory_space<vmem>>, %arg4: memref<32x64xbf16, #tpu.memory_space<vmem>>, %arg5: memref<1x64xf32, #tpu.memory_space<vmem>>, %arg6: memref<16x64xbf16, #tpu.memory_space<vmem>>, %arg7: memref<16x64xf32, #tpu.memory_space<vmem>>) attributes {dimension_semantics = [#tpu.dimension_semantics<parallel>, #tpu.dimension_semantics<parallel>, #tpu.dimension_semantics<arbitrary>], iteration_bounds = array<i64: 1, 1, 1>, scalar_prefetch = 0 : i64, scratch_operands = 1 : i64, tpu.core_type = #tpu.core_type<tc>, window_params = [{transform_indices = @transform_0, window_bounds = array<i64: 16, 32>}, {transform_indices = @transform_1, window_bounds = array<i64: 32, 64>}, {transform_indices = @transform_2, window_bounds = array<i64: 1, 64>}, {transform_indices = @transform_3, window_bounds = array<i64: 16, 64>}]} {
    %c0_i32 = arith.constant 0 : i32
    %0 = arith.cmpi eq, %arg2, %c0_i32 : i32
    %1 = arith.extui %0 : i1 to i32
    %c0_i32_0 = arith.constant 0 : i32
    %2 = arith.cmpi ne, %1, %c0_i32_0 : i32
    scf.if %2 {
      %cst_10 = arith.constant 0.000000e+00 : f32
      %12 = vector.broadcast %cst_10 : f32 to vector<16x64xf32>
      %c0_11 = arith.constant 0 : index
      %c0_12 = arith.constant 0 : index
      %13 = vector.load %arg7[%c0_11, %c0_12] : memref<16x64xf32, #tpu.memory_space<vmem>>, vector<16x64xf32>
      tpu.vector_store %arg7[%c0_11, %c0_12], %12 {strides = array<i32>} : memref<16x64xf32, #tpu.memory_space<vmem>>, vector<16x64xf32>,
    } else {
    }
    %c0 = arith.constant 0 : index
    %c0_1 = arith.constant 0 : index
    %3 = vector.load %arg7[%c0, %c0_1] : memref<16x64xf32, #tpu.memory_space<vmem>>, vector<16x64xf32>
    %c0_2 = arith.constant 0 : index
    %c0_3 = arith.constant 0 : index
    %4 = vector.load %arg3[%c0_2, %c0_3] : memref<16x32xbf16, #tpu.memory_space<vmem>>, vector<16x32xbf16>
    %c0_4 = arith.constant 0 : index
    %c0_5 = arith.constant 0 : index
    %5 = vector.load %arg4[%c0_4, %c0_5] : memref<32x64xbf16, #tpu.memory_space<vmem>>, vector<32x64xbf16>
    %cst = arith.constant dense<0.000000e+00> : vector<16x64xf32>
    %6 = tpu.matmul %4, %5, %cst {dimension_numbers = #tpu.dot_dimension_numbers<[1], [0], [0], [1], [0, 0, 1, 1], [], []>} : vector<16x32xbf16>, vector<32x64xbf16>, vector<16x64xf32> -> vector<16x64xf32>
    %7 = arith.addf %3, %6 : vector<16x64xf32>
    %c0_6 = arith.constant 0 : index
    %c0_7 = arith.constant 0 : index
    %8 = vector.load %arg7[%c0_6, %c0_7] : memref<16x64xf32, #tpu.memory_space<vmem>>, vector<16x64xf32>
    tpu.vector_store %arg7[%c0_6, %c0_7], %7 {strides = array<i32>} : memref<16x64xf32, #tpu.memory_space<vmem>>, vector<16x64xf32>,
    %c0_i32_8 = arith.constant 0 : i32
    %9 = arith.cmpi eq, %arg2, %c0_i32_8 : i32
    %10 = arith.extui %9 : i1 to i32
    %c0_i32_9 = arith.constant 0 : i32
    %11 = arith.cmpi ne, %10, %c0_i32_9 : i32
    scf.if %11 {
      %c0_10 = arith.constant 0 : index
      %c0_11 = arith.constant 0 : index
      %12 = vector.load %arg7[%c0_10, %c0_11] : memref<16x64xf32, #tpu.memory_space<vmem>>, vector<16x64xf32>
      %c0_12 = arith.constant 0 : index
      %c0_13 = arith.constant 0 : index
      %13 = vector.load %arg5[%c0_12, %c0_13] : memref<1x64xf32, #tpu.memory_space<vmem>>, vector<1x64xf32>
      %14 = vector.broadcast %13 : vector<1x64xf32> to vector<16x64xf32>
      %15 = arith.addf %12, %14 : vector<16x64xf32>
      %cst_14 = arith.constant 0.000000e+00 : f32
      %16 = vector.broadcast %cst_14 : f32 to vector<16x64xf32>
      %17 = arith.maximumf %15, %16 : vector<16x64xf32>
      %18 = arith.truncf %17 : vector<16x64xf32> to vector<16x64xbf16>
      %c0_15 = arith.constant 0 : index
      %c0_16 = arith.constant 0 : index
      %19 = vector.load %arg6[%c0_15, %c0_16] : memref<16x64xbf16, #tpu.memory_space<vmem>>, vector<16x64xbf16>
      tpu.vector_store %arg6[%c0_15, %c0_16], %18 {strides = array<i32>} : memref<16x64xbf16, #tpu.memory_space<vmem>>, vector<16x64xbf16>,
    } else {
    }
    return
  }
  func.func @transform_0(%arg0: i32, %arg1: i32, %arg2: i32) -> (i32, i32) {
    %c0_i32 = arith.constant 0 : i32
    return %arg0, %arg2 : i32, i32
  }
  func.func @transform_1(%arg0: i32, %arg1: i32, %arg2: i32) -> (i32, i32) {
    %c0_i32 = arith.constant 0 : i32
    return %arg2, %arg1 : i32, i32
  }
  func.func @transform_2(%arg0: i32, %arg1: i32, %arg2: i32) -> (i32, i32) {
    %c0_i32 = arith.constant 0 : i32
    %c0_i32_0 = arith.constant 0 : i32
    return %c0_i32, %arg1 : i32, i32
  }
  func.func @transform_3(%arg0: i32, %arg1: i32, %arg2: i32) -> (i32, i32) {
    %c0_i32 = arith.constant 0 : i32
    return %arg0, %arg1 : i32, i32
  }
}

module attributes {stable_mosaic.version = 11 : i64} {
  func.func @_linear_addln_kernel(%arg0: i32, %arg1: i32, %arg2: memref<16x64xbf16, #tpu.memory_space<vmem>>, %arg3: memref<64x32xbf16, #tpu.memory_space<vmem>>, %arg4: memref<1x32xf32, #tpu.memory_space<vmem>>, %arg5: memref<16x32xbf16, #tpu.memory_space<vmem>>, %arg6: memref<1x32xf32, #tpu.memory_space<vmem>>, %arg7: memref<1x32xf32, #tpu.memory_space<vmem>>, %arg8: memref<16x1xf32, #tpu.memory_space<vmem>>, %arg9: memref<16x32xf32, #tpu.memory_space<vmem>>, %arg10: memref<16x32xf32, #tpu.memory_space<vmem>>) attributes {dimension_semantics = [#tpu.dimension_semantics<parallel>, #tpu.dimension_semantics<arbitrary>], iteration_bounds = array<i64: 1, 1>, scalar_prefetch = 0 : i64, scratch_operands = 1 : i64, tpu.core_type = #tpu.core_type<tc>, window_params = [{transform_indices = @transform_0, window_bounds = array<i64: 16, 64>}, {transform_indices = @transform_1, window_bounds = array<i64: 64, 32>}, {pipeline_mode = #tpu.pipeline_mode<synchronous>, transform_indices = @transform_2, window_bounds = array<i64: 1, 32>}, {transform_indices = @transform_3, window_bounds = array<i64: 16, 32>}, {pipeline_mode = #tpu.pipeline_mode<synchronous>, transform_indices = @transform_4, window_bounds = array<i64: 1, 32>}, {pipeline_mode = #tpu.pipeline_mode<synchronous>, transform_indices = @transform_5, window_bounds = array<i64: 1, 32>}, {transform_indices = @transform_6, window_bounds = array<i64: 16, 1>}, {transform_indices = @transform_7, window_bounds = array<i64: 16, 32>}]} {
    %c0_i32 = arith.constant 0 : i32
    %0 = arith.cmpi eq, %arg1, %c0_i32 : i32
    %1 = arith.extui %0 : i1 to i32
    %c0_i32_0 = arith.constant 0 : i32
    %2 = arith.cmpi ne, %1, %c0_i32_0 : i32
    scf.if %2 {
      %cst_10 = arith.constant 0.000000e+00 : f32
      %12 = vector.broadcast %cst_10 : f32 to vector<16x32xf32>
      %c0_11 = arith.constant 0 : index
      %c0_12 = arith.constant 0 : index
      %13 = vector.load %arg10[%c0_11, %c0_12] : memref<16x32xf32, #tpu.memory_space<vmem>>, vector<16x32xf32>
      tpu.vector_store %arg10[%c0_11, %c0_12], %12 {strides = array<i32>} : memref<16x32xf32, #tpu.memory_space<vmem>>, vector<16x32xf32>,
    } else {
    }
    %c0 = arith.constant 0 : index
    %c0_1 = arith.constant 0 : index
    %3 = vector.load %arg10[%c0, %c0_1] : memref<16x32xf32, #tpu.memory_space<vmem>>, vector<16x32xf32>
    %c0_2 = arith.constant 0 : index
    %c0_3 = arith.constant 0 : index
    %4 = vector.load %arg2[%c0_2, %c0_3] : memref<16x64xbf16, #tpu.memory_space<vmem>>, vector<16x64xbf16>
    %c0_4 = arith.constant 0 : index
    %c0_5 = arith.constant 0 : index
    %5 = vector.load %arg3[%c0_4, %c0_5] : memref<64x32xbf16, #tpu.memory_space<vmem>>, vector<64x32xbf16>
    %cst = arith.constant dense<0.000000e+00> : vector<16x32xf32>
    %6 = tpu.matmul %4, %5, %cst {dimension_numbers = #tpu.dot_dimension_numbers<[1], [0], [0], [1], [0, 0, 1, 1], [], []>} : vector<16x64xbf16>, vector<64x32xbf16>, vector<16x32xf32> -> vector<16x32xf32>
    %7 = arith.addf %3, %6 : vector<16x32xf32>
    %c0_6 = arith.constant 0 : index
    %c0_7 = arith.constant 0 : index
    %8 = vector.load %arg10[%c0_6, %c0_7] : memref<16x32xf32, #tpu.memory_space<vmem>>, vector<16x32xf32>
    tpu.vector_store %arg10[%c0_6, %c0_7], %7 {strides = array<i32>} : memref<16x32xf32, #tpu.memory_space<vmem>>, vector<16x32xf32>,
    %c0_i32_8 = arith.constant 0 : i32
    %9 = arith.cmpi eq, %arg1, %c0_i32_8 : i32
    %10 = arith.extui %9 : i1 to i32
    %c0_i32_9 = arith.constant 0 : i32
    %11 = arith.cmpi ne, %10, %c0_i32_9 : i32
    scf.if %11 {
      %c0_10 = arith.constant 0 : index
      %c0_11 = arith.constant 0 : index
      %12 = vector.load %arg10[%c0_10, %c0_11] : memref<16x32xf32, #tpu.memory_space<vmem>>, vector<16x32xf32>
      %c0_12 = arith.constant 0 : index
      %c0_13 = arith.constant 0 : index
      %13 = vector.load %arg4[%c0_12, %c0_13] : memref<1x32xf32, #tpu.memory_space<vmem>>, vector<1x32xf32>
      %14 = vector.broadcast %13 : vector<1x32xf32> to vector<16x32xf32>
      %15 = arith.addf %12, %14 : vector<16x32xf32>
      %c0_14 = arith.constant 0 : index
      %c0_15 = arith.constant 0 : index
      %16 = vector.load %arg5[%c0_14, %c0_15] : memref<16x32xbf16, #tpu.memory_space<vmem>>, vector<16x32xbf16>
      %17 = arith.extf %16 : vector<16x32xbf16> to vector<16x32xf32>
      %18 = arith.addf %15, %17 : vector<16x32xf32>
      %cst_16 = arith.constant dense<0.000000e+00> : vector<16xf32>
      %19 = vector.multi_reduction <add>, %18, %cst_16 [1] : vector<16x32xf32> to vector<16xf32>
      %20 = vector.shape_cast %19 : vector<16xf32> to vector<16x1xf32>
      %cst_17 = arith.constant 3.200000e+01 : f32
      %21 = vector.broadcast %cst_17 : f32 to vector<16x1xf32>
      %22 = arith.divf %20, %21 : vector<16x1xf32>
      %23 = vector.broadcast %22 : vector<16x1xf32> to vector<16x32xf32>
      %24 = arith.subf %18, %23 : vector<16x32xf32>
      %25 = arith.mulf %24, %24 : vector<16x32xf32>
      %cst_18 = arith.constant dense<0.000000e+00> : vector<16xf32>
      %26 = vector.multi_reduction <add>, %25, %cst_18 [1] : vector<16x32xf32> to vector<16xf32>
      %27 = vector.shape_cast %26 : vector<16xf32> to vector<16x1xf32>
      %cst_19 = arith.constant 3.200000e+01 : f32
      %28 = vector.broadcast %cst_19 : f32 to vector<16x1xf32>
      %29 = arith.divf %27, %28 : vector<16x1xf32>
      %cst_20 = arith.constant 9.99999974E-6 : f32
      %30 = vector.broadcast %cst_20 : f32 to vector<16x1xf32>
      %31 = arith.addf %29, %30 : vector<16x1xf32>
      %32 = math.rsqrt %31 : vector<16x1xf32>
      %33 = vector.broadcast %32 : vector<16x1xf32> to vector<16x32xf32>
      %34 = arith.mulf %24, %33 : vector<16x32xf32>
      %c0_21 = arith.constant 0 : index
      %c0_22 = arith.constant 0 : index
      %35 = vector.load %arg6[%c0_21, %c0_22] : memref<1x32xf32, #tpu.memory_space<vmem>>, vector<1x32xf32>
      %36 = vector.broadcast %35 : vector<1x32xf32> to vector<16x32xf32>
      %37 = arith.mulf %34, %36 : vector<16x32xf32>
      %c0_23 = arith.constant 0 : index
      %c0_24 = arith.constant 0 : index
      %38 = vector.load %arg7[%c0_23, %c0_24] : memref<1x32xf32, #tpu.memory_space<vmem>>, vector<1x32xf32>
      %39 = vector.broadcast %38 : vector<1x32xf32> to vector<16x32xf32>
      %40 = arith.addf %37, %39 : vector<16x32xf32>
      %c0_25 = arith.constant 0 : index
      %c0_26 = arith.constant 0 : index
      %41 = vector.load %arg8[%c0_25, %c0_26] : memref<16x1xf32, #tpu.memory_space<vmem>>, vector<16x1xf32>
      %42 = vector.broadcast %41 : vector<16x1xf32> to vector<16x32xf32>
      %43 = arith.mulf %40, %42 : vector<16x32xf32>
      %c0_27 = arith.constant 0 : index
      %c0_28 = arith.constant 0 : index
      %44 = vector.load %arg9[%c0_27, %c0_28] : memref<16x32xf32, #tpu.memory_space<vmem>>, vector<16x32xf32>
      tpu.vector_store %arg9[%c0_27, %c0_28], %43 {strides = array<i32>} : memref<16x32xf32, #tpu.memory_space<vmem>>, vector<16x32xf32>,
    } else {
    }
    return
  }
  func.func @transform_0(%arg0: i32, %arg1: i32) -> (i32, i32) {
    %c0_i32 = arith.constant 0 : i32
    return %arg0, %arg1 : i32, i32
  }
  func.func @transform_1(%arg0: i32, %arg1: i32) -> (i32, i32) {
    %c0_i32 = arith.constant 0 : i32
    %c0_i32_0 = arith.constant 0 : i32
    return %arg1, %c0_i32 : i32, i32
  }
  func.func @transform_2(%arg0: i32, %arg1: i32) -> (i32, i32) {
    %c0_i32 = arith.constant 0 : i32
    %c0_i32_0 = arith.constant 0 : i32
    %c0_i32_1 = arith.constant 0 : i32
    return %c0_i32, %c0_i32_0 : i32, i32
  }
  func.func @transform_3(%arg0: i32, %arg1: i32) -> (i32, i32) {
    %c0_i32 = arith.constant 0 : i32
    %c0_i32_0 = arith.constant 0 : i32
    return %arg0, %c0_i32 : i32, i32
  }
  func.func @transform_4(%arg0: i32, %arg1: i32) -> (i32, i32) {
    %c0_i32 = arith.constant 0 : i32
    %c0_i32_0 = arith.constant 0 : i32
    %c0_i32_1 = arith.constant 0 : i32
    return %c0_i32, %c0_i32_0 : i32, i32
  }
  func.func @transform_5(%arg0: i32, %arg1: i32) -> (i32, i32) {
    %c0_i32 = arith.constant 0 : i32
    %c0_i32_0 = arith.constant 0 : i32
    %c0_i32_1 = arith.constant 0 : i32
    return %c0_i32, %c0_i32_0 : i32, i32
  }
  func.func @transform_6(%arg0: i32, %arg1: i32) -> (i32, i32) {
    %c0_i32 = arith.constant 0 : i32
    %c0_i32_0 = arith.constant 0 : i32
    return %arg0, %c0_i32 : i32, i32
  }
  func.func @transform_7(%arg0: i32, %arg1: i32) -> (i32, i32) {
    %c0_i32 = arith.constant 0 : i32
    %c0_i32_0 = arith.constant 0 : i32
    return %arg0, %c0_i32 : i32, i32
  }
}

</mosaic_0001>

<bundles_post_ra>
// kernel: sequential_attention_forward.13
= control target key start
LH: loop header
LB: loop body
LE: loop exit
PB: predicated region body
PF: predicated region fallthrough
CT: control target
= control target key end

     0   :  { %vm19_vm0 = vcmask 785408   ;;  %v145_v0 = vmov 0.0   ;;  %vm146_vm1 = vmmov 0   ;;  %vm43_vm2 = vcmask 261120   ;;  %s192_s1 = inlined_call_operand.vmem [shape: bf16[32,96], index: 1, kind: input, shape index: {}]   ;;  %s193_s0 = inlined_call_operand.vmem [shape: f32[16,32], index: 0, kind: input, shape index: {}]   ;;  %s194_s2 = inlined_call_operand.vmem [shape: f32[1,96], index: 2, kind: input, shape index: {}]   ;;  %s195_s3 = inlined_call_operand.vmem [shape: bf16[16,96], index: 3, kind: output, shape index: {}]  }
   0x1   :  { %133 = vmatprep.subr.bf16.mxu0 %v145_v0  ;;  %v143_v1 = vld [vmem:[%s192_s1] sm:$0xff]   ;;  %137 = vmatprep.mubr.msk.bf16.mxu0 %vm146_vm1, %v145_v0  ;;  %20 = vst.msk [vmem:[#allocation2] sm:$0xff] %vm19_vm0, %v145_v0  ;;  %21 = vst.msk [vmem:[#allocation2 + $0x8] sm:$0xff] %vm19_vm0, %v145_v0  ;;  %v144_v2 = vld [vmem:[%s192_s1 + $0x8] sm:$0xff]   ;;  %vm115_vm3 = vcmask 781312  }
   0x2   :  { %134 = vmatpush3.bf16.msra.mxu0 %v143_v1  ;;  %v24_v3 = vld [vmem:[%s193_s0] sm:$0xff]  ;;  %v25_v4 = vld [vmem:[%s193_s0 + $0x8] sm:$0xff] }
   0x3   :  { %135 = vmatprep.subr.bf16.mxu0 %v145_v0  ;;  %v26_v5 = vpack.c.bf16 %v25_v4, %v24_v3  ;;  %v125_v14 = vld [vmem:[%s194_s2] ss:$0 sm:$0xff] }
   0x6   :  { %136 = vmatpush3.bf16.msra.mxu0 %v144_v2 }
   0x8   :  { %v22_v6 = vld [vmem:[#allocation2] sm:$0xff]  ;;  %v23_v8 = vld [vmem:[#allocation2 + $0x8] sm:$0xff] }
   0x9   :  { %138 = vmatmul.mubr.msk.bf16.vlgmr.msra.gmra.mrb[0].mxu0 %vm43_vm2, %v26_v5 }
  0xdc   :  { %v81_v7 = vpop.f32.mrb[0].mxu0 }
  0xdd   :  { %v88_v9 = vadd.f32 %v81_v7, %v22_v6  ;;  %v139_v10 = vpop.f32.mrb[1].mxu0 }
  0xde   :  { %v84_v11 = vpop.f32.mrb[2].mxu0 }
  0xdf   :  { %91 = vst.msk [vmem:[#allocation2] sm:$0xff] %vm19_vm0, %v88_v9  ;;  %v89_v12 = vadd.f32 %v84_v11, %v23_v8  ;;  %v140_v13 = vpop.f32.mrb[3].mxu0 }
  0xe1   :  { %92 = vst.msk [vmem:[#allocation2 + $0x8] sm:$0xff] %vm19_vm0, %v89_v12 }
  0xe6   :  { %v96_v15 = vld [vmem:[#allocation2] sm:$0xff] }
  0xe7   :  { %v105_v16 = vadd.f32 %v125_v14, %v96_v15 }
  0xe8   :  { %v97_v17 = vld [vmem:[#allocation2 + $0x8] sm:$0xff] }
  0xe9   :  { %v128_v18 = vpack.c.bf16 %v105_v16, %v105_v16  ;;  %v106_v19 = vadd.f32 %v125_v14, %v97_v17 }
  0xeb   :  { %116 = vst.msk [vmem:[%s195_s3] sm:$0xf] %vm115_vm3, %v128_v18  ;;  %v129_v20 = vpack.c.bf16 %v106_v19, %v106_v19 }
  0xed   :  { %117 = vst.msk [vmem:[%s195_s3 + $0x4] sm:$0xf] %vm115_vm3, %v129_v20 }

// kernel: sequential_attention_forward.17
= control target key start
LH: loop header
LB: loop body
LE: loop exit
PB: predicated region body
PF: predicated region fallthrough
CT: control target
= control target key end

     0   :  { %vm19_vm0 = vcmask 523264   ;;  %v145_v0 = vmov 0.0   ;;  %vm146_vm1 = vmmov 0   ;;  %vm43_vm2 = vcmask 261120   ;;  %s192_s1 = inlined_call_operand.vmem [shape: bf16[32,64], index: 1, kind: input, shape index: {}]   ;;  %s193_s0 = inlined_call_operand.vmem [shape: f32[16,32], index: 0, kind: input, shape index: {}]   ;;  %s194_s2 = inlined_call_operand.vmem [shape: f32[1,64], index: 2, kind: input, shape index: {}]   ;;  %s195_s3 = inlined_call_operand.vmem [shape: bf16[16,64], index: 3, kind: output, shape index: {}]  }
   0x1   :  { %133 = vmatprep.subr.bf16.mxu0 %v145_v0  ;;  %v143_v1 = vld [vmem:[%s192_s1] sm:$0xff]   ;;  %137 = vmatprep.mubr.msk.bf16.mxu0 %vm146_vm1, %v145_v0  ;;  %20 = vst.msk [vmem:[#allocation2] sm:$0xff] %vm19_vm0, %v145_v0  ;;  %21 = vst.msk [vmem:[#allocation2 + $0x8] sm:$0xff] %vm19_vm0, %v145_v0  ;;  %v144_v2 = vld [vmem:[%s192_s1 + $0x8] sm:$0xff]   ;;  %vm115_vm3 = vcmask 519168  }
   0x2   :  { %134 = vmatpush3.bf16.msra.mxu0 %v143_v1  ;;  %v24_v3 = vld [vmem:[%s193_s0] sm:$0xff]  ;;  %v25_v4 = vld [vmem:[%s193_s0 + $0x8] sm:$0xff] }
   0x3   :  { %135 = vmatprep.subr.bf16.mxu0 %v145_v0  ;;  %v26_v5 = vpack.c.bf16 %v25_v4, %v24_v3  ;;  %v125_v14 = vld [vmem:[%s194_s2] ss:$0 sm:$0xff] }
   0x6   :  { %136 = vmatpush3.bf16.msra.mxu0 %v144_v2 }
   0x8   :  { %v22_v6 = vld [vmem:[#allocation2] sm:$0xff]  ;;  %v23_v8 = vld [vmem:[#allocation2 + $0x8] sm:$0xff] }
   0x9   :  { %138 = vmatmul.mubr.msk.bf16.vlgmr.msra.gmra.mrb[0].mxu0 %vm43_vm2, %v26_v5 }
  0xdc   :  { %v81_v7 = vpop.f32.mrb[0].mxu0 }
  0xdd   :  { %v88_v9 = vadd.f32 %v81_v7, %v22_v6  ;;  %v139_v10 = vpop.f32.mrb[1].mxu0 }
  0xde   :  { %v84_v11 = vpop.f32.mrb[2].mxu0 }
  0xdf   :  { %91 = vst.msk [vmem:[#allocation2] sm:$0xff] %vm19_vm0, %v88_v9  ;;  %v89_v12 = vadd.f32 %v84_v11, %v23_v8  ;;  %v140_v13 = vpop.f32.mrb[3].mxu0 }
  0xe1   :  { %92 = vst.msk [vmem:[#allocation2 + $0x8] sm:$0xff] %vm19_vm0, %v89_v12 }
  0xe6   :  { %v96_v15 = vld [vmem:[#allocation2] sm:$0xff] }
  0xe7   :  { %v105_v16 = vadd.f32 %v125_v14, %v96_v15 }
  0xe8   :  { %v97_v17 = vld [vmem:[#allocation2 + $0x8] sm:$0xff] }
  0xe9   :  { %v128_v18 = vpack.c.bf16 %v105_v16, %v105_v16  ;;  %v106_v19 = vadd.f32 %v125_v14, %v97_v17 }
  0xeb   :  { %116 = vst.msk [vmem:[%s195_s3] sm:$0xf] %vm115_vm3, %v128_v18  ;;  %v129_v20 = vpack.c.bf16 %v106_v19, %v106_v19 }
  0xed   :  { %117 = vst.msk [vmem:[%s195_s3 + $0x4] sm:$0xf] %vm115_vm3, %v129_v20 }

// kernel: sequential_attention_forward.14
= control target key start
LH: loop header
LB: loop body
LE: loop exit
PB: predicated region body
PF: predicated region fallthrough
CT: control target
= control target key end

     0   :  { %s871_s9 = smov 0   ;;  %s972_s0 = inlined_call_operand.vmem [shape: bf16[2,8,96], index: 0, kind: input, shape index: {}]   ;;  %s973_s1 = inlined_call_operand.vmem [shape: f32[2,1,8], index: 1, kind: input, shape index: {}]   ;;  %s974_s2 = inlined_call_operand.vmem [shape: bf16[2,8,32], index: 2, kind: output, shape index: {}]  }
   0x1 LB: > { %s702_s10 = sadd.s32 4294967295, %s838_s9   ;;  %p706_p0 = scmp.ge.s32.totalorder %s838_s9, 1  ;;  %s838_s9 = sphi %s871_s9, %s12_s9  }
   0x2   : > { %p119_p1 = scmp.lt.s32.totalorder %s838_s9, 3 }
   0x4   : > { %p120_p2 = pnand %p706_p0, %p119_p1 }
   0x5   : > { %p142_p3 = scmp.lt.s32.totalorder (!%p120_p2), %s702_s10, 1  ;;  %v840_v0 = vmov (!%p120_p2), 0.0   ;;  %vm841_vm0 = vmmov (!%p120_p2), 0   ;;  %s842_s15 = smov (!%p120_p2), 96   ;;  %vm167_vm1 = vcmask (!%p120_p2), 64512   ;;  %vm229_vm2 = vcmask (!%p120_p2), 1043456  }
   0x6   : > { %123 = sbr.rel (%p120_p2) target bundleno = 1254 (0x4e6), region = 28  ;;  %740 = vmatprep.subr.bf16.mxu0 (!%p120_p2), %v840_v0  ;;  %742 = vmatprep.mubr.msk.bf16.mxu0 (!%p120_p2), %vm841_vm0, %v840_v0  ;;  %s843_s16 = smov (!%p120_p2), 64   ;;  %vm394_vm3 = vcmask (!%p120_p2), 130112   ;;  %vm514_vm4 = vcmask (!%p120_p2), 195712   ;;  %vm634_vm5 = vcmask (!%p120_p2), 261312   ;;  %vm638_vm6 = vcmask (!%p120_p2), 257024  }
   0x7   : > { %746 = vmatprep.subr.bf16.mxu1 (!%p120_p2), %v840_v0  ;;  %748 = vmatprep.mubr.msk.bf16.mxu1 (!%p120_p2), %vm841_vm0, %v840_v0  ;;  %s844_s17 = smov (!%p120_p2), 88   ;;  %s845_s18 = smov (!%p120_p2), 120  }
   0x8   : > { %s846_s19 = smov (!%p120_p2), 80   ;;  %s847_s20 = smov (!%p120_p2), 112  }
   0x9   : > { %s848_s21 = smov (!%p120_p2), 72   ;;  %s849_s22 = smov (!%p120_p2), 104  }
   0xa   : > { %s850_s26 = smov (!%p120_p2), 56   ;;  %s851_s27 = smov (!%p120_p2), 48  }
   0xb   : > { %s852_s28 = smov (!%p120_p2), 40   ;;  %s853_s29 = smov (!%p120_p2), 8  }
   0xc   : > { %s854_s30 = smov (!%p120_p2), 16   ;;  %s855_s3 = smov (!%p120_p2), 24  }
   0xd   : > { %s976_s10 = smov (!%p142_p3, %s702_s10), 1 }
   0xe   : > { %s707_s11 = sshll.u32 %s976_s10, 2  ;;  %s148_s25 = scalar_lea.vmem %s973_s1, %s976_s10 }
   0xf   : > { %s145_s14 = scalar_lea.vmem %s972_s0, %s707_s11  ;;  %v910_v8 = vld [vmem:[%s148_s25] ss:$0 sm:$0xff]  ;;  %s152_s6 = scalar_lea.vmem %s974_s2, %s707_s11 }
  0x10   : > { %v155_v1 = vld [vmem:[%s145_s14] sm:$0xf] }
  0x11   : > { %v710_v2 = vcombine.low %v155_v1, %v155_v1  ;;  %v813_v5 = vld [vmem:[%s145_s14] ss:$0 sps:$4 sm:$0xff]  }
  0x12   : > { %v898_v6 = vld [vmem:[%s145_s14] ss:$0 sps:$4 sm:$0xff]  }
  0x13   : > { %165 = vrot.lane.b32.xlu0 %v710_v2, %s842_s15  ;;  %224 = vrot.lane.b32.xlu1 %v710_v2, %s843_s16  ;;  %v902_v7 = vld [vmem:[%s145_s14] ss:$0 sps:$4 sm:$0xff]  }
  0x17   : > { %282 = vrot.lane.b32.xlu1 %v813_v5, %s844_s17 }
  0x1b   : > { %280 = vrot.lane.b32.xlu1 %v813_v5, %s845_s18 }
  0x1f   : > { %402 = vrot.lane.b32.xlu1 %v898_v6, %s846_s19 }
  0x23   : > { %400 = vrot.lane.b32.xlu1 %v898_v6, %s847_s20 }
  0x27   : > { %522 = vrot.lane.b32.xlu1 %v902_v7, %s848_s21 }
  0x2b   : > { %520 = vrot.lane.b32.xlu1 %v902_v7, %s849_s22 }
  0x85   : > { %v166_v3 = vpop.permute.xlu0 %165  ;;  %v225_v15 = vpop.permute.xlu1 %224 }
  0x86   : > { %v172_v4 = vsel %vm167_vm1, %v166_v3, 0  ;;  %v231_v16 = vsel %vm229_vm2, %v225_v15, 0 }
  0x87   : > { %741 = vmatpush3.bf16.xpose.msra.mxu0 %v172_v4  ;;  %747 = vmatpush3.bf16.msra.mxu1 %v231_v16 }
  0x88   : > { %758 = vmatprep.subr.bf16.mxu0 %v840_v0  ;;  %752 = vmatprep.subr.bf16.mxu1 %v840_v0 }
  0x89   : > { %v283_v20 = vpop.permute.xlu1 %282 }
  0x8a   : > { %v288_v23 = vsel %vm167_vm1, %v283_v20, 0 }
  0x8d   : > { %v281_v21 = vpop.permute.xlu1 %280 }
  0x8e   : > { %743 = vmatmul.mubr.msk.bf16.vlgmr.msra.gmra.mrb[0].mxu0 %vm167_vm1, %v155_v1 }
  0x8f   : > { %760 = vmatprep.mubr.msk.bf16.mxu0 %vm841_vm0, %v840_v0 }
  0x91   : > { %v403_v25 = vpop.permute.xlu1 %402 }
  0x92   : > { %v408_v27 = vsel %vm167_vm1, %v403_v25, 0 }
  0x95   : > { %v401_v26 = vpop.permute.xlu1 %400 }
  0x99   : > { %v523_v28 = vpop.permute.xlu1 %522 }
  0x9a   : > { %v528_v29 = vsel %vm167_vm1, %v523_v28, 0 }
  0x9d   : > { %v521_v30 = vpop.permute.xlu1 %520 }
 0x161   : > { %v208_v9 = vpop.f32.mrb[0].mxu0 }
 0x162   : > { %v209_v10 = vadd.f32 %v910_v8, %v208_v9  ;;  %v744_v11 = vpop.f32.mrb[1].mxu0 }
 0x163   : > { %v211_v12 = vpop.f32.mrb[2].mxu0 }
 0x164   : > { %v745_v13 = vpop.f32.mrb[3].mxu0  ;;  %v214_v14 = vsel %vm167_vm1, %v209_v10, -inf }
 0x165   : > { %215 = vmax.xlane.f32.xlu0 %v214_v14 }
 0x17b   : > { %340 = vrot.lane.b32.xlu0 %v813_v5, %s850_s26 }
 0x1f2   : > { %v216_v17 = vpop.xlane.xlu0 %215 }
 0x1f3   : > { %v217_v18 = vsub.f32 %v209_v10, %v216_v17 }
 0x1f5   : > { %v218_v19 = vmul.f32 1.442695, %v217_v18 }
 0x1f6   : > { %v341_v31 = vpop.permute.xlu0 %340 }
 0x1f7   : > { %816 = vpow2.f32 %v218_v19  ;;  %v346_v32 = vsel %vm229_vm2, %v341_v31, 0 }
 0x1f8   : > { %759 = vmatpush3.bf16.msra.mxu0 %v346_v32 }
 0x1f9   : > { %770 = vmatprep.subr.bf16.mxu0 %v840_v0 }
 0x201   : > { %v916_v22 = vpop.eup %816 }
 0x202   : > { %v223_v24 = vpack.c.bf16 %v916_v22, %v916_v22  ;;  %v220_v14 = vsel %vm167_vm1, %v916_v22, 0.0 }
 0x204   : > { %749 = vmatmul.mubr.msk.bf16.vlgmr.msra.gmra.mrb[0].mxu1 %vm167_vm1, %v223_v24 }
 0x205   : > { %753 = vmatpush3.bf16.xpose.msra.mxu1 %v288_v23  ;;  %754 = vmatprep.mubr.msk.bf16.mxu1 %vm841_vm0, %v840_v0 }
 0x206   : > { %764 = vmatprep.subr.bf16.mxu1 %v840_v0 }
 0x20c   : > { %755 = vmatmul.mubr.msk.bf16.vlgmr.msra.gmra.mrb[4].mxu1 %vm167_vm1, %v281_v21 }
 0x20d   : > { %765 = vmatpush3.bf16.xpose.msra.mxu1 %v408_v27  ;;  %766 = vmatprep.mubr.msk.bf16.mxu1 %vm841_vm0, %v840_v0 }
 0x20e   : > { %776 = vmatprep.subr.bf16.mxu1 %v840_v0 }
 0x214   : > { %767 = vmatmul.mubr.msk.bf16.vlgmr.msra.gmra.mrb[8].mxu1 %vm167_vm1, %v401_v26 }
 0x215   : > { %777 = vmatpush3.bf16.xpose.msra.mxu1 %v528_v29  ;;  %778 = vmatprep.mubr.msk.bf16.mxu1 %vm841_vm0, %v840_v0 }
 0x21c   : > { %779 = vmatmul.mubr.msk.bf16.vlgmr.msra.gmra.mrb[12].mxu1 %vm167_vm1, %v521_v30 }
 0x2d7   : > { %v937_v33 = vpop.f32.mrb[0].mxu1 }
 0x2d8   : > { %v750_v34 = vpop.f32.mrb[1].mxu1 }
 0x2d9   : > { %v270_v35 = vpop.f32.mrb[2].mxu1 }
 0x2da   : > { %v751_v36 = vpop.f32.mrb[3].mxu1 }
 0x2df   : > { %v324_v37 = vpop.f32.mrb[4].mxu1 }
 0x2e0   : > { %v325_v38 = vadd.f32 %v910_v8, %v324_v37  ;;  %v756_v39 = vpop.f32.mrb[5].mxu1 }
 0x2e1   : > { %v327_v40 = vpop.f32.mrb[6].mxu1 }
 0x2e2   : > { %v757_v41 = vpop.f32.mrb[7].mxu1  ;;  %v330_v42 = vsel %vm167_vm1, %v325_v38, -inf }
 0x2e3   : > { %331 = vmax.xlane.f32.xlu1 %v330_v42 }
 0x2e7   : > { %v444_v43 = vpop.f32.mrb[8].mxu1 }
 0x2e8   : > { %v445_v44 = vadd.f32 %v910_v8, %v444_v43  ;;  %v768_v45 = vpop.f32.mrb[9].mxu1 }
 0x2e9   : > { %v447_v46 = vpop.f32.mrb[10].mxu1 }
 0x2ea   : > { %v769_v47 = vpop.f32.mrb[11].mxu1  ;;  %v450_v48 = vsel %vm167_vm1, %v445_v44, -inf }
 0x2eb   : > { %451 = vmax.xlane.f32.xlu0 %v450_v48 }
 0x2ef   : > { %v564_v49 = vpop.f32.mrb[12].mxu1 }
 0x2f0   : > { %v565_v50 = vadd.f32 %v910_v8, %v564_v49  ;;  %v780_v51 = vpop.f32.mrb[13].mxu1 }
 0x2f1   : > { %v567_v52 = vpop.f32.mrb[14].mxu1 }
 0x2f2   : > { %v781_v53 = vpop.f32.mrb[15].mxu1  ;;  %v570_v54 = vsel %vm167_vm1, %v565_v50, -inf }
 0x2f3   : > { %571 = vmax.xlane.f32.xlu0 %v570_v54 }
 0x2f4   : > { %460 = vrot.lane.b32.xlu1 %v898_v6, %s851_s27 }
 0x309   : > { %580 = vrot.lane.b32.xlu0 %v902_v7, %s852_s28 }
 0x370   : > { %v332_v55 = vpop.xlane.xlu1 %331 }
 0x371   : > { %v333_v56 = vsub.f32 %v325_v38, %v332_v55 }
 0x373   : > { %v334_v57 = vmul.f32 1.442695, %v333_v56 }
 0x374   : > { %v461_v61 = vpop.permute.xlu1 %460 }
 0x375   : > { %818 = vpow2.f32 %v334_v57  ;;  %v466_v63 = vsel %vm229_vm2, %v461_v61, 0 }
 0x378   : > { %v452_v58 = vpop.xlane.xlu0 %451 }
 0x379   : > { %v453_v59 = vsub.f32 %v445_v44, %v452_v58 }
 0x37b   : > { %v454_v60 = vmul.f32 1.442695, %v453_v59 }
 0x37d   : > { %820 = vpow2.f32 %v454_v60 }
 0x37f   : > { %v819_v62 = vpop.eup %818 }
 0x380   : > { %v572_v1 = vpop.xlane.xlu0 %571  ;;  %v336_v2 = vsel %vm167_vm1, %v819_v62, 0.0  ;;  %v339_v3 = vpack.c.bf16 %v819_v62, %v819_v62 }
 0x381   : > { %v573_v4 = vsub.f32 %v565_v50, %v572_v1  ;;  %337 = vadd.xlane.f32.xlu0 %v336_v2 }
 0x382   : > { %761 = vmatmul.mubr.msk.bf16.vlgmr.msra.gmra.mrb[4].mxu0 %vm167_vm1, %v339_v3 }
 0x383   : > { %v574_v5 = vmul.f32 1.442695, %v573_v4  ;;  %771 = vmatpush3.bf16.msra.mxu0 %v466_v63  ;;  %772 = vmatprep.mubr.msk.bf16.mxu0 %vm841_vm0, %v840_v0 }
 0x384   : > { %782 = vmatprep.subr.bf16.mxu0 %v840_v0  ;;  %v581_v6 = vpop.permute.xlu0 %580 }
 0x385   : > { %822 = vpow2.f32 %v574_v5  ;;  %v586_v8 = vsel %vm229_vm2, %v581_v6, 0 }
 0x387   : > { %v821_v7 = vpop.eup %820 }
 0x388   : > { %v456_v9 = vsel %vm167_vm1, %v821_v7, 0.0  ;;  %v459_v10 = vpack.c.bf16 %v821_v7, %v821_v7 }
 0x389   : > { %457 = vadd.xlane.f32.xlu1 %v456_v9 }
 0x38a   : > { %773 = vmatmul.mubr.msk.bf16.vlgmr.msra.gmra.mrb[8].mxu0 %vm167_vm1, %v459_v10 }
 0x38b   : > { %783 = vmatpush3.bf16.msra.mxu0 %v586_v8  ;;  %784 = vmatprep.mubr.msk.bf16.mxu0 %vm841_vm0, %v840_v0 }
 0x38f   : > { %v823_v11 = vpop.eup %822 }
 0x390   : > { %v576_v12 = vsel %vm167_vm1, %v823_v11, 0.0  ;;  %v579_v13 = vpack.c.bf16 %v823_v11, %v823_v11 }
 0x391   : > { %577 = vadd.xlane.f32.xlu0 %v576_v12 }
 0x392   : > { %785 = vmatmul.mubr.msk.bf16.vlgmr.msra.gmra.mrb[12].mxu0 %vm167_vm1, %v579_v13 }
 0x395   : > { %221 = vadd.xlane.f32.xlu0 %v220_v14 }
 0x40e   : > { %v338_v15 = vpop.xlane.xlu0 %337 }
 0x416   : > { %v458_v0 = vpop.xlane.xlu1 %457 }
 0x41e   : > { %v578_v16 = vpop.xlane.xlu0 %577 }
 0x422   : > { %v222_v17 = vpop.xlane.xlu0 %221 }
 0x423   : > { %824 = vrcp.f32 %v222_v17 }
 0x424   : > { %826 = vrcp.f32 %v338_v15 }
 0x425   : > { %828 = vrcp.f32 %v458_v0 }
 0x426   : > { %830 = vrcp.f32 %v578_v16 }
 0x42d   : > { %v825_v18 = vpop.eup %824 }
 0x42e   : > { %v274_v19 = vmul.f32 %v825_v18, %v937_v33  ;;  %v827_v20 = vpop.eup %826 }
 0x42f   : > { %v829_v26 = vpop.eup %828 }
 0x430   : > { %275 = vst.msk [vmem:[#allocation2] sm:$0xff] %vm167_vm1, %v274_v19  ;;  %v831_v32 = vpop.eup %830 }
 0x455   : > { %v382_v21 = vpop.f32.mrb[4].mxu0 }
 0x456   : > { %v389_v23 = vmul.f32 %v827_v20, %v382_v21  ;;  %v762_v24 = vpop.f32.mrb[5].mxu0 }
 0x457   : > { %v385_v25 = vpop.f32.mrb[6].mxu0 }
 0x458   : > { %391 = vrot.lane.b32.xlu0 %v389_v23, %s853_s29  ;;  %v763_v22 = vpop.f32.mrb[7].mxu0 }
 0x45d   : > { %v502_v27 = vpop.f32.mrb[8].mxu0 }
 0x45e   : > { %v509_v28 = vmul.f32 %v829_v26, %v502_v27  ;;  %v774_v29 = vpop.f32.mrb[9].mxu0 }
 0x45f   : > { %v505_v30 = vpop.f32.mrb[10].mxu0 }
 0x460   : > { %511 = vrot.lane.b32.xlu1 %v509_v28, %s854_s30  ;;  %v775_v31 = vpop.f32.mrb[11].mxu0 }
 0x465   : > { %v622_v33 = vpop.f32.mrb[12].mxu0 }
 0x466   : > { %v629_v34 = vmul.f32 %v831_v32, %v622_v33  ;;  %v786_v35 = vpop.f32.mrb[13].mxu0 }
 0x467   : > { %v625_v36 = vpop.f32.mrb[14].mxu0 }
 0x468   : > { %631 = vrot.lane.b32.xlu0 %v629_v34, %s855_s3  ;;  %v787_v37 = vpop.f32.mrb[15].mxu0 }
 0x4ca   : > { %v392_v38 = vpop.permute.xlu0 %391 }
 0x4cb   : > { %395 = vst.msk [vmem:[#allocation2] sm:$0xff] %vm394_vm3, %v392_v38 }
 0x4d2   : > { %v512_v39 = vpop.permute.xlu1 %511 }
 0x4d3   : > { %515 = vst.msk [vmem:[#allocation2] sm:$0xff] %vm514_vm4, %v512_v39 }
 0x4da   : > { %v632_v40 = vpop.permute.xlu0 %631 }
 0x4db   : > { %635 = vst.msk [vmem:[#allocation2] sm:$0xff] %vm634_vm5, %v632_v40 }
 0x4e2   : > { %v636_v41 = vld [vmem:[#allocation2] sm:$0xff] }
 0x4e3   : > { %v637_v42 = vpack.c.bf16 %v636_v41, %v636_v41 }
 0x4e5   : > { %639 = vst.msk [vmem:[%s152_s6] sm:$0xf] %vm638_vm6, %v637_v42 }
 0x4e6 PF: > { %s12_s9 = sadd.s32 1, %s838_s9  }
 0x4e7   : > { %p9_p4 = scmp.ge.s32.totalorder %s12_s9, 4  }
 0x4e9   :  { %11 = sbr.rel (!%p9_p4) target bundleno = 1 (0x1), region = 61 }

// kernel: sequential_attention_forward.15
= control target key start
LH: loop header
LB: loop body
LE: loop exit
PB: predicated region body
PF: predicated region fallthrough
CT: control target
= control target key end

     0   :  { %vm31_vm0 = vcmask 261120   ;;  %v234_v0 = vmov 0.0   ;;  %vm235_vm1 = vmmov 0   ;;  %v236_v23 = vmov 0   ;;  %s322_s1 = inlined_call_operand.vmem [shape: bf16[32,32], index: 1, kind: input, shape index: {}]   ;;  %s323_s0 = inlined_call_operand.vmem [shape: bf16[16,32], index: 0, kind: input, shape index: {}]   ;;  %s324_s2 = inlined_call_operand.vmem [shape: f32[1,32], index: 2, kind: input, shape index: {}]   ;;  %s325_s3 = inlined_call_operand.vmem [shape: f32[16,32], index: 3, kind: input, shape index: {}]   ;;  %s326_s6 = inlined_call_operand.vmem [shape: f32[16,1], index: 6, kind: input, shape index: {}]   ;;  %s327_s4 = inlined_call_operand.vmem [shape: f32[1,32], index: 4, kind: input, shape index: {}]   ;;  %s328_s5 = inlined_call_operand.vmem [shape: f32[1,32], index: 5, kind: input, shape index: {}]   ;;  %s329_s7 = inlined_call_operand.vmem [shape: bf16[16,32], index: 7, kind: output, shape index: {}]  }
   0x1   :  { %214 = vmatprep.subr.bf16.mxu0 %v234_v0  ;;  %v227_v1 = vld [vmem:[%s322_s1] sm:$0xff]   ;;  %218 = vmatprep.mubr.msk.bf16.mxu0 %vm235_vm1, %v234_v0  ;;  %32 = vst.msk [vmem:[#allocation2] sm:$0xff] %vm31_vm0, %v234_v0  ;;  %33 = vst.msk [vmem:[#allocation2 + $0x8] sm:$0xff] %vm31_vm0, %v234_v0  ;;  %v228_v2 = vld [vmem:[%s322_s1 + $0x8] sm:$0xff]   ;;  %vm193_vm2 = vcmask 257024  }
   0x2   :  { %215 = vmatpush3.bf16.msra.mxu0 %v227_v1  ;;  %v229_v3 = vld [vmem:[%s323_s0] sm:$0xff]   ;;  %v123_v17 = vld [vmem:[%s325_s3 + $0x8] sm:$0xff]  ;;  %225 = vset.pattern.permute.xlu0 %v236_v23 }
   0x3   :  { %216 = vmatprep.subr.bf16.mxu0 %v234_v0  ;;  %v204_v12 = vld [vmem:[%s324_s2] ss:$0 sm:$0xff]  ;;  %226 = vset.pattern.permute.xlu1 %v236_v23  ;;  %v172_v35 = vld [vmem:[%s326_s6 + $0x8] sm:$0xff] }
   0x4   :  { %v122_v14 = vld [vmem:[%s325_s3] sm:$0xff] }
   0x5   :  { %v171_v24 = vld [vmem:[%s326_s6] sm:$0xff] }
   0x6   :  { %217 = vmatpush3.bf16.msra.mxu0 %v228_v2  ;;  %v205_v43 = vld [vmem:[%s327_s4] ss:$0 sm:$0xff] }
   0x7   :  { %v206_v45 = vld [vmem:[%s328_s5] ss:$0 sm:$0xff] }
   0x8   :  { %v34_v4 = vld [vmem:[#allocation2] sm:$0xff]  ;;  %v35_v6 = vld [vmem:[#allocation2 + $0x8] sm:$0xff] }
   0x9   :  { %219 = vmatmul.mubr.msk.bf16.vlgmr.msra.gmra.mrb[0].mxu0 %vm31_vm0, %v229_v3 }
  0xdc   :  { %v97_v5 = vpop.f32.mrb[0].mxu0 }
  0xdd   :  { %v104_v7 = vadd.f32 %v97_v5, %v34_v4  ;;  %v220_v8 = vpop.f32.mrb[1].mxu0 }
  0xde   :  { %v100_v9 = vpop.f32.mrb[2].mxu0 }
  0xdf   :  { %106 = vst.msk [vmem:[#allocation2] sm:$0xff] %vm31_vm0, %v104_v7  ;;  %v105_v10 = vadd.f32 %v100_v9, %v35_v6  ;;  %v221_v11 = vpop.f32.mrb[3].mxu0 }
  0xe1   :  { %107 = vst.msk [vmem:[#allocation2 + $0x8] sm:$0xff] %vm31_vm0, %v105_v10 }
  0xe6   :  { %v111_v13 = vld [vmem:[#allocation2] sm:$0xff] }
  0xe7   :  { %v120_v15 = vadd.f32 %v204_v12, %v111_v13 }
  0xe8   :  { %v112_v16 = vld [vmem:[#allocation2 + $0x8] sm:$0xff] }
  0xe9   :  { %v124_v18 = vadd.f32 %v122_v14, %v120_v15  ;;  %v121_v19 = vadd.f32 %v204_v12, %v112_v16 }
  0xeb   :  { %v126_v20 = vsel %vm31_vm0, %v124_v18, 0.0  ;;  %v125_v21 = vadd.f32 %v123_v17, %v121_v19 }
  0xec   :  { %127 = vadd.xlane.f32.xlu0 %v126_v20 }
  0xed   :  { %v129_v22 = vsel %vm31_vm0, %v125_v21, 0.0 }
  0xf0   :  { %130 = vadd.xlane.f32.xlu0 %v129_v22 }
 0x106   :  { %175 = vperm.xlu0 %225, %v171_v24  }
 0x179   :  { %v128_v25 = vpop.xlane.xlu0 %127 }
 0x17a   :  { %v133_v26 = vmul.f32 0.03125, %v128_v25 }
 0x17c   :  { %v135_v27 = vsub.f32 %v124_v18, %v133_v26 }
 0x17d   :  { %v131_v28 = vpop.xlane.xlu0 %130 }
 0x17e   :  { %v134_v29 = vmul.f32 0.03125, %v131_v28  ;;  %v137_v30 = vmul.f32 %v135_v27, %v135_v27 }
 0x180   :  { %v136_v31 = vsub.f32 %v125_v21, %v134_v29  ;;  %v139_v32 = vsel %vm31_vm0, %v137_v30, 0.0 }
 0x181   :  { %140 = vadd.xlane.f32.xlu1 %v139_v32 }
 0x182   :  { %v138_v33 = vmul.f32 %v136_v31, %v136_v31 }
 0x184   :  { %v142_v34 = vsel %vm31_vm0, %v138_v33, 0.0 }
 0x185   :  { %143 = vadd.xlane.f32.xlu1 %v142_v34  ;;  %v176_v48 = vpop.permute.xlu0 %175 }
 0x196   :  { %180 = vperm.xlu1 %226, %v172_v35  }
 0x20e   :  { %v141_v36 = vpop.xlane.xlu1 %140 }
 0x20f   :  { %v145_v37 = vmul.f32 0.03125, %v141_v36 }
 0x211   :  { %v147_v38 = vadd.f32 1e-05, %v145_v37 }
 0x212   :  { %v144_v39 = vpop.xlane.xlu1 %143 }
 0x213   :  { %230 = vrsqrt.f32 %v147_v38  ;;  %v146_v40 = vmul.f32 0.03125, %v144_v39 }
 0x215   :  { %v148_v41 = vadd.f32 1e-05, %v146_v40 }
 0x216   :  { %v181_v53 = vpop.permute.xlu1 %180 }
 0x217   :  { %232 = vrsqrt.f32 %v148_v41 }
 0x21d   :  { %v231_v42 = vpop.eup %230 }
 0x21e   :  { %v151_v44 = vmul.f32 %v231_v42, %v135_v27 }
 0x220   :  { %v160_v46 = vmul.f32 %v205_v43, %v151_v44 }
 0x221   :  { %v233_v47 = vpop.eup %232 }
 0x222   :  { %v169_v49 = vadd.f32 %v206_v45, %v160_v46  ;;  %v152_v50 = vmul.f32 %v233_v47, %v136_v31 }
 0x224   :  { %v183_v51 = vmul.f32 %v176_v48, %v169_v49  ;;  %v161_v52 = vmul.f32 %v205_v43, %v152_v50 }
 0x226   :  { %v209_v54 = vpack.c.bf16 %v183_v51, %v183_v51  ;;  %v170_v55 = vadd.f32 %v206_v45, %v161_v52 }
 0x228   :  { %194 = vst.msk [vmem:[%s329_s7] sm:$0xf] %vm193_vm2, %v209_v54  ;;  %v184_v56 = vmul.f32 %v181_v53, %v170_v55 }
 0x22a   :  { %v210_v57 = vpack.c.bf16 %v184_v56, %v184_v56 }
 0x22c   :  { %195 = vst.msk [vmem:[%s329_s7 + $0x4] sm:$0xf] %vm193_vm2, %v210_v57 }

// kernel: sequential_attention_forward.16
= control target key start
LH: loop header
LB: loop body
LE: loop exit
PB: predicated region body
PF: predicated region fallthrough
CT: control target
= control target key end

     0   :  { %vm19_vm0 = vcmask 261120   ;;  %v150_v0 = vmov 0.0   ;;  %vm151_vm1 = vmmov 0   ;;  %vm118_vm2 = vcmask 257024   ;;  %s195_s1 = inlined_call_operand.vmem [shape: bf16[32,32], index: 1, kind: input, shape index: {}]   ;;  %s196_s0 = inlined_call_operand.vmem [shape: bf16[16,32], index: 0, kind: input, shape index: {}]   ;;  %s197_s2 = inlined_call_operand.vmem [shape: f32[1,32], index: 2, kind: input, shape index: {}]   ;;  %s198_s3 = inlined_call_operand.vmem [shape: bf16[16,32], index: 3, kind: output, shape index: {}]  }
   0x1   :  { %137 = vmatprep.subr.bf16.mxu0 %v150_v0  ;;  %v147_v1 = vld [vmem:[%s195_s1] sm:$0xff]   ;;  %141 = vmatprep.mubr.msk.bf16.mxu0 %vm151_vm1, %v150_v0  ;;  %20 = vst.msk [vmem:[#allocation2] sm:$0xff] %vm19_vm0, %v150_v0  ;;  %21 = vst.msk [vmem:[#allocation2 + $0x8] sm:$0xff] %vm19_vm0, %v150_v0  ;;  %v148_v2 = vld [vmem:[%s195_s1 + $0x8] sm:$0xff]  }
   0x2   :  { %138 = vmatpush3.bf16.msra.mxu0 %v147_v1  ;;  %v149_v3 = vld [vmem:[%s196_s0] sm:$0xff]  }
   0x3   :  { %139 = vmatprep.subr.bf16.mxu0 %v150_v0  ;;  %v129_v12 = vld [vmem:[%s197_s2] ss:$0 sm:$0xff] }
   0x6   :  { %140 = vmatpush3.bf16.msra.mxu0 %v148_v2 }
   0x8   :  { %v22_v4 = vld [vmem:[#allocation2] sm:$0xff]  ;;  %v23_v6 = vld [vmem:[#allocation2 + $0x8] sm:$0xff] }
   0x9   :  { %142 = vmatmul.mubr.msk.bf16.vlgmr.msra.gmra.mrb[0].mxu0 %vm19_vm0, %v149_v3 }
  0xdc   :  { %v85_v5 = vpop.f32.mrb[0].mxu0 }
  0xdd   :  { %v92_v7 = vadd.f32 %v85_v5, %v22_v4  ;;  %v143_v8 = vpop.f32.mrb[1].mxu0 }
  0xde   :  { %v88_v9 = vpop.f32.mrb[2].mxu0 }
  0xdf   :  { %94 = vst.msk [vmem:[#allocation2] sm:$0xff] %vm19_vm0, %v92_v7  ;;  %v93_v10 = vadd.f32 %v88_v9, %v23_v6  ;;  %v144_v11 = vpop.f32.mrb[3].mxu0 }
  0xe1   :  { %95 = vst.msk [vmem:[#allocation2 + $0x8] sm:$0xff] %vm19_vm0, %v93_v10 }
  0xe6   :  { %v99_v13 = vld [vmem:[#allocation2] sm:$0xff] }
  0xe7   :  { %v108_v14 = vadd.f32 %v129_v12, %v99_v13 }
  0xe8   :  { %v100_v15 = vld [vmem:[#allocation2 + $0x8] sm:$0xff] }
  0xe9   :  { %v132_v16 = vpack.c.bf16 %v108_v14, %v108_v14  ;;  %v109_v17 = vadd.f32 %v129_v12, %v100_v15 }
  0xeb   :  { %119 = vst.msk [vmem:[%s198_s3] sm:$0xf] %vm118_vm2, %v132_v16  ;;  %v133_v18 = vpack.c.bf16 %v109_v17, %v109_v17 }
  0xed   :  { %120 = vst.msk [vmem:[%s198_s3 + $0x4] sm:$0xf] %vm118_vm2, %v133_v18 }

// kernel: sequential_attention_forward.24
= control target key start
LH: loop header
LB: loop body
LE: loop exit
PB: predicated region body
PF: predicated region fallthrough
CT: control target
= control target key end

     0   :  { %vm19_vm0 = vcmask 523264   ;;  %v153_v0 = vmov 0.0   ;;  %vm154_vm1 = vmmov 0   ;;  %vm47_vm2 = vcmask 261120   ;;  %s197_s1 = inlined_call_operand.vmem [shape: bf16[32,64], index: 1, kind: input, shape index: {}]   ;;  %s198_s0 = inlined_call_operand.vmem [shape: bf16[16,32], index: 0, kind: input, shape index: {}]   ;;  %s199_s2 = inlined_call_operand.vmem [shape: f32[1,64], index: 2, kind: input, shape index: {}]   ;;  %s200_s3 = inlined_call_operand.vmem [shape: bf16[16,64], index: 3, kind: output, shape index: {}]  }
   0x1   :  { %140 = vmatprep.subr.bf16.mxu0 %v153_v0  ;;  %v150_v1 = vld [vmem:[%s197_s1] sm:$0xff]   ;;  %144 = vmatprep.mubr.msk.bf16.mxu0 %vm154_vm1, %v153_v0  ;;  %20 = vst.msk [vmem:[#allocation2] sm:$0xff] %vm19_vm0, %v153_v0  ;;  %21 = vst.msk [vmem:[#allocation2 + $0x8] sm:$0xff] %vm19_vm0, %v153_v0  ;;  %v151_v2 = vld [vmem:[%s197_s1 + $0x8] sm:$0xff]   ;;  %vm121_vm3 = vcmask 519168  }
   0x2   :  { %141 = vmatpush3.bf16.msra.mxu0 %v150_v1  ;;  %v152_v3 = vld [vmem:[%s198_s0] sm:$0xff]  }
   0x3   :  { %142 = vmatprep.subr.bf16.mxu0 %v153_v0  ;;  %v132_v12 = vld [vmem:[%s199_s2] ss:$0 sm:$0xff] }
   0x6   :  { %143 = vmatpush3.bf16.msra.mxu0 %v151_v2 }
   0x8   :  { %v22_v4 = vld [vmem:[#allocation2] sm:$0xff]  ;;  %v23_v6 = vld [vmem:[#allocation2 + $0x8] sm:$0xff] }
   0x9   :  { %145 = vmatmul.mubr.msk.bf16.vlgmr.msra.gmra.mrb[0].mxu0 %vm47_vm2, %v152_v3 }
  0xdc   :  { %v85_v5 = vpop.f32.mrb[0].mxu0 }
  0xdd   :  { %v92_v7 = vadd.f32 %v85_v5, %v22_v4  ;;  %v146_v8 = vpop.f32.mrb[1].mxu0 }
  0xde   :  { %v88_v9 = vpop.f32.mrb[2].mxu0 }
  0xdf   :  { %95 = vst.msk [vmem:[#allocation2] sm:$0xff] %vm19_vm0, %v92_v7  ;;  %v93_v10 = vadd.f32 %v88_v9, %v23_v6  ;;  %v147_v11 = vpop.f32.mrb[3].mxu0 }
  0xe1   :  { %96 = vst.msk [vmem:[#allocation2 + $0x8] sm:$0xff] %vm19_vm0, %v93_v10 }
  0xe6   :  { %v100_v13 = vld [vmem:[#allocation2] sm:$0xff] }
  0xe7   :  { %v109_v14 = vadd.f32 %v132_v12, %v100_v13 }
  0xe8   :  { %v101_v15 = vld [vmem:[#allocation2 + $0x8] sm:$0xff] }
  0xe9   :  { %v111_v16 = vmax.f32 %v109_v14, 0.0  ;;  %v110_v17 = vadd.f32 %v132_v12, %v101_v15 }
  0xeb   :  { %v135_v18 = vpack.c.bf16 %v111_v16, %v111_v16  ;;  %v112_v19 = vmax.f32 %v110_v17, 0.0 }
  0xed   :  { %122 = vst.msk [vmem:[%s200_s3] sm:$0xf] %vm121_vm3, %v135_v18  ;;  %v136_v20 = vpack.c.bf16 %v112_v19, %v112_v19 }
  0xef   :  { %123 = vst.msk [vmem:[%s200_s3 + $0x4] sm:$0xf] %vm121_vm3, %v136_v20 }

// kernel: sequential_attention_forward.19
= control target key start
LH: loop header
LB: loop body
LE: loop exit
PB: predicated region body
PF: predicated region fallthrough
CT: control target
= control target key end

     0   :  { %vm31_vm0 = vcmask 261120   ;;  %v240_v0 = vmov 0.0   ;;  %vm241_vm1 = vmmov 0   ;;  %v242_v24 = vmov 0   ;;  %s325_s1 = inlined_call_operand.vmem [shape: bf16[32,32], index: 1, kind: input, shape index: {}]   ;;  %s326_s0 = inlined_call_operand.vmem [shape: bf16[16,32], index: 0, kind: input, shape index: {}]   ;;  %s327_s3 = inlined_call_operand.vmem [shape: bf16[16,32], index: 3, kind: input, shape index: {}]   ;;  %s328_s2 = inlined_call_operand.vmem [shape: f32[1,32], index: 2, kind: input, shape index: {}]   ;;  %s329_s6 = inlined_call_operand.vmem [shape: f32[16,1], index: 6, kind: input, shape index: {}]   ;;  %s330_s4 = inlined_call_operand.vmem [shape: f32[1,32], index: 4, kind: input, shape index: {}]   ;;  %s331_s5 = inlined_call_operand.vmem [shape: f32[1,32], index: 5, kind: input, shape index: {}]   ;;  %s332_s7 = inlined_call_operand.vmem [shape: bf16[16,32], index: 7, kind: output, shape index: {}]  }
   0x1   :  { %220 = vmatprep.subr.bf16.mxu0 %v240_v0  ;;  %v233_v1 = vld [vmem:[%s325_s1] sm:$0xff]   ;;  %224 = vmatprep.mubr.msk.bf16.mxu0 %vm241_vm1, %v240_v0  ;;  %32 = vst.msk [vmem:[#allocation2] sm:$0xff] %vm31_vm0, %v240_v0  ;;  %33 = vst.msk [vmem:[#allocation2 + $0x8] sm:$0xff] %vm31_vm0, %v240_v0  ;;  %v234_v2 = vld [vmem:[%s325_s1 + $0x8] sm:$0xff]   ;;  %vm195_vm2 = vcmask 257024  }
   0x2   :  { %221 = vmatpush3.bf16.msra.mxu0 %v233_v1  ;;  %v235_v3 = vld [vmem:[%s326_s0] sm:$0xff]   ;;  %231 = vset.pattern.permute.xlu0 %v242_v24  ;;  %v174_v36 = vld [vmem:[%s329_s6 + $0x8] sm:$0xff] }
   0x3   :  { %222 = vmatprep.subr.bf16.mxu0 %v240_v0  ;;  %v214_v12 = vld [vmem:[%s327_s3] sm:$0xff]   ;;  %232 = vset.pattern.permute.xlu1 %v242_v24 }
   0x4   :  { %v206_v13 = vld [vmem:[%s328_s2] ss:$0 sm:$0xff]  ;;  %v215_v14 = vunpack.c.l.bf16 %v214_v12  ;;  %v216_v17 = vunpack.c.h.bf16 %v214_v12 }
   0x5   :  { %v173_v25 = vld [vmem:[%s329_s6] sm:$0xff] }
   0x6   :  { %223 = vmatpush3.bf16.msra.mxu0 %v234_v2  ;;  %v207_v44 = vld [vmem:[%s330_s4] ss:$0 sm:$0xff] }
   0x7   :  { %v208_v46 = vld [vmem:[%s331_s5] ss:$0 sm:$0xff] }
   0x8   :  { %v34_v4 = vld [vmem:[#allocation2] sm:$0xff]  ;;  %v35_v6 = vld [vmem:[#allocation2 + $0x8] sm:$0xff] }
   0x9   :  { %225 = vmatmul.mubr.msk.bf16.vlgmr.msra.gmra.mrb[0].mxu0 %vm31_vm0, %v235_v3 }
  0xdc   :  { %v97_v5 = vpop.f32.mrb[0].mxu0 }
  0xdd   :  { %v104_v7 = vadd.f32 %v97_v5, %v34_v4  ;;  %v226_v8 = vpop.f32.mrb[1].mxu0 }
  0xde   :  { %v100_v9 = vpop.f32.mrb[2].mxu0 }
  0xdf   :  { %106 = vst.msk [vmem:[#allocation2] sm:$0xff] %vm31_vm0, %v104_v7  ;;  %v105_v10 = vadd.f32 %v100_v9, %v35_v6  ;;  %v227_v11 = vpop.f32.mrb[3].mxu0 }
  0xe1   :  { %107 = vst.msk [vmem:[#allocation2 + $0x8] sm:$0xff] %vm31_vm0, %v105_v10 }
  0xe6   :  { %v111_v15 = vld [vmem:[#allocation2] sm:$0xff] }
  0xe7   :  { %v120_v16 = vadd.f32 %v206_v13, %v111_v15 }
  0xe8   :  { %v112_v18 = vld [vmem:[#allocation2 + $0x8] sm:$0xff] }
  0xe9   :  { %v126_v19 = vadd.f32 %v215_v14, %v120_v16  ;;  %v121_v20 = vadd.f32 %v206_v13, %v112_v18 }
  0xeb   :  { %v128_v21 = vsel %vm31_vm0, %v126_v19, 0.0  ;;  %v127_v22 = vadd.f32 %v216_v17, %v121_v20 }
  0xec   :  { %129 = vadd.xlane.f32.xlu0 %v128_v21 }
  0xed   :  { %v131_v23 = vsel %vm31_vm0, %v127_v22, 0.0 }
  0xf0   :  { %132 = vadd.xlane.f32.xlu0 %v131_v23 }
 0x106   :  { %177 = vperm.xlu0 %231, %v173_v25  }
 0x179   :  { %v130_v26 = vpop.xlane.xlu0 %129 }
 0x17a   :  { %v135_v27 = vmul.f32 0.03125, %v130_v26 }
 0x17c   :  { %v137_v28 = vsub.f32 %v126_v19, %v135_v27 }
 0x17d   :  { %v133_v29 = vpop.xlane.xlu0 %132 }
 0x17e   :  { %v136_v30 = vmul.f32 0.03125, %v133_v29  ;;  %v139_v31 = vmul.f32 %v137_v28, %v137_v28 }
 0x180   :  { %v138_v32 = vsub.f32 %v127_v22, %v136_v30  ;;  %v141_v33 = vsel %vm31_vm0, %v139_v31, 0.0 }
 0x181   :  { %142 = vadd.xlane.f32.xlu1 %v141_v33 }
 0x182   :  { %v140_v34 = vmul.f32 %v138_v32, %v138_v32 }
 0x184   :  { %v144_v35 = vsel %vm31_vm0, %v140_v34, 0.0 }
 0x185   :  { %145 = vadd.xlane.f32.xlu1 %v144_v35  ;;  %v178_v49 = vpop.permute.xlu0 %177 }
 0x196   :  { %182 = vperm.xlu1 %232, %v174_v36  }
 0x20e   :  { %v143_v37 = vpop.xlane.xlu1 %142 }
 0x20f   :  { %v147_v38 = vmul.f32 0.03125, %v143_v37 }
 0x211   :  { %v149_v39 = vadd.f32 1e-05, %v147_v38 }
 0x212   :  { %v146_v40 = vpop.xlane.xlu1 %145 }
 0x213   :  { %236 = vrsqrt.f32 %v149_v39  ;;  %v148_v41 = vmul.f32 0.03125, %v146_v40 }
 0x215   :  { %v150_v42 = vadd.f32 1e-05, %v148_v41 }
 0x216   :  { %v183_v54 = vpop.permute.xlu1 %182 }
 0x217   :  { %238 = vrsqrt.f32 %v150_v42 }
 0x21d   :  { %v237_v43 = vpop.eup %236 }
 0x21e   :  { %v153_v45 = vmul.f32 %v237_v43, %v137_v28 }
 0x220   :  { %v162_v47 = vmul.f32 %v207_v44, %v153_v45 }
 0x221   :  { %v239_v48 = vpop.eup %238 }
 0x222   :  { %v171_v50 = vadd.f32 %v208_v46, %v162_v47  ;;  %v154_v51 = vmul.f32 %v239_v48, %v138_v32 }
 0x224   :  { %v185_v52 = vmul.f32 %v178_v49, %v171_v50  ;;  %v163_v53 = vmul.f32 %v207_v44, %v154_v51 }
 0x226   :  { %v211_v55 = vpack.c.bf16 %v185_v52, %v185_v52  ;;  %v172_v56 = vadd.f32 %v208_v46, %v163_v53 }
 0x228   :  { %196 = vst.msk [vmem:[%s332_s7] sm:$0xf] %vm195_vm2, %v211_v55  ;;  %v186_v57 = vmul.f32 %v183_v54, %v172_v56 }
 0x22a   :  { %v212_v58 = vpack.c.bf16 %v186_v57, %v186_v57 }
 0x22c   :  { %197 = vst.msk [vmem:[%s332_s7 + $0x4] sm:$0xf] %vm195_vm2, %v212_v58 }

// kernel: sequential_attention_forward.18
= control target key start
LH: loop header
LB: loop body
LE: loop exit
PB: predicated region body
PF: predicated region fallthrough
CT: control target
= control target key end

     0   :  { %s1582_s18 = smov 0   ;;  %s1792_s0 = inlined_call_operand.vmem [shape: bf16[2,8,32], index: 0, kind: input, shape index: {}]   ;;  %s1793_s1 = inlined_call_operand.vmem [shape: bf16[2,8,64], index: 1, kind: input, shape index: {}]   ;;  %s1794_s2 = inlined_call_operand.vmem [shape: bf16[4,32], index: 2, kind: input, shape index: {}]   ;;  %s1795_s3 = inlined_call_operand.vmem [shape: bf16[4,32], index: 3, kind: input, shape index: {}]   ;;  %s1796_s4 = inlined_call_operand.vmem [shape: f32[2,1,8], index: 4, kind: input, shape index: {}]   ;;  %s1797_s5 = inlined_call_operand.vmem [shape: bf16[2,8,32], index: 5, kind: output, shape index: {}]  }
   0x1 LB: > { %s1297_s19 = sadd.s32 4294967295, %s1538_s18   ;;  %p1301_p0 = scmp.ge.s32.totalorder %s1538_s18, 1  ;;  %s1538_s18 = sphi %s1582_s18, %s15_s18  }
   0x2   : > { %p203_p1 = scmp.lt.s32.totalorder %s1538_s18, 3 }
   0x4   : > { %p204_p2 = pnand %p1301_p0, %p203_p1 }
   0x5   : > { %p236_p3 = scmp.lt.s32.totalorder (!%p204_p2), %s1297_s19, 1  ;;  %v1540_v0 = vmov (!%p204_p2), 0.0   ;;  %vm1541_vm0 = vmmov (!%p204_p2), 0   ;;  %s1542_s22 = smov (!%p204_p2), 120   ;;  %vm261_vm1 = vcmask (!%p204_p2), 64512   ;;  %vm356_vm2 = vcmask (!%p204_p2), 31744  }
   0x6   : > { %207 = sbr.rel (%p204_p2) target bundleno = 945 (0x3b1), region = 40  ;;  %1369 = vmatprep.subr.bf16.mxu1 (!%p204_p2), %v1540_v0  ;;  %1371 = vmatprep.mubr.msk.bf16.mxu1 (!%p204_p2), %vm1541_vm0, %v1540_v0  ;;  %v1314_v1 = vld.sshfl [vmem:[%s1794_s2] sm:$0x3 pattern:$0x76325410] (!%p204_p2)  ;;  %s1543_s7 = smov (!%p204_p2), 112  }
   0x7   : > { %546 = vrot.lane.b32.xlu1 (!%p204_p2), %v1314_v1, %s1542_s22  ;;  %1381 = vmatprep.subr.bf16.mxu0 (!%p204_p2), %v1540_v0  ;;  %v308_v7 = vld [vmem:[%s1794_s2] sm:$0x3] (!%p204_p2)  ;;  %s1544_s8 = smov (!%p204_p2), 104   ;;  %s1545_s11 = smov (!%p204_p2), 96   ;;  %vm379_vm3 = vcmask (!%p204_p2), 1041408   ;;  %vm431_vm4 = vcmask (!%p204_p2), 1043456  }
   0x8   : > { %1383 = vmatprep.mubr.msk.bf16.mxu0 (!%p204_p2), %vm1541_vm0, %v1540_v0  ;;  %v311_v9 = vsel (!%p204_p2), %vm261_vm1, %v308_v7, 0  ;;  %v1646_v13 = vld.sshfl [vmem:[%s1795_s3] sm:$0x3 pattern:$0x76325410] (!%p204_p2)  ;;  %s1546_s17 = smov (!%p204_p2), 88  }
   0x9   : > { %v309_v42 = vld [vmem:[%s1795_s3] sm:$0x3] (!%p204_p2)  ;;  %s1548_s20 = smov (!%p204_p2), 72   ;;  %s1549_s21 = smov (!%p204_p2), 8   ;;  %vm723_vm5 = vcmask (!%p204_p2), 130112   ;;  %vm970_vm6 = vcmask (!%p204_p2), 195712  }
   0xa   : > { %v381_v43 = vsel (!%p204_p2), %vm379_vm3, %v309_v42, 0  ;;  %s1551_s24 = smov (!%p204_p2), 24   ;;  %vm1217_vm7 = vcmask (!%p204_p2), 261312   ;;  %vm1221_vm8 = vcmask (!%p204_p2), 257024  }
   0xb   : > { %1382 = vmatpush3.bf16.msra.mxu0 (!%p204_p2), %v381_v43 }
   0xc   : > { %1387 = vmatprep.subr.bf16.mxu0 (!%p204_p2), %v1540_v0 }
   0xd   : > { %s1799_s19 = smov (!%p236_p3, %s1297_s19), 1 }
   0xe   : > { %s1603_s23 = sshll.u32 %s1799_s19, 2  ;;  %s246_s14 = scalar_lea.vmem %s1796_s4, %s1799_s19 }
   0xf   : > { %s243_s26 = scalar_lea.vmem %s1793_s1, %s1603_s23  ;;  %s239_s29 = scalar_lea.vmem %s1792_s0, %s1603_s23  ;;  %v1681_v30 = vld [vmem:[%s246_s14] ss:$0 sm:$0xff] }
  0x10   : > { %v254_v2 = vld [vmem:[%s243_s26] sm:$0xf]  ;;  %s1547_s19 = smov 80   ;;  %s250_s27 = scalar_lea.vmem %s1797_s5, %s1603_s23 }
  0x11   : > { %v1609_v3 = vld [vmem:[%s243_s26] ss:$0 sps:$4 sm:$0xff]   ;;  %v266_v4 = vsel %vm261_vm1, %v254_v2, 0  ;;  %v1309_v14 = vcombine.low %v254_v2, %v254_v2 }
  0x12   : > { %1370 = vmatpush3.bf16.xpose.msra.mxu1 %v266_v4  ;;  %488 = vrot.lane.b32.xlu0 %v1609_v3, %s1542_s22  ;;  %v1503_v5 = vld [vmem:[%s239_s29] ss:$0 sps:$4 sm:$0xff]  }
  0x13   : > { %v1618_v6 = vld [vmem:[%s243_s26] ss:$0 sps:$4 sm:$0xff]   ;;  %1375 = vmatprep.subr.bf16.mxu1 %v1540_v0 }
  0x14   : > { %735 = vrot.lane.b32.xlu1 %v1618_v6, %s1543_s7  ;;  %v253_v8 = vld [vmem:[%s239_s29] sm:$0xf] }
  0x15   : > { %v1505_v10 = vld [vmem:[%s239_s29] ss:$0 sps:$4 sm:$0xff]  }
  0x16   : > { %483 = vrot.lane.b32.xlu0 %v1503_v5, %s1542_s22  ;;  %v1507_v11 = vld [vmem:[%s239_s29] ss:$0 sps:$4 sm:$0xff]  }
  0x17   : > { %v1633_v12 = vld [vmem:[%s243_s26] ss:$0 sps:$4 sm:$0xff]  }
  0x18   : > { %793 = vrot.lane.b32.xlu1 %v1314_v1, %s1543_s7 }
  0x19   : > { %1372 = vmatmul.mubr.msk.bf16.vlgmr.msra.gmra.mrb[0].mxu1 %vm261_vm1, %v253_v8 }
  0x1a   : > { %1376 = vmatpush3.bf16.xpose.msra.mxu1 %v311_v9  ;;  %1377 = vmatprep.mubr.msk.bf16.mxu1 %vm1541_vm0, %v1540_v0 }
  0x1b   : > { %730 = vrot.lane.b32.xlu0 %v1505_v10, %s1543_s7  ;;  %1393 = vmatprep.subr.bf16.mxu1 %v1540_v0 }
  0x1c   : > { %977 = vrot.lane.b32.xlu1 %v1507_v11, %s1544_s8 }
  0x1f   : > { %982 = vrot.lane.b32.xlu0 %v1633_v12, %s1544_s8 }
  0x20   : > { %621 = vrot.lane.b32.xlu1 %v1646_v13, %s1542_s22  ;;  %s1550_s22 = smov 16  }
  0x21   : > { %1378 = vmatmul.mubr.msk.bf16.vlgmr.msra.gmra.mrb[4].mxu1 %vm261_vm1, %v253_v8 }
  0x22   : > { %1395 = vmatprep.mubr.msk.bf16.mxu1 %vm1541_vm0, %v1540_v0 }
  0x23   : > { %1040 = vrot.lane.b32.xlu0 %v1314_v1, %s1544_s8 }
  0x27   : > { %426 = vrot.lane.b32.xlu0 %v1309_v14, %s1545_s11 }
  0x79   : > { %v547_v17 = vpop.permute.xlu1 %546 }
  0x7a   : > { %v549_v19 = vsel %vm261_vm1, %v547_v17, 0 }
  0x84   : > { %v489_v15 = vpop.permute.xlu0 %488 }
  0x85   : > { %v494_v16 = vsel %vm261_vm1, %v489_v15, 0 }
  0x86   : > { %1394 = vmatpush3.bf16.xpose.msra.mxu1 %v494_v16  ;;  %v736_v20 = vpop.permute.xlu1 %735 }
  0x87   : > { %1399 = vmatprep.subr.bf16.mxu1 %v1540_v0  ;;  %v741_v21 = vsel %vm261_vm1, %v736_v20, 0 }
  0x88   : > { %v484_v18 = vpop.permute.xlu0 %483 }
  0x8a   : > { %v794_v22 = vpop.permute.xlu1 %793 }
  0x8b   : > { %v796_v24 = vsel %vm261_vm1, %v794_v22, 0 }
  0x8d   : > { %1396 = vmatmul.mubr.msk.bf16.vlgmr.msra.gmra.mrb[8].mxu1 %vm261_vm1, %v484_v18  ;;  %v731_v23 = vpop.permute.xlu0 %730 }
  0x8e   : > { %1400 = vmatpush3.bf16.xpose.msra.mxu1 %v549_v19  ;;  %1401 = vmatprep.mubr.msk.bf16.mxu1 %vm1541_vm0, %v1540_v0  ;;  %v978_v28 = vpop.permute.xlu1 %977 }
  0x8f   : > { %1417 = vmatprep.subr.bf16.mxu1 %v1540_v0 }
  0x91   : > { %v983_v25 = vpop.permute.xlu0 %982 }
  0x92   : > { %v988_v26 = vsel %vm261_vm1, %v983_v25, 0  ;;  %v622_v4 = vpop.permute.xlu1 %621 }
  0x95   : > { %1402 = vmatmul.mubr.msk.bf16.vlgmr.msra.gmra.mrb[12].mxu1 %vm261_vm1, %v484_v18  ;;  %v1041_v27 = vpop.permute.xlu0 %1040 }
  0x96   : > { %1418 = vmatpush3.bf16.xpose.msra.mxu1 %v741_v21  ;;  %1419 = vmatprep.mubr.msk.bf16.mxu1 %vm1541_vm0, %v1540_v0  ;;  %v1043_v29 = vsel %vm261_vm1, %v1041_v27, 0  ;;  %v627_v27 = vsel %vm379_vm3, %v622_v4, 0 }
  0x97   : > { %1423 = vmatprep.subr.bf16.mxu1 %v1540_v0 }
  0x99   : > { %v427_v5 = vpop.permute.xlu0 %426 }
  0x9a   : > { %v433_v25 = vsel %vm431_vm4, %v427_v5, 0 }
  0x9d   : > { %1420 = vmatmul.mubr.msk.bf16.vlgmr.msra.gmra.mrb[16].mxu1 %vm261_vm1, %v731_v23 }
  0x9e   : > { %1424 = vmatpush3.bf16.xpose.msra.mxu1 %v796_v24  ;;  %1425 = vmatprep.mubr.msk.bf16.mxu1 %vm1541_vm0, %v1540_v0 }
  0x9f   : > { %1441 = vmatprep.subr.bf16.mxu1 %v1540_v0 }
  0xa5   : > { %1426 = vmatmul.mubr.msk.bf16.vlgmr.msra.gmra.mrb[20].mxu1 %vm261_vm1, %v731_v23 }
  0xa6   : > { %1442 = vmatpush3.bf16.xpose.msra.mxu1 %v988_v26  ;;  %1443 = vmatprep.mubr.msk.bf16.mxu1 %vm1541_vm0, %v1540_v0 }
  0xa7   : > { %1447 = vmatprep.subr.bf16.mxu1 %v1540_v0 }
  0xad   : > { %1444 = vmatmul.mubr.msk.bf16.vlgmr.msra.gmra.mrb[24].mxu1 %vm261_vm1, %v978_v28 }
  0xae   : > { %1448 = vmatpush3.bf16.xpose.msra.mxu1 %v1043_v29  ;;  %1449 = vmatprep.mubr.msk.bf16.mxu1 %vm1541_vm0, %v1540_v0 }
  0xb5   : > { %1450 = vmatmul.mubr.msk.bf16.vlgmr.msra.gmra.mrb[28].mxu1 %vm261_vm1, %v978_v28 }
  0xec   : > { %v302_v31 = vpop.f32.mrb[0].mxu1 }
  0xed   : > { %v1684_v32 = vadd.f32 %v1681_v30, %v302_v31  ;;  %v1373_v33 = vpop.f32.mrb[1].mxu1 }
  0xee   : > { %v305_v34 = vpop.f32.mrb[2].mxu1 }
  0xef   : > { %v1374_v35 = vpop.f32.mrb[3].mxu1  ;;  %v353_v36 = vsel %vm261_vm1, %v1684_v32, -inf }
  0xf0   : > { %354 = vmax.xlane.f32.xlu1 %v353_v36 }
  0xf4   : > { %v347_v37 = vpop.f32.mrb[4].mxu1 }
  0xf5   : > { %v357_v38 = vsel %vm356_vm2, %v347_v37, -inf  ;;  %v1379_v39 = vpop.f32.mrb[5].mxu1 }
  0xf6   : > { %358 = vmax.xlane.f32.xlu0 %v357_v38  ;;  %v350_v40 = vpop.f32.mrb[6].mxu1 }
  0xf7   : > { %v1380_v41 = vpop.f32.mrb[7].mxu1 }
 0x160   : > { %v530_v44 = vpop.f32.mrb[8].mxu1 }
 0x161   : > { %v1695_v45 = vadd.f32 %v1681_v30, %v530_v44  ;;  %v1397_v46 = vpop.f32.mrb[9].mxu1 }
 0x162   : > { %v533_v47 = vpop.f32.mrb[10].mxu1 }
 0x163   : > { %v1398_v48 = vpop.f32.mrb[11].mxu1  ;;  %v591_v49 = vsel %vm261_vm1, %v1695_v45, -inf }
 0x164   : > { %592 = vmax.xlane.f32.xlu0 %v591_v49 }
 0x168   : > { %v1699_v50 = vpop.f32.mrb[12].mxu1 }
 0x169   : > { %v1403_v51 = vpop.f32.mrb[13].mxu1  ;;  %v594_v52 = vsel %vm356_vm2, %v1699_v50, -inf }
 0x16a   : > { %595 = vmax.xlane.f32.xlu1 %v594_v52  ;;  %v588_v53 = vpop.f32.mrb[14].mxu1 }
 0x16b   : > { %v1404_v54 = vpop.f32.mrb[15].mxu1 }
 0x170   : > { %v777_v55 = vpop.f32.mrb[16].mxu1 }
 0x171   : > { %v1704_v56 = vadd.f32 %v1681_v30, %v777_v55  ;;  %v1421_v57 = vpop.f32.mrb[17].mxu1 }
 0x172   : > { %v780_v58 = vpop.f32.mrb[18].mxu1 }
 0x173   : > { %v1422_v59 = vpop.f32.mrb[19].mxu1  ;;  %v838_v60 = vsel %vm261_vm1, %v1704_v56, -inf }
 0x174   : > { %839 = vmax.xlane.f32.xlu0 %v838_v60 }
 0x178   : > { %v1708_v61 = vpop.f32.mrb[20].mxu1 }
 0x179   : > { %v1427_v62 = vpop.f32.mrb[21].mxu1  ;;  %v841_v63 = vsel %vm356_vm2, %v1708_v61, -inf }
 0x17a   : > { %842 = vmax.xlane.f32.xlu1 %v841_v63  ;;  %v835_v1 = vpop.f32.mrb[22].mxu1 }
 0x17b   : > { %v1428_v2 = vpop.f32.mrb[23].mxu1 }
 0x17d   : > { %v355_v8 = vpop.xlane.xlu1 %354 }
 0x180   : > { %v1024_v7 = vpop.f32.mrb[24].mxu1 }
 0x181   : > { %v1445_v9 = vpop.f32.mrb[25].mxu1  ;;  %v1025_v31 = vadd.f32 %v1681_v30, %v1024_v7 }
 0x182   : > { %v1027_v10 = vpop.f32.mrb[26].mxu1 }
 0x183   : > { %v359_v11 = vpop.xlane.xlu0 %358  ;;  %v1446_v14 = vpop.f32.mrb[27].mxu1 }
 0x184   : > { %v360_v15 = vmax.f32 %v355_v8, %v359_v11 }
 0x186   : > { %v364_v16 = vsub.f32 %v347_v37, %v360_v15  ;;  %v361_v22 = vsub.f32 %v1684_v32, %v360_v15  ;;  %v1085_v32 = vsel %vm261_vm1, %v1025_v31, -inf }
 0x188   : > { %v365_v17 = vmul.f32 1.442695, %v364_v16  ;;  %v1712_v18 = vpop.f32.mrb[28].mxu1  ;;  %v362_v23 = vmul.f32 1.442695, %v361_v22 }
 0x189   : > { %v1451_v19 = vpop.f32.mrb[29].mxu1  ;;  %v1088_v29 = vsel %vm356_vm2, %v1712_v18, -inf }
 0x18a   : > { %669 = vrot.lane.b32.xlu0 %v1609_v3, %s1546_s17  ;;  %v1082_v20 = vpop.f32.mrb[30].mxu1  ;;  %1508 = vpow2.f32 %v365_v17 }
 0x18b   : > { %868 = vrot.lane.b32.xlu1 %v1646_v13, %s1543_s7  ;;  %v1452_v21 = vpop.f32.mrb[31].mxu1  ;;  %1510 = vpow2.f32 %v362_v23 }
 0x194   : > { %v1718_v24 = vpop.eup %1508 }
 0x195   : > { %v375_v26 = vpack.c.bf16 %v1718_v24, %v1718_v24  ;;  %v1727_v3 = vpop.eup %1510  ;;  %v370_v19 = vsel %vm356_vm2, %v1718_v24, 0.0 }
 0x196   : > { %v374_v28 = vpack.c.bf16 %v1727_v3, %v1727_v3 }
 0x197   : > { %1384 = vmatmul.mubr.msk.bf16.vlgmr.msra.gmra.mrb[0].mxu0 %vm356_vm2, %v375_v26 }
 0x198   : > { %1388 = vmatpush3.bf16.msra.mxu0 %v433_v25  ;;  %1389 = vmatprep.mubr.msk.bf16.mxu0 %vm1541_vm0, %v1540_v0 }
 0x199   : > { %1405 = vmatprep.subr.bf16.mxu0 %v1540_v0 }
 0x1a3   : > { %1390 = vmatmul.mubr.msk.bf16.vlgmr.msra.gmra.mrb[0].mxu0 %vm261_vm1, %v374_v28 }
 0x1a4   : > { %1406 = vmatpush3.bf16.msra.mxu0 %v627_v27  ;;  %1407 = vmatprep.mubr.msk.bf16.mxu0 %vm1541_vm0, %v1540_v0 }
 0x1a5   : > { %1411 = vmatprep.subr.bf16.mxu0 %v1540_v0 }
 0x1a9   : > { %1089 = vmax.xlane.f32.xlu0 %v1088_v29 }
 0x1af   : > { %1086 = vmax.xlane.f32.xlu1 %v1085_v32 }
 0x1bf   : > { %1115 = vrot.lane.b32.xlu0 %v1646_v13, %s1544_s8 }
 0x1c0   : > { %916 = vrot.lane.b32.xlu1 %v1618_v6, %s1547_s19 }
 0x1c4   : > { %1163 = vrot.lane.b32.xlu1 %v1633_v12, %s1548_s20 }
 0x1f1   : > { %v593_v33 = vpop.xlane.xlu0 %592 }
 0x1f7   : > { %v596_v34 = vpop.xlane.xlu1 %595 }
 0x1f8   : > { %v597_v35 = vmax.f32 %v593_v33, %v596_v34 }
 0x1fa   : > { %v598_v36 = vsub.f32 %v1695_v45, %v597_v35  ;;  %v601_v37 = vsub.f32 %v1699_v50, %v597_v35 }
 0x1fc   : > { %v599_v30 = vmul.f32 1.442695, %v598_v36  ;;  %v602_v38 = vmul.f32 1.442695, %v601_v37 }
 0x1fe   : > { %1512 = vpow2.f32 %v599_v30 }
 0x1ff   : > { %1514 = vpow2.f32 %v602_v38 }
 0x201   : > { %v840_v39 = vpop.xlane.xlu0 %839 }
 0x205   : > { %v670_v6 = vpop.permute.xlu0 %669 }
 0x206   : > { %v675_v49 = vsel %vm431_vm4, %v670_v6, 0 }
 0x207   : > { %v843_v40 = vpop.xlane.xlu1 %842 }
 0x208   : > { %v1513_v13 = vpop.eup %1512  ;;  %v844_v41 = vmax.f32 %v840_v39, %v843_v40 }
 0x209   : > { %v1515_v42 = vpop.eup %1514  ;;  %v604_v43 = vsel %vm261_vm1, %v1513_v13, 0.0  ;;  %v611_v51 = vpack.c.bf16 %v1513_v13, %v1513_v13 }
 0x20a   : > { %v845_v12 = vsub.f32 %v1704_v56, %v844_v41  ;;  %v848_v44 = vsub.f32 %v1708_v61, %v844_v41  ;;  %v607_v45 = vsel %vm356_vm2, %v1515_v42, 0.0  ;;  %605 = vadd.xlane.f32.xlu0 %v604_v43  ;;  %v612_v46 = vpack.c.bf16 %v1515_v42, %v1515_v42 }
 0x20b   : > { %608 = vadd.xlane.f32.xlu1 %v607_v45  ;;  %v869_v50 = vpop.permute.xlu1 %868 }
 0x20c   : > { %v846_v47 = vmul.f32 1.442695, %v845_v12  ;;  %v849_v48 = vmul.f32 1.442695, %v848_v44  ;;  %1408 = vmatmul.mubr.msk.bf16.vlgmr.msra.gmra.mrb[4].mxu0 %vm356_vm2, %v612_v46  ;;  %v874_v53 = vsel %vm379_vm3, %v869_v50, 0 }
 0x20d   : > { %1412 = vmatpush3.bf16.msra.mxu0 %v675_v49  ;;  %1413 = vmatprep.mubr.msk.bf16.mxu0 %vm1541_vm0, %v1540_v0 }
 0x20e   : > { %1516 = vpow2.f32 %v846_v47  ;;  %1429 = vmatprep.subr.bf16.mxu0 %v1540_v0 }
 0x20f   : > { %1518 = vpow2.f32 %v849_v48 }
 0x218   : > { %v1517_v52 = vpop.eup %1516  ;;  %1414 = vmatmul.mubr.msk.bf16.vlgmr.msra.gmra.mrb[4].mxu0 %vm261_vm1, %v611_v51 }
 0x219   : > { %1430 = vmatpush3.bf16.msra.mxu0 %v874_v53  ;;  %v851_v54 = vsel %vm261_vm1, %v1517_v52, 0.0  ;;  %1431 = vmatprep.mubr.msk.bf16.mxu0 %vm1541_vm0, %v1540_v0  ;;  %v1519_v55 = vpop.eup %1518  ;;  %v858_v7 = vpack.c.bf16 %v1517_v52, %v1517_v52 }
 0x21a   : > { %852 = vadd.xlane.f32.xlu0 %v851_v54  ;;  %1435 = vmatprep.subr.bf16.mxu0 %v1540_v0  ;;  %v854_v56 = vsel %vm356_vm2, %v1519_v55, 0.0  ;;  %v859_v57 = vpack.c.bf16 %v1519_v55, %v1519_v55 }
 0x21e   : > { %855 = vadd.xlane.f32.xlu0 %v854_v56 }
 0x220   : > { %1432 = vmatmul.mubr.msk.bf16.vlgmr.msra.gmra.mrb[8].mxu0 %vm356_vm2, %v859_v57 }
 0x221   : > { %1437 = vmatprep.mubr.msk.bf16.mxu0 %vm1541_vm0, %v1540_v0 }
 0x236   : > { %v1090_v58 = vpop.xlane.xlu0 %1089 }
 0x23a   : > { %v1116_v1 = vpop.permute.xlu0 %1115 }
 0x23b   : > { %v1121_v8 = vsel %vm379_vm3, %v1116_v1, 0 }
 0x23c   : > { %v1087_v59 = vpop.xlane.xlu1 %1086 }
 0x23d   : > { %v1091_v60 = vmax.f32 %v1087_v59, %v1090_v58 }
 0x23f   : > { %v1092_v61 = vsub.f32 %v1025_v31, %v1091_v60  ;;  %v1095_v62 = vsub.f32 %v1712_v18, %v1091_v60  ;;  %v367_v18 = vsel %vm261_vm1, %v1727_v3, 0.0 }
 0x240   : > { %v917_v63 = vpop.permute.xlu1 %916 }
 0x241   : > { %v1093_v2 = vmul.f32 1.442695, %v1092_v61  ;;  %v1096_v4 = vmul.f32 1.442695, %v1095_v62  ;;  %v922_v5 = vsel %vm431_vm4, %v917_v63, 0 }
 0x242   : > { %1436 = vmatpush3.bf16.msra.mxu0 %v922_v5 }
 0x243   : > { %1520 = vpow2.f32 %v1093_v2  ;;  %1453 = vmatprep.subr.bf16.mxu0 %v1540_v0 }
 0x244   : > { %1522 = vpow2.f32 %v1096_v4  ;;  %v1164_v9 = vpop.permute.xlu1 %1163 }
 0x245   : > { %1438 = vmatmul.mubr.msk.bf16.vlgmr.msra.gmra.mrb[8].mxu0 %vm261_vm1, %v858_v7  ;;  %v1169_v17 = vsel %vm431_vm4, %v1164_v9, 0 }
 0x246   : > { %1454 = vmatpush3.bf16.msra.mxu0 %v1121_v8  ;;  %1455 = vmatprep.mubr.msk.bf16.mxu0 %vm1541_vm0, %v1540_v0 }
 0x247   : > { %1459 = vmatprep.subr.bf16.mxu0 %v1540_v0 }
 0x24d   : > { %v1521_v10 = vpop.eup %1520 }
 0x24e   : > { %v1523_v11 = vpop.eup %1522  ;;  %v1098_v14 = vsel %vm261_vm1, %v1521_v10, 0.0  ;;  %v1105_v20 = vpack.c.bf16 %v1521_v10, %v1521_v10 }
 0x24f   : > { %v1101_v15 = vsel %vm356_vm2, %v1523_v11, 0.0  ;;  %1099 = vadd.xlane.f32.xlu1 %v1098_v14  ;;  %v1106_v16 = vpack.c.bf16 %v1523_v11, %v1523_v11 }
 0x250   : > { %1102 = vadd.xlane.f32.xlu0 %v1101_v15 }
 0x251   : > { %1456 = vmatmul.mubr.msk.bf16.vlgmr.msra.gmra.mrb[12].mxu0 %vm356_vm2, %v1106_v16 }
 0x252   : > { %1460 = vmatpush3.bf16.msra.mxu0 %v1169_v17  ;;  %1461 = vmatprep.mubr.msk.bf16.mxu0 %vm1541_vm0, %v1540_v0 }
 0x253   : > { %368 = vadd.xlane.f32.xlu1 %v367_v18 }
 0x254   : > { %371 = vadd.xlane.f32.xlu0 %v370_v19 }
 0x25d   : > { %1462 = vmatmul.mubr.msk.bf16.vlgmr.msra.gmra.mrb[12].mxu0 %vm261_vm1, %v1105_v20 }
 0x276   : > { %v469_v21 = vpop.f32.mrb[0].mxu0 }
 0x277   : > { %v1391_v22 = vpop.f32.mrb[1].mxu0 }
 0x278   : > { %v472_v23 = vpop.f32.mrb[2].mxu0 }
 0x279   : > { %v1392_v25 = vpop.f32.mrb[3].mxu0 }
 0x297   : > { %v606_v26 = vpop.xlane.xlu0 %605 }
 0x298   : > { %v609_v28 = vpop.xlane.xlu1 %608 }
 0x299   : > { %v610_v31 = vadd.f32 %v609_v28, %v606_v26 }
 0x29b   : > { %1524 = vrcp.f32 %v610_v31 }
 0x2a5   : > { %v1525_v35 = vpop.eup %1524 }
 0x2a7   : > { %v853_v27 = vpop.xlane.xlu0 %852 }
 0x2ab   : > { %v856_v3 = vpop.xlane.xlu0 %855 }
 0x2ac   : > { %v857_v41 = vadd.f32 %v856_v3, %v853_v27 }
 0x2dc   : > { %v1100_v29 = vpop.xlane.xlu1 %1099 }
 0x2dd   : > { %v1103_v32 = vpop.xlane.xlu0 %1102 }
 0x2de   : > { %v1104_v0 = vadd.f32 %v1103_v32, %v1100_v29 }
 0x2e0   : > { %v369_v33 = vpop.xlane.xlu1 %368 }
 0x2e1   : > { %v372_v24 = vpop.xlane.xlu0 %371 }
 0x2e2   : > { %v373_v34 = vadd.f32 %v372_v24, %v369_v33 }
 0x2e4   : > { %1526 = vrcp.f32 %v373_v34 }
 0x2e5   : > { %1528 = vrcp.f32 %v857_v41 }
 0x2e6   : > { %1530 = vrcp.f32 %v1104_v0 }
 0x2eb   : > { %v711_v36 = vpop.f32.mrb[4].mxu0 }
 0x2ec   : > { %v718_v37 = vmul.f32 %v1525_v35, %v711_v36  ;;  %v1415_v30 = vpop.f32.mrb[5].mxu0 }
 0x2ed   : > { %v714_v38 = vpop.f32.mrb[6].mxu0 }
 0x2ee   : > { %v1527_v39 = vpop.eup %1526  ;;  %v1416_v40 = vpop.f32.mrb[7].mxu0  ;;  %720 = vrot.lane.b32.xlu1 %v718_v37, %s1549_s21 }
 0x2ef   : > { %v476_v13 = vmul.f32 %v1527_v39, %v469_v21  ;;  %v1529_v42 = vpop.eup %1528 }
 0x2f0   : > { %v1531_v46 = vpop.eup %1530 }
 0x2f1   : > { %477 = vst.msk [vmem:[#allocation2] sm:$0xff] %vm261_vm1, %v476_v13 }
 0x318   : > { %v958_v6 = vpop.f32.mrb[8].mxu0 }
 0x319   : > { %v965_v43 = vmul.f32 %v1529_v42, %v958_v6  ;;  %v1439_v12 = vpop.f32.mrb[9].mxu0 }
 0x31a   : > { %v961_v44 = vpop.f32.mrb[10].mxu0 }
 0x31b   : > { %v1440_v45 = vpop.f32.mrb[11].mxu0  ;;  %967 = vrot.lane.b32.xlu0 %v965_v43, %s1550_s22 }
 0x330   : > { %v1205_v47 = vpop.f32.mrb[12].mxu0 }
 0x331   : > { %v1212_v48 = vmul.f32 %v1531_v46, %v1205_v47  ;;  %v1463_v49 = vpop.f32.mrb[13].mxu0 }
 0x332   : > { %v1208_v50 = vpop.f32.mrb[14].mxu0 }
 0x333   : > { %v1464_v51 = vpop.f32.mrb[15].mxu0  ;;  %1214 = vrot.lane.b32.xlu1 %v1212_v48, %s1551_s24 }
 0x360   : > { %v721_v52 = vpop.permute.xlu1 %720 }
 0x361   : > { %724 = vst.msk [vmem:[#allocation2] sm:$0xff] %vm723_vm5, %v721_v52 }
 0x38d   : > { %v968_v53 = vpop.permute.xlu0 %967 }
 0x38e   : > { %971 = vst.msk [vmem:[#allocation2] sm:$0xff] %vm970_vm6, %v968_v53 }
 0x3a5   : > { %v1215_v54 = vpop.permute.xlu1 %1214 }
 0x3a6   : > { %1218 = vst.msk [vmem:[#allocation2] sm:$0xff] %vm1217_vm7, %v1215_v54 }
 0x3ad   : > { %v1219_v55 = vld [vmem:[#allocation2] sm:$0xff] }
 0x3ae   : > { %v1220_v56 = vpack.c.bf16 %v1219_v55, %v1219_v55 }
 0x3b0   : > { %1222 = vst.msk [vmem:[%s250_s27] sm:$0xf] %vm1221_vm8, %v1220_v56 }
 0x3b1 PF: > { %s15_s18 = sadd.s32 1, %s1538_s18  }
 0x3b2   : > { %p12_p4 = scmp.ge.s32.totalorder %s15_s18, 4  }
 0x3b4   :  { %14 = sbr.rel (!%p12_p4) target bundleno = 1 (0x1), region = 76 }

// kernel: sequential_attention_forward.25
= control target key start
LH: loop header
LB: loop body
LE: loop exit
PB: predicated region body
PF: predicated region fallthrough
CT: control target
= control target key end

     0   :  { %v294_v1 = vmov 0.0   ;;  %vm295_vm0 = vmmov 0   ;;  %vm32_vm1 = vcmask 261120   ;;  %s395_s0 = inlined_call_operand.vmem [shape: bf16[16,64], index: 0, kind: input, shape index: {}]   ;;  %s396_s1 = inlined_call_operand.vmem [shape: bf16[64,32], index: 1, kind: input, shape index: {}]   ;;  %s397_s2 = inlined_call_operand.vmem [shape: f32[1,32], index: 2, kind: input, shape index: {}]   ;;  %s398_s3 = inlined_call_operand.vmem [shape: bf16[16,32], index: 3, kind: input, shape index: {}]   ;;  %s399_s4 = inlined_call_operand.vmem [shape: f32[1,32], index: 4, kind: input, shape index: {}]   ;;  %s400_s5 = inlined_call_operand.vmem [shape: f32[1,32], index: 5, kind: input, shape index: {}]   ;;  %s401_s6 = inlined_call_operand.vmem [shape: f32[16,1], index: 6, kind: input, shape index: {}]   ;;  %s402_s7 = inlined_call_operand.hbm [shape: f32[16,32], index: 7, kind: output, shape index: {}]  }
   0x1   :  { %v261_v0 = vld [vmem:[%s396_s1] sm:$0xff]   ;;  %241 = vmatprep.subr.bf16.mxu0 %v294_v1  ;;  %v262_v2 = vld [vmem:[%s396_s1 + $0x8] sm:$0xff]   ;;  %249 = vmatprep.mubr.msk.bf16.mxu0 %vm295_vm0, %v294_v1  ;;  %33 = vst.msk [vmem:[#allocation2] sm:$0xff] %vm32_vm1, %v294_v1  ;;  %34 = vst.msk [vmem:[#allocation2 + $0x8] sm:$0xff] %vm32_vm1, %v294_v1 }
   0x2   :  { %242 = vmatpush3.bf16.msra.mxu0 %v261_v0 }
   0x3   :  { %243 = vmatprep.subr.bf16.mxu0 %v294_v1 }
   0x4   :  { %12 = vsyncpa [#allocation4], 0  ;;  %v263_v3 = vld [vmem:[%s396_s1 + $0x10] sm:$0xff]   ;;  %v264_v4 = vld [vmem:[%s396_s1 + $0x18] sm:$0xff]   ;;  %vm76_vm2 = vcmask 523264   ;;  %v296_v27 = vmov 0  }
   0x5   :  { %v265_v5 = vld [vmem:[%s395_s0] sm:$0xff]   ;;  %259 = vset.pattern.permute.xlu0 %v296_v27  ;;  %260 = vset.pattern.permute.xlu1 %v296_v27  ;;  %v192_v38 = vld [vmem:[%s401_s6 + $0x8] sm:$0xff] }
   0x6   :  { %244 = vmatpush3.bf16.msra.mxu0 %v262_v2  ;;  %v233_v14 = vld [vmem:[%s398_s3] sm:$0xff]  }
   0x7   :  { %245 = vmatprep.subr.bf16.mxu0 %v294_v1  ;;  %v229_v15 = vld [vmem:[%s397_s2] ss:$0 sm:$0xff]  ;;  %v234_v16 = vunpack.c.l.bf16 %v233_v14  ;;  %v235_v19 = vunpack.c.h.bf16 %v233_v14 }
   0x8   :  { %v35_v6 = vld [vmem:[#allocation2] sm:$0xff]  ;;  %v36_v8 = vld [vmem:[#allocation2 + $0x8] sm:$0xff] }
   0x9   :  { %v191_v26 = vld [vmem:[%s401_s6] sm:$0xff]  ;;  %s297_s6 = smov [#allocation3]  }
   0xa   :  { %246 = vmatpush3.bf16.msra.mxu0 %v263_v3  ;;  %v230_v46 = vld [vmem:[%s399_s4] ss:$0 sm:$0xff]  ;;  %s212_s19 = sshll.u32 %s297_s6, 4  ;;  %s213_s19 = int_to_ptr.vmem [resolvable:$true] %s212_s19 }
   0xb   :  { %247 = vmatprep.subr.bf16.mxu0 %v294_v1  ;;  %v231_v48 = vld [vmem:[%s400_s5] ss:$0 sm:$0xff]  ;;  %s270_s4 = scalar_lea.vmem %s213_s19, 256  ;;  %p275_p1 = scmp.lt.s32.totalorder %s213_s19, %s213_s19 }
   0xc   :  { %p271_p0 = scmp.ne.s32.totalorder %s213_s19, %s270_s4  ;;  %p276_p2 = scmp.lt.s32.totalorder %s270_s4, %s270_s4 }
   0xe   :  { %248 = vmatpush3.bf16.msra.mxu0 %v264_v4  ;;  %p277_p3 = por %p276_p2, %p275_p1 }
  0x10   :  { %p278_p4 = pnand %p277_p3, %p271_p0 }
  0x11   :  { %250 = vmatmul.mubr.msk.bf16.vlgmr.msra.gmra.mrb[0].mxu0 %vm76_vm2, %v265_v5 }
  0xe4   :  { %v114_v7 = vpop.f32.mrb[0].mxu0 }
  0xe5   :  { %v121_v9 = vadd.f32 %v114_v7, %v35_v6  ;;  %v251_v10 = vpop.f32.mrb[1].mxu0 }
  0xe6   :  { %v117_v11 = vpop.f32.mrb[2].mxu0 }
  0xe7   :  { %124 = vst.msk [vmem:[#allocation2] sm:$0xff] %vm32_vm1, %v121_v9  ;;  %v122_v12 = vadd.f32 %v117_v11, %v36_v8  ;;  %v252_v13 = vpop.f32.mrb[3].mxu0 }
  0xe9   :  { %125 = vst.msk [vmem:[#allocation2 + $0x8] sm:$0xff] %vm32_vm1, %v122_v12 }
  0xee   :  { %v129_v17 = vld [vmem:[#allocation2] sm:$0xff] }
  0xef   :  { %v138_v18 = vadd.f32 %v229_v15, %v129_v17 }
  0xf0   :  { %v130_v20 = vld [vmem:[#allocation2 + $0x8] sm:$0xff] }
  0xf1   :  { %v144_v21 = vadd.f32 %v234_v16, %v138_v18  ;;  %v139_v22 = vadd.f32 %v229_v15, %v130_v20 }
  0xf3   :  { %v146_v23 = vsel %vm32_vm1, %v144_v21, 0.0  ;;  %v145_v24 = vadd.f32 %v235_v19, %v139_v22 }
  0xf4   :  { %147 = vadd.xlane.f32.xlu0 %v146_v23 }
  0xf5   :  { %v149_v25 = vsel %vm32_vm1, %v145_v24, 0.0 }
  0xf8   :  { %150 = vadd.xlane.f32.xlu0 %v149_v25 }
 0x10e   :  { %195 = vperm.xlu0 %259, %v191_v26  }
 0x181   :  { %v148_v28 = vpop.xlane.xlu0 %147 }
 0x182   :  { %v153_v29 = vmul.f32 0.03125, %v148_v28 }
 0x184   :  { %v155_v30 = vsub.f32 %v144_v21, %v153_v29 }
 0x185   :  { %v151_v31 = vpop.xlane.xlu0 %150 }
 0x186   :  { %v154_v32 = vmul.f32 0.03125, %v151_v31  ;;  %v157_v33 = vmul.f32 %v155_v30, %v155_v30 }
 0x188   :  { %v156_v34 = vsub.f32 %v145_v24, %v154_v32  ;;  %v159_v35 = vsel %vm32_vm1, %v157_v33, 0.0 }
 0x189   :  { %160 = vadd.xlane.f32.xlu1 %v159_v35 }
 0x18a   :  { %v158_v36 = vmul.f32 %v156_v34, %v156_v34 }
 0x18c   :  { %v162_v37 = vsel %vm32_vm1, %v158_v36, 0.0 }
 0x18d   :  { %163 = vadd.xlane.f32.xlu1 %v162_v37  ;;  %v196_v51 = vpop.permute.xlu0 %195 }
 0x19e   :  { %200 = vperm.xlu1 %260, %v192_v38  }
 0x216   :  { %v161_v39 = vpop.xlane.xlu1 %160 }
 0x217   :  { %v165_v40 = vmul.f32 0.03125, %v161_v39 }
 0x219   :  { %v167_v41 = vadd.f32 1e-05, %v165_v40 }
 0x21a   :  { %v164_v42 = vpop.xlane.xlu1 %163 }
 0x21b   :  { %266 = vrsqrt.f32 %v167_v41  ;;  %v166_v43 = vmul.f32 0.03125, %v164_v42 }
 0x21d   :  { %v168_v44 = vadd.f32 1e-05, %v166_v43 }
 0x21e   :  { %v201_v56 = vpop.permute.xlu1 %200 }
 0x21f   :  { %268 = vrsqrt.f32 %v168_v44 }
 0x225   :  { %v267_v45 = vpop.eup %266 }
 0x226   :  { %v171_v47 = vmul.f32 %v267_v45, %v155_v30 }
 0x228   :  { %v180_v49 = vmul.f32 %v230_v46, %v171_v47 }
 0x229   :  { %v269_v50 = vpop.eup %268 }
 0x22a   :  { %v189_v52 = vadd.f32 %v231_v48, %v180_v49  ;;  %v172_v53 = vmul.f32 %v269_v50, %v156_v34 }
 0x22c   :  { %v203_v54 = vmul.f32 %v196_v51, %v189_v52  ;;  %v181_v55 = vmul.f32 %v230_v46, %v172_v53 }
 0x22e   :  { %205 = vst.msk [vmem:[#allocation3] sm:$0xff] %vm32_vm1, %v203_v54  ;;  %v190_v57 = vadd.f32 %v231_v48, %v181_v55 }
 0x230   :  { %v204_v58 = vmul.f32 %v201_v56, %v190_v57 }
 0x232   :  { %206 = vst.msk [vmem:[#allocation3 + $0x8] sm:$0xff] %vm32_vm1, %v204_v58 }
 0x233   :  { %281 = shalt.err (!%p278_p4)
}
 0x234   :  { %s282_s21 = scalar_lea.hbm %s402_s7, 256 }
 0x235   :  { %p283_p5 = scmp.ne.s32.totalorder %s402_s7, %s282_s21  ;;  %p286_p6 = scmp.lt.u32.totalorder %s282_s21, %s402_s7 }
 0x237   :  { %p288_p7 = pnand %p286_p6, %p283_p5 }
 0x239   :  { %291 = shalt.err (!%p288_p7)
}
 0x23a   :  { %s298_s26 = smov 128   ;;  %s299_s27 = smov 8  }
 0x23b   :  { %218 = dma.vmem_to_hbm [thread:$0]  %s213_s19, 256, %s402_s7, [#allocation4], %s298_s26, %s298_s26, %s299_s27  }
 0x23c   :  { %292 = dma.done.wait [#allocation4], 256  }
 0x23d   :  { %293 = vsyncadd [#allocation4], 4294967040 }
 0x23e   :  { %222 = vsyncpa [#allocation4], 1 }

</bundles_post_ra>
